<compile_context>
chip_gen: v7x
topology: tpu7x:2x2x1
jax: 0.10.0
libtpu: 0.0.40
codegen_flags: <defaults>
</compile_context>

<pallas_src>
import functools

import jax
import jax.numpy as jnp
from jax.experimental import pallas as pl
from jax.experimental.pallas import tpu as pltpu

LANE = 128


def _round_up(x, m):
    return -(-x // m) * m


def _pad_axis(x, axis, mult=LANE):
    pad = (-x.shape[axis]) % mult
    if pad == 0:
        return x
    widths = [(0, 0)] * x.ndim
    widths[axis] = (0, pad)
    return jnp.pad(x, widths)


def _pad_axis_to(x, axis, target):
    pad = target - x.shape[axis]
    if pad <= 0:
        return x
    widths = [(0, 0)] * x.ndim
    widths[axis] = (0, pad)
    return jnp.pad(x, widths)


def _pick_tiles(n_dst, n_src, tile_m, tile_k):
    """Cap tiles to the problem size.  Keeps >=2 dst blocks when possible so
    v7x's two TensorCores both get work on the 'parallel' dst axis, and forces
    tile_k to a multiple of tile_m so the single padded h array tiles evenly
    under both the (tile_k, f) src spec and the (tile_m, f) dst spec."""
    n_dst_aligned = _round_up(n_dst, LANE)
    tile_m = max(LANE, min(tile_m, n_dst_aligned))
    if n_dst_aligned >= 2 * LANE:
        while tile_m > LANE and _round_up(n_dst, tile_m) // tile_m < 2:
            tile_m -= LANE
    tile_k = max(tile_m, min(tile_k, _round_up(n_src, LANE)))
    tile_k -= tile_k % tile_m
    return tile_m, tile_k


# ---------------------------------------------------------------------------
# Pallas kernels
# ---------------------------------------------------------------------------
def sage_layer_kernel(a_ref, hsrc_ref, hdst_ref, wself_ref, wneigh_ref, b_ref,
                      o_ref, acc_ref):
    """K-tiled SAGEConv('mean') + ReLU for one tile of dst nodes.

    grid = (dst_tiles, src_tiles); the src (contraction) axis is innermost and
    'arbitrary'.  agg = sum_k A[i,k] @ h_src[k] accumulates into f32 VMEM
    scratch.  On the last k step the epilogue runs as two MXU passes against
    the separate W_self / W_neigh weights (no concat materialization):
        out = relu(h_dst @ W_self + agg @ W_neigh + b)
    """
    k = pl.program_id(1)

    @pl.when(k == 0)
    def _():
        acc_ref[...] = jnp.zeros_like(acc_ref)

    acc_ref[...] += jnp.dot(a_ref[...], hsrc_ref[...],
                            preferred_element_type=jnp.float32)

    @pl.when(k == pl.num_programs(1) - 1)
    def _():
        out = (jnp.dot(hdst_ref[...], wself_ref[...],
                       preferred_element_type=jnp.float32)
               + jnp.dot(acc_ref[...].astype(jnp.bfloat16), wneigh_ref[...],
                         preferred_element_type=jnp.float32)
               + b_ref[...])
        o_ref[...] = jnp.maximum(out, 0.0).astype(o_ref.dtype)


def sage_layer_fc1_kernel(a_ref, hsrc_ref, hdst_ref, wself_ref, wneigh_ref,
                          b_ref, fc1w_ref, fc1b_ref, o_ref, acc_ref):
    """Last SAGE layer with the final fc1 Linear fused into the finalize step."""
    k = pl.program_id(1)

    @pl.when(k == 0)
    def _():
        acc_ref[...] = jnp.zeros_like(acc_ref)

    acc_ref[...] += jnp.dot(a_ref[...], hsrc_ref[...],
                            preferred_element_type=jnp.float32)

    @pl.when(k == pl.num_programs(1) - 1)
    def _():
        hidden = jnp.maximum(
            jnp.dot(hdst_ref[...], wself_ref[...],
                    preferred_element_type=jnp.float32)
            + jnp.dot(acc_ref[...].astype(jnp.bfloat16), wneigh_ref[...],
                      preferred_element_type=jnp.float32)
            + b_ref[...], 0.0)
        # TODO(synk): training-mode dropout on `hidden` (pltpu.prng_random_bits
        # mask) not applied here; eval semantics (identity) are used.
        out = (jnp.dot(hidden.astype(jnp.bfloat16), fc1w_ref[...],
                       preferred_element_type=jnp.float32) + fc1b_ref[...])
        o_ref[...] = out.astype(o_ref.dtype)


# ---------------------------------------------------------------------------
# Wrappers calling pallas_call
# ---------------------------------------------------------------------------
def _sage_pallas_call(kernel, a, h, weight_args, weight_specs, out_feats,
                      out_dtype, tile_m, tile_k):
    """Shared wrapper: pads node axes to the tile grid, builds the grid spec.

    a: [N_dst, N_src] row-normalized bf16 adjacency; h: [N_src, F_pad] bf16.
    The same padded h array is passed for both the src-chunk and dst-tile
    operands (dst nodes are a prefix of src nodes in DGL blocks).
    """
    n_dst, n_src = a.shape
    f_in = h.shape[1]
    assert f_in % LANE == 0 and out_feats % LANE == 0
    tile_m, tile_k = _pick_tiles(n_dst, n_src, tile_m, tile_k)
    n_dst_p = _round_up(n_dst, tile_m)
    n_src_p = _round_up(n_src, tile_k)
    # zero-pad node axes to the tile grid (no-op when already aligned)
    a = _pad_axis_to(_pad_axis_to(a, 0, n_dst_p), 1, n_src_p)
    h = _pad_axis_to(h, 0, n_src_p)
    grid = (n_dst_p // tile_m, n_src_p // tile_k)
    out = pl.pallas_call(
        kernel,
        out_shape=jax.ShapeDtypeStruct((n_dst_p, out_feats), out_dtype),
        grid_spec=pltpu.PrefetchScalarGridSpec(
            num_scalar_prefetch=0,
            grid=grid,
            in_specs=[
                # A tile: the only k-varying full-rate stream.
                # TODO(synk): for realistic sparse graphs (avg_deg ~8) a
                # CSR/padded-neighbor gather with scalar-prefetched indices
                # would cut A traffic by ~N/deg; dense A kept here.
                pl.BlockSpec((tile_m, tile_k), lambda i, k: (i, k)),
                pl.BlockSpec((tile_k, f_in), lambda i, k: (k, 0)),  # h_src chunk
                pl.BlockSpec((tile_m, f_in), lambda i, k: (i, 0)),  # h_dst tile
            ] + weight_specs,
            out_specs=pl.BlockSpec((tile_m, out_feats), lambda i, k: (i, 0)),
            scratch_shapes=[pltpu.VMEM((tile_m, f_in), jnp.float32)],
        ),
        compiler_params=pltpu.CompilerParams(
            dimension_semantics=("parallel", "arbitrary")),
    )(a, h, h, *weight_args)
    return out[:n_dst]


def sage_layer(a, h, w_self, w_neigh, bias, *, tile_m=256, tile_k=512):
    f_in = h.shape[1]
    f_out = w_self.shape[1]
    specs = [
        pl.BlockSpec((f_in, f_out), lambda i, k: (0, 0)),  # W_self  (k-invariant)
        pl.BlockSpec((f_in, f_out), lambda i, k: (0, 0)),  # W_neigh (k-invariant)
        pl.BlockSpec((1, f_out), lambda i, k: (0, 0)),     # bias
    ]
    return _sage_pallas_call(sage_layer_kernel, a, h,
                             (w_self, w_neigh, bias), specs,
                             f_out, jnp.bfloat16, tile_m, tile_k)


def sage_layer_fused_fc1(a, h, w_self, w_neigh, bias, fc1_w, fc1_b, *,
                         tile_m=256, tile_k=512):
    f_in = h.shape[1]
    f_hid = w_self.shape[1]
    f_cls = fc1_w.shape[1]
    specs = [
        pl.BlockSpec((f_in, f_hid), lambda i, k: (0, 0)),
        pl.BlockSpec((f_in, f_hid), lambda i, k: (0, 0)),
        pl.BlockSpec((1, f_hid), lambda i, k: (0, 0)),
        pl.BlockSpec((f_hid, f_cls), lambda i, k: (0, 0)),
        pl.BlockSpec((1, f_cls), lambda i, k: (0, 0)),
    ]
    return _sage_pallas_call(sage_layer_fc1_kernel, a, h,
                             (w_self, w_neigh, bias, fc1_w, fc1_b), specs,
                             f_cls, jnp.float32, tile_m, tile_k)


# ---------------------------------------------------------------------------
# SAGE model (forward pass)
# ---------------------------------------------------------------------------
def init_sage_params(key, in_feats, n_hidden, n_classes, n_layers):
    """Deterministic param init matching the module's layer shapes (f32)."""
    params = {"layers": []}
    dims = [in_feats] + [n_hidden] * n_layers
    for l in range(n_layers):
        key, k1, k2, k3 = jax.random.split(key, 4)
        f_in, f_out = dims[l], dims[l + 1]
        scale = 1.0 / jnp.sqrt(f_in)
        params["layers"].append({
            "w_self": jax.random.uniform(k1, (f_in, f_out), jnp.float32,
                                         -scale, scale),
            "w_neigh": jax.random.uniform(k2, (f_in, f_out), jnp.float32,
                                          -scale, scale),
            "bias": jax.random.uniform(k3, (1, f_out), jnp.float32,
                                       -scale, scale),
        })
    key, k1, k2 = jax.random.split(key, 3)
    scale = 1.0 / jnp.sqrt(n_hidden)
    params["fc1_w"] = jax.random.uniform(k1, (n_hidden, n_classes), jnp.float32,
                                         -scale, scale)
    params["fc1_b"] = jax.random.uniform(k2, (1, n_classes), jnp.float32,
                                         -scale, scale)
    return params


def prepare_sage_params(params):
    """Pad feature dims to lane multiples and cast weights to bf16 ONCE,
    outside the hot forward path (perf feedback: no per-forward prep)."""
    prep = {"layers": []}
    for lyr in params["layers"]:
        prep["layers"].append({
            "w_self": _pad_axis(_pad_axis(lyr["w_self"], 0), 1).astype(jnp.bfloat16),
            "w_neigh": _pad_axis(_pad_axis(lyr["w_neigh"], 0), 1).astype(jnp.bfloat16),
            "bias": _pad_axis(lyr["bias"], 1).astype(jnp.float32),
        })
    prep["fc1_w"] = _pad_axis(_pad_axis(params["fc1_w"], 0), 1).astype(jnp.bfloat16)
    prep["fc1_b"] = _pad_axis(params["fc1_b"], 1).astype(jnp.float32)
    return prep


def prepare_block(a):
    """Row-normalized dense adjacency -> bf16 ONCE (hoisted out of forward)."""
    return a.astype(jnp.bfloat16)


@functools.partial(jax.jit, static_argnames=("n_classes", "tile_m", "tile_k"))
def sage_forward(prep, blocks, x, *, n_classes, tile_m=256, tile_k=512):
    """Mirrors SAGE.forward (eval): SAGEConv('mean') -> ReLU -> dropout(eval)
    per layer, then fc1 (fused into the last layer's kernel)."""
    n_layers = len(prep["layers"])
    h = _pad_axis(x, 1).astype(jnp.bfloat16)
    out = None
    for l, (lyr, a) in enumerate(zip(prep["layers"], blocks)):
        if l == n_layers - 1:
            out = sage_layer_fused_fc1(a, h, lyr["w_self"], lyr["w_neigh"],
                                       lyr["bias"], prep["fc1_w"],
                                       prep["fc1_b"],
                                       tile_m=tile_m, tile_k=tile_k)
            break
        h = sage_layer(a, h, lyr["w_self"], lyr["w_neigh"], lyr["bias"],
                       tile_m=tile_m, tile_k=tile_k)
        # TODO(synk): training-mode dropout between layers not applied (eval).
    return out[:, :n_classes]


# ---------------------------------------------------------------------------
# Demo
# ---------------------------------------------------------------------------
def make_mean_adjacency(key, n, avg_deg=8):
    """Random graph -> dense row-normalized adjacency (mean aggregator)."""
    adj = (jax.random.uniform(key, (n, n)) < (avg_deg / n)).astype(jnp.float32)
    deg = jnp.maximum(adj.sum(axis=1, keepdims=True), 1.0)
    return adj / deg


if __name__ == "__main__":
    key = jax.random.PRNGKey(0)

    n_nodes = 1024     # 4 dst tiles (tile_m=256) x 2 K tiles (tile_k=512)
    in_feats = 32
    n_hidden = 32
    n_classes = 16
    n_layers = 2

    key, kx, kp, ka1, ka2 = jax.random.split(key, 5)
    x = jax.random.normal(kx, (n_nodes, in_feats), jnp.float32)
    raw_blocks = [make_mean_adjacency(ka1, n_nodes),
                  make_mean_adjacency(ka2, n_nodes)]
    params = init_sage_params(kp, in_feats, n_hidden, n_classes, n_layers)

    # One-time prep, hoisted out of the forward hot path.
    prep = prepare_sage_params(params)
    blocks = [prepare_block(a) for a in raw_blocks]

    out = sage_forward(prep, blocks, x, n_classes=n_classes)
    out = jax.block_until_ready(out)

    # pure-JAX reference mirroring the kernel's bf16 storage / f32 accumulate
    h_ref = _pad_axis(x, 1).astype(jnp.bfloat16)
    for lyr, a in zip(prep["layers"], blocks):
        agg = jnp.dot(a, h_ref,
                      preferred_element_type=jnp.float32).astype(jnp.bfloat16)
        hid = jnp.maximum(
            jnp.dot(h_ref, lyr["w_self"], preferred_element_type=jnp.float32)
            + jnp.dot(agg, lyr["w_neigh"], preferred_element_type=jnp.float32)
            + lyr["bias"], 0.0)
        h_ref = hid.astype(jnp.bfloat16)
    ref = (jnp.dot(h_ref, prep["fc1_w"], preferred_element_type=jnp.float32)
           + prep["fc1_b"])[:, :n_classes]

    assert out.shape == (n_nodes, n_classes)
    max_err = float(jnp.max(jnp.abs(out - ref)))
    assert jnp.allclose(out, ref, atol=2e-2, rtol=2e-2), max_err

    print("KERNEL_OK")
</pallas_src>

<mosaic_0001>
module attributes {stable_mosaic.version = 11 : i64} {
  func.func @sage_layer_kernel(%arg0: i32, %arg1: i32, %arg2: memref<256x512xbf16, #tpu.memory_space<vmem>>, %arg3: memref<512x128xbf16, #tpu.memory_space<vmem>>, %arg4: memref<256x128xbf16, #tpu.memory_space<vmem>>, %arg5: memref<128x128xbf16, #tpu.memory_space<vmem>>, %arg6: memref<128x128xbf16, #tpu.memory_space<vmem>>, %arg7: memref<1x128xf32, #tpu.memory_space<vmem>>, %arg8: memref<256x128xbf16, #tpu.memory_space<vmem>>, %arg9: memref<256x128xf32, #tpu.memory_space<vmem>>) attributes {dimension_semantics = [#tpu.dimension_semantics<parallel>, #tpu.dimension_semantics<arbitrary>], iteration_bounds = array<i64: 4, 2>, scalar_prefetch = 0 : i64, scratch_operands = 1 : i64, tpu.core_type = #tpu.core_type<tc>, window_params = [{transform_indices = @transform_0, window_bounds = array<i64: 256, 512>}, {transform_indices = @transform_1, window_bounds = array<i64: 512, 128>}, {transform_indices = @transform_2, window_bounds = array<i64: 256, 128>}, {pipeline_mode = #tpu.pipeline_mode<synchronous>, transform_indices = @transform_3, window_bounds = array<i64: 128, 128>}, {pipeline_mode = #tpu.pipeline_mode<synchronous>, transform_indices = @transform_4, window_bounds = array<i64: 128, 128>}, {pipeline_mode = #tpu.pipeline_mode<synchronous>, transform_indices = @transform_5, window_bounds = array<i64: 1, 128>}, {transform_indices = @transform_6, window_bounds = array<i64: 256, 128>}]} {
    %c0_i32 = arith.constant 0 : i32
    %0 = arith.cmpi eq, %arg1, %c0_i32 : i32
    %1 = arith.extui %0 : i1 to i32
    %c0_i32_0 = arith.constant 0 : i32
    %2 = arith.cmpi ne, %1, %c0_i32_0 : i32
    scf.if %2 {
      %cst_9 = arith.constant 0.000000e+00 : f32
      %12 = vector.broadcast %cst_9 : f32 to vector<256x128xf32>
      %c0_10 = arith.constant 0 : index
      %c0_11 = arith.constant 0 : index
      %13 = vector.load %arg9[%c0_10, %c0_11] : memref<256x128xf32, #tpu.memory_space<vmem>>, vector<256x128xf32>
      tpu.vector_store %arg9[%c0_10, %c0_11], %12 {strides = array<i32>} : memref<256x128xf32, #tpu.memory_space<vmem>>, vector<256x128xf32>,
    } else {
    }
    %c0 = arith.constant 0 : index
    %c0_1 = arith.constant 0 : index
    %3 = vector.load %arg9[%c0, %c0_1] : memref<256x128xf32, #tpu.memory_space<vmem>>, vector<256x128xf32>
    %c0_2 = arith.constant 0 : index
    %c0_3 = arith.constant 0 : index
    %4 = vector.load %arg2[%c0_2, %c0_3] : memref<256x512xbf16, #tpu.memory_space<vmem>>, vector<256x512xbf16>
    %c0_4 = arith.constant 0 : index
    %c0_5 = arith.constant 0 : index
    %5 = vector.load %arg3[%c0_4, %c0_5] : memref<512x128xbf16, #tpu.memory_space<vmem>>, vector<512x128xbf16>
    %cst = arith.constant dense<0.000000e+00> : vector<256x128xf32>
    %6 = tpu.matmul %4, %5, %cst {dimension_numbers = #tpu.dot_dimension_numbers<[1], [0], [0], [1], [0, 0, 1, 1], [], []>} : vector<256x512xbf16>, vector<512x128xbf16>, vector<256x128xf32> -> vector<256x128xf32>
    %7 = arith.addf %3, %6 : vector<256x128xf32>
    %c0_6 = arith.constant 0 : index
    %c0_7 = arith.constant 0 : index
    %8 = vector.load %arg9[%c0_6, %c0_7] : memref<256x128xf32, #tpu.memory_space<vmem>>, vector<256x128xf32>
    tpu.vector_store %arg9[%c0_6, %c0_7], %7 {strides = array<i32>} : memref<256x128xf32, #tpu.memory_space<vmem>>, vector<256x128xf32>,
    %c1_i32 = arith.constant 1 : i32
    %9 = arith.cmpi eq, %arg1, %c1_i32 : i32
    %10 = arith.extui %9 : i1 to i32
    %c0_i32_8 = arith.constant 0 : i32
    %11 = arith.cmpi ne, %10, %c0_i32_8 : i32
    scf.if %11 {
      %c0_9 = arith.constant 0 : index
      %c0_10 = arith.constant 0 : index
      %12 = vector.load %arg4[%c0_9, %c0_10] : memref<256x128xbf16, #tpu.memory_space<vmem>>, vector<256x128xbf16>
      %c0_11 = arith.constant 0 : index
      %c0_12 = arith.constant 0 : index
      %13 = vector.load %arg5[%c0_11, %c0_12] : memref<128x128xbf16, #tpu.memory_space<vmem>>, vector<128x128xbf16>
      %cst_13 = arith.constant dense<0.000000e+00> : vector<256x128xf32>
      %14 = tpu.matmul %12, %13, %cst_13 {dimension_numbers = #tpu.dot_dimension_numbers<[1], [0], [0], [1], [0, 0, 1, 1], [], []>} : vector<256x128xbf16>, vector<128x128xbf16>, vector<256x128xf32> -> vector<256x128xf32>
      %c0_14 = arith.constant 0 : index
      %c0_15 = arith.constant 0 : index
      %15 = vector.load %arg9[%c0_14, %c0_15] : memref<256x128xf32, #tpu.memory_space<vmem>>, vector<256x128xf32>
      %16 = arith.truncf %15 : vector<256x128xf32> to vector<256x128xbf16>
      %c0_16 = arith.constant 0 : index
      %c0_17 = arith.constant 0 : index
      %17 = vector.load %arg6[%c0_16, %c0_17] : memref<128x128xbf16, #tpu.memory_space<vmem>>, vector<128x128xbf16>
      %cst_18 = arith.constant dense<0.000000e+00> : vector<256x128xf32>
      %18 = tpu.matmul %16, %17, %cst_18 {dimension_numbers = #tpu.dot_dimension_numbers<[1], [0], [0], [1], [0, 0, 1, 1], [], []>} : vector<256x128xbf16>, vector<128x128xbf16>, vector<256x128xf32> -> vector<256x128xf32>
      %19 = arith.addf %14, %18 : vector<256x128xf32>
      %c0_19 = arith.constant 0 : index
      %c0_20 = arith.constant 0 : index
      %20 = vector.load %arg7[%c0_19, %c0_20] : memref<1x128xf32, #tpu.memory_space<vmem>>, vector<1x128xf32>
      %21 = vector.broadcast %20 : vector<1x128xf32> to vector<256x128xf32>
      %22 = arith.addf %19, %21 : vector<256x128xf32>
      %cst_21 = arith.constant 0.000000e+00 : f32
      %23 = vector.broadcast %cst_21 : f32 to vector<256x128xf32>
      %24 = arith.maximumf %22, %23 : vector<256x128xf32>
      %25 = arith.truncf %24 : vector<256x128xf32> to vector<256x128xbf16>
      %c0_22 = arith.constant 0 : index
      %c0_23 = arith.constant 0 : index
      %26 = vector.load %arg8[%c0_22, %c0_23] : memref<256x128xbf16, #tpu.memory_space<vmem>>, vector<256x128xbf16>
      tpu.vector_store %arg8[%c0_22, %c0_23], %25 {strides = array<i32>} : memref<256x128xbf16, #tpu.memory_space<vmem>>, vector<256x128xbf16>,
    } else {
    }
    return
  }
  func.func @transform_0(%arg0: i32, %arg1: i32) -> (i32, i32) {
    %c0_i32 = arith.constant 0 : i32
    return %arg0, %arg1 : i32, i32
  }
  func.func @transform_1(%arg0: i32, %arg1: i32) -> (i32, i32) {
    %c0_i32 = arith.constant 0 : i32
    %c0_i32_0 = arith.constant 0 : i32
    return %arg1, %c0_i32 : i32, i32
  }
  func.func @transform_2(%arg0: i32, %arg1: i32) -> (i32, i32) {
    %c0_i32 = arith.constant 0 : i32
    %c0_i32_0 = arith.constant 0 : i32
    return %arg0, %c0_i32 : i32, i32
  }
  func.func @transform_3(%arg0: i32, %arg1: i32) -> (i32, i32) {
    %c0_i32 = arith.constant 0 : i32
    %c0_i32_0 = arith.constant 0 : i32
    %c0_i32_1 = arith.constant 0 : i32
    return %c0_i32, %c0_i32_0 : i32, i32
  }
  func.func @transform_4(%arg0: i32, %arg1: i32) -> (i32, i32) {
    %c0_i32 = arith.constant 0 : i32
    %c0_i32_0 = arith.constant 0 : i32
    %c0_i32_1 = arith.constant 0 : i32
    return %c0_i32, %c0_i32_0 : i32, i32
  }
  func.func @transform_5(%arg0: i32, %arg1: i32) -> (i32, i32) {
    %c0_i32 = arith.constant 0 : i32
    %c0_i32_0 = arith.constant 0 : i32
    %c0_i32_1 = arith.constant 0 : i32
    return %c0_i32, %c0_i32_0 : i32, i32
  }
  func.func @transform_6(%arg0: i32, %arg1: i32) -> (i32, i32) {
    %c0_i32 = arith.constant 0 : i32
    %c0_i32_0 = arith.constant 0 : i32
    return %arg0, %c0_i32 : i32, i32
  }
}

module attributes {stable_mosaic.version = 11 : i64} {
  func.func @sage_layer_fc1_kernel(%arg0: i32, %arg1: i32, %arg2: memref<256x512xbf16, #tpu.memory_space<vmem>>, %arg3: memref<512x128xbf16, #tpu.memory_space<vmem>>, %arg4: memref<256x128xbf16, #tpu.memory_space<vmem>>, %arg5: memref<128x128xbf16, #tpu.memory_space<vmem>>, %arg6: memref<128x128xbf16, #tpu.memory_space<vmem>>, %arg7: memref<1x128xf32, #tpu.memory_space<vmem>>, %arg8: memref<128x128xbf16, #tpu.memory_space<vmem>>, %arg9: memref<1x128xf32, #tpu.memory_space<vmem>>, %arg10: memref<256x128xf32, #tpu.memory_space<vmem>>, %arg11: memref<256x128xf32, #tpu.memory_space<vmem>>) attributes {dimension_semantics = [#tpu.dimension_semantics<parallel>, #tpu.dimension_semantics<arbitrary>], iteration_bounds = array<i64: 4, 2>, scalar_prefetch = 0 : i64, scratch_operands = 1 : i64, tpu.core_type = #tpu.core_type<tc>, window_params = [{transform_indices = @transform_0, window_bounds = array<i64: 256, 512>}, {transform_indices = @transform_1, window_bounds = array<i64: 512, 128>}, {transform_indices = @transform_2, window_bounds = array<i64: 256, 128>}, {pipeline_mode = #tpu.pipeline_mode<synchronous>, transform_indices = @transform_3, window_bounds = array<i64: 128, 128>}, {pipeline_mode = #tpu.pipeline_mode<synchronous>, transform_indices = @transform_4, window_bounds = array<i64: 128, 128>}, {pipeline_mode = #tpu.pipeline_mode<synchronous>, transform_indices = @transform_5, window_bounds = array<i64: 1, 128>}, {pipeline_mode = #tpu.pipeline_mode<synchronous>, transform_indices = @transform_6, window_bounds = array<i64: 128, 128>}, {pipeline_mode = #tpu.pipeline_mode<synchronous>, transform_indices = @transform_7, window_bounds = array<i64: 1, 128>}, {transform_indices = @transform_8, window_bounds = array<i64: 256, 128>}]} {
    %c0_i32 = arith.constant 0 : i32
    %0 = arith.cmpi eq, %arg1, %c0_i32 : i32
    %1 = arith.extui %0 : i1 to i32
    %c0_i32_0 = arith.constant 0 : i32
    %2 = arith.cmpi ne, %1, %c0_i32_0 : i32
    scf.if %2 {
      %cst_9 = arith.constant 0.000000e+00 : f32
      %12 = vector.broadcast %cst_9 : f32 to vector<256x128xf32>
      %c0_10 = arith.constant 0 : index
      %c0_11 = arith.constant 0 : index
      %13 = vector.load %arg11[%c0_10, %c0_11] : memref<256x128xf32, #tpu.memory_space<vmem>>, vector<256x128xf32>
      tpu.vector_store %arg11[%c0_10, %c0_11], %12 {strides = array<i32>} : memref<256x128xf32, #tpu.memory_space<vmem>>, vector<256x128xf32>,
    } else {
    }
    %c0 = arith.constant 0 : index
    %c0_1 = arith.constant 0 : index
    %3 = vector.load %arg11[%c0, %c0_1] : memref<256x128xf32, #tpu.memory_space<vmem>>, vector<256x128xf32>
    %c0_2 = arith.constant 0 : index
    %c0_3 = arith.constant 0 : index
    %4 = vector.load %arg2[%c0_2, %c0_3] : memref<256x512xbf16, #tpu.memory_space<vmem>>, vector<256x512xbf16>
    %c0_4 = arith.constant 0 : index
    %c0_5 = arith.constant 0 : index
    %5 = vector.load %arg3[%c0_4, %c0_5] : memref<512x128xbf16, #tpu.memory_space<vmem>>, vector<512x128xbf16>
    %cst = arith.constant dense<0.000000e+00> : vector<256x128xf32>
    %6 = tpu.matmul %4, %5, %cst {dimension_numbers = #tpu.dot_dimension_numbers<[1], [0], [0], [1], [0, 0, 1, 1], [], []>} : vector<256x512xbf16>, vector<512x128xbf16>, vector<256x128xf32> -> vector<256x128xf32>
    %7 = arith.addf %3, %6 : vector<256x128xf32>
    %c0_6 = arith.constant 0 : index
    %c0_7 = arith.constant 0 : index
    %8 = vector.load %arg11[%c0_6, %c0_7] : memref<256x128xf32, #tpu.memory_space<vmem>>, vector<256x128xf32>
    tpu.vector_store %arg11[%c0_6, %c0_7], %7 {strides = array<i32>} : memref<256x128xf32, #tpu.memory_space<vmem>>, vector<256x128xf32>,
    %c1_i32 = arith.constant 1 : i32
    %9 = arith.cmpi eq, %arg1, %c1_i32 : i32
    %10 = arith.extui %9 : i1 to i32
    %c0_i32_8 = arith.constant 0 : i32
    %11 = arith.cmpi ne, %10, %c0_i32_8 : i32
    scf.if %11 {
      %c0_9 = arith.constant 0 : index
      %c0_10 = arith.constant 0 : index
      %12 = vector.load %arg4[%c0_9, %c0_10] : memref<256x128xbf16, #tpu.memory_space<vmem>>, vector<256x128xbf16>
      %c0_11 = arith.constant 0 : index
      %c0_12 = arith.constant 0 : index
      %13 = vector.load %arg5[%c0_11, %c0_12] : memref<128x128xbf16, #tpu.memory_space<vmem>>, vector<128x128xbf16>
      %cst_13 = arith.constant dense<0.000000e+00> : vector<256x128xf32>
      %14 = tpu.matmul %12, %13, %cst_13 {dimension_numbers = #tpu.dot_dimension_numbers<[1], [0], [0], [1], [0, 0, 1, 1], [], []>} : vector<256x128xbf16>, vector<128x128xbf16>, vector<256x128xf32> -> vector<256x128xf32>
      %c0_14 = arith.constant 0 : index
      %c0_15 = arith.constant 0 : index
      %15 = vector.load %arg11[%c0_14, %c0_15] : memref<256x128xf32, #tpu.memory_space<vmem>>, vector<256x128xf32>
      %16 = arith.truncf %15 : vector<256x128xf32> to vector<256x128xbf16>
      %c0_16 = arith.constant 0 : index
      %c0_17 = arith.constant 0 : index
      %17 = vector.load %arg6[%c0_16, %c0_17] : memref<128x128xbf16, #tpu.memory_space<vmem>>, vector<128x128xbf16>
      %cst_18 = arith.constant dense<0.000000e+00> : vector<256x128xf32>
      %18 = tpu.matmul %16, %17, %cst_18 {dimension_numbers = #tpu.dot_dimension_numbers<[1], [0], [0], [1], [0, 0, 1, 1], [], []>} : vector<256x128xbf16>, vector<128x128xbf16>, vector<256x128xf32> -> vector<256x128xf32>
      %19 = arith.addf %14, %18 : vector<256x128xf32>
      %c0_19 = arith.constant 0 : index
      %c0_20 = arith.constant 0 : index
      %20 = vector.load %arg7[%c0_19, %c0_20] : memref<1x128xf32, #tpu.memory_space<vmem>>, vector<1x128xf32>
      %21 = vector.broadcast %20 : vector<1x128xf32> to vector<256x128xf32>
      %22 = arith.addf %19, %21 : vector<256x128xf32>
      %cst_21 = arith.constant 0.000000e+00 : f32
      %23 = vector.broadcast %cst_21 : f32 to vector<256x128xf32>
      %24 = arith.maximumf %22, %23 : vector<256x128xf32>
      %25 = arith.truncf %24 : vector<256x128xf32> to vector<256x128xbf16>
      %c0_22 = arith.constant 0 : index
      %c0_23 = arith.constant 0 : index
      %26 = vector.load %arg8[%c0_22, %c0_23] : memref<128x128xbf16, #tpu.memory_space<vmem>>, vector<128x128xbf16>
      %cst_24 = arith.constant dense<0.000000e+00> : vector<256x128xf32>
      %27 = tpu.matmul %25, %26, %cst_24 {dimension_numbers = #tpu.dot_dimension_numbers<[1], [0], [0], [1], [0, 0, 1, 1], [], []>} : vector<256x128xbf16>, vector<128x128xbf16>, vector<256x128xf32> -> vector<256x128xf32>
      %c0_25 = arith.constant 0 : index
      %c0_26 = arith.constant 0 : index
      %28 = vector.load %arg9[%c0_25, %c0_26] : memref<1x128xf32, #tpu.memory_space<vmem>>, vector<1x128xf32>
      %29 = vector.broadcast %28 : vector<1x128xf32> to vector<256x128xf32>
      %30 = arith.addf %27, %29 : vector<256x128xf32>
      %c0_27 = arith.constant 0 : index
      %c0_28 = arith.constant 0 : index
      %31 = vector.load %arg10[%c0_27, %c0_28] : memref<256x128xf32, #tpu.memory_space<vmem>>, vector<256x128xf32>
      tpu.vector_store %arg10[%c0_27, %c0_28], %30 {strides = array<i32>} : memref<256x128xf32, #tpu.memory_space<vmem>>, vector<256x128xf32>,
    } else {
    }
    return
  }
  func.func @transform_0(%arg0: i32, %arg1: i32) -> (i32, i32) {
    %c0_i32 = arith.constant 0 : i32
    return %arg0, %arg1 : i32, i32
  }
  func.func @transform_1(%arg0: i32, %arg1: i32) -> (i32, i32) {
    %c0_i32 = arith.constant 0 : i32
    %c0_i32_0 = arith.constant 0 : i32
    return %arg1, %c0_i32 : i32, i32
  }
  func.func @transform_2(%arg0: i32, %arg1: i32) -> (i32, i32) {
    %c0_i32 = arith.constant 0 : i32
    %c0_i32_0 = arith.constant 0 : i32
    return %arg0, %c0_i32 : i32, i32
  }
  func.func @transform_3(%arg0: i32, %arg1: i32) -> (i32, i32) {
    %c0_i32 = arith.constant 0 : i32
    %c0_i32_0 = arith.constant 0 : i32
    %c0_i32_1 = arith.constant 0 : i32
    return %c0_i32, %c0_i32_0 : i32, i32
  }
  func.func @transform_4(%arg0: i32, %arg1: i32) -> (i32, i32) {
    %c0_i32 = arith.constant 0 : i32
    %c0_i32_0 = arith.constant 0 : i32
    %c0_i32_1 = arith.constant 0 : i32
    return %c0_i32, %c0_i32_0 : i32, i32
  }
  func.func @transform_5(%arg0: i32, %arg1: i32) -> (i32, i32) {
    %c0_i32 = arith.constant 0 : i32
    %c0_i32_0 = arith.constant 0 : i32
    %c0_i32_1 = arith.constant 0 : i32
    return %c0_i32, %c0_i32_0 : i32, i32
  }
  func.func @transform_6(%arg0: i32, %arg1: i32) -> (i32, i32) {
    %c0_i32 = arith.constant 0 : i32
    %c0_i32_0 = arith.constant 0 : i32
    %c0_i32_1 = arith.constant 0 : i32
    return %c0_i32, %c0_i32_0 : i32, i32
  }
  func.func @transform_7(%arg0: i32, %arg1: i32) -> (i32, i32) {
    %c0_i32 = arith.constant 0 : i32
    %c0_i32_0 = arith.constant 0 : i32
    %c0_i32_1 = arith.constant 0 : i32
    return %c0_i32, %c0_i32_0 : i32, i32
  }
  func.func @transform_8(%arg0: i32, %arg1: i32) -> (i32, i32) {
    %c0_i32 = arith.constant 0 : i32
    %c0_i32_0 = arith.constant 0 : i32
    return %arg0, %c0_i32 : i32, i32
  }
}

</mosaic_0001>

<bundles_post_ra>
// kernel: sage_forward.2
= control target key start
LH: loop header
LB: loop body
LE: loop exit
PB: predicated region body
PF: predicated region fallthrough
CT: control target
= control target key end

     0   :  { %s4111_s0 = inlined_call_operand.hbm [shape: bf16[1024,1024], index: 0, kind: input, shape index: {}]   ;;  %s4112_s1 = inlined_call_operand.vmem [shape: bf16[1024,128], index: 1, kind: input, shape index: {}, may-alias: {1,2}]   ;;  %s4113_s2 = inlined_call_operand.vmem [shape: bf16[1024,128], index: 2, kind: input, shape index: {}, may-alias: {1,2}]   ;;  %s4114_s3 = inlined_call_operand.hbm [shape: bf16[128,128], index: 3, kind: input, shape index: {}]   ;;  %s4115_s4 = inlined_call_operand.hbm [shape: bf16[128,128], index: 4, kind: input, shape index: {}]   ;;  %s4116_s5 = inlined_call_operand.hbm [shape: f32[1,128], index: 5, kind: input, shape index: {}]   ;;  %s4117_s6 = inlined_call_operand.vmem [shape: bf16[1024,128], index: 6, kind: output, shape index: {}]  }
   0x1   :  { %4124 = sst [smem:[#allocation14_spill]] %s4114_s3 }
   0x2   :  { %4125 = sst [smem:[#allocation15_spill]] %s4115_s4 }
   0x3   :  { %4126 = sst [smem:[#allocation16_spill]] %s4117_s6 }
   0x4   :  { %11 = vsyncpa [#allocation4], 0 }
   0x5   :  { %13 = vsyncpa [#allocation4 + $0x1], 0 }
   0x6   :  { %14 = vsyncpa [#allocation6], 0 }
   0x7   :  { %15 = vsyncpa [#allocation9], 0  ;;  %s3688_s21 = smov 0   ;;  %s3690_s22 = smov 0  }
   0x8   :  { %s3692_s23 = smov 0   ;;  %s3694_s24 = smov 0  }
   0x9   :  { %s3696_s25 = smov 0   ;;  %s3698_s26 = smov 0  }
   0xa   :  { %s3700_s27 = smov 0   ;;  %s3702_s28 = smov 0  }
   0xb LB: > { %4127 = sst [smem:[#allocation13_spill]] %s3641_s28  ;;  %s2469_s29 = sadd.s32 4294967295, %s3641_s28   ;;  %s3641_s28 = sphi %s3702_s28, %s21_s28   ;;  %s3637_s27 = sphi %s3700_s27, %s4150_s27   ;;  %s3633_s26 = sphi %s3698_s26, %s4149_s26   ;;  %s3629_s25 = sphi %s3696_s25, %s4148_s25   ;;  %s3625_s24 = sphi %s3694_s24, %s4147_s24   ;;  %s3621_s23 = sphi %s3692_s23, %s4146_s23   ;;  %s3617_s22 = sphi %s3690_s22, %s4145_s22   ;;  %s3613_s21 = sphi %s3688_s21, %s4144_s21  }
   0xc   : > { %p49_p0 = scmp.ne.s32.totalorder %s3621_s23, %s3617_s22  ;;  %p50_p1 = scmp.eq.s32.totalorder %s3641_s28, 0 }
   0xd   : > { %p55_p2 = scmp.ne.s32.totalorder %s3617_s22, %s3613_s21  ;;  %p3732_p3 = scmp.eq.s32.totalorder %s2469_s29, 0 }
   0xe   : > { %p51_p4 = por %p50_p1, %p49_p0  ;;  %p2471_p5 = scmp.ge.s32.totalorder %s3641_s28, 1 }
   0xf   : > { %s4128_s7 = scalar_select %p3732_p3, 1, 0 }
  0x10   : > { %p3739_p6 = por %p3732_p3, %p55_p2  ;;  %p207_p7 = scmp.lt.s32.totalorder %s3641_s28, 9 }
  0x11   : > { %s3643_s10 = smov [#allocation5]   ;;  %p3216_p10 = scmp.lt.s32.totalorder %s3641_s28, 8 }
  0x12   : > { %s4129_s8 = scalar_select %p3739_p6, 1, 0 }
  0x13   : > { %p3744_p8 = pnand %p2471_p5, %p207_p7  ;;  %s219_s11 = sshll.u32 %s3643_s10, 4  ;;  %s3748_s11 = int_to_ptr.vmem [resolvable:$true] %s219_s11 }
  0x14   : > { %p3759_p12 = pnand %p3216_p10, %p51_p4  ;;  %s3644_s14 = smov [#allocation7]  }
  0x15   : > { %s4130_s9 = scalar_select %p3744_p8, 1, 0 }
  0x16   : > { %p3199_p9 = pneg %p3744_p8  ;;  %s232_s15 = sshll.u32 %s3644_s14, 4  ;;  %s3763_s15 = int_to_ptr.vmem [resolvable:$true] %s232_s15 }
  0x17   : > { %s4132_s13 = scalar_select %p3759_p12, 1, 0 }
  0x18   : > { %p3755_p11 = pnand %p3199_p9, %p3732_p3  ;;  %s4133_s3 = sld [smem:[#allocation14_spill]] }
  0x1a   : > { %p3773_p0 = pneg %p3755_p11 }
  0x1e   : > { %s3453_s18 = scalar_lea.hbm %s4133_s3, 1024 }
  0x1f   : > { %p3454_p13 = scmp.ne.s32.totalorder %s4133_s3, %s3453_s18  ;;  %p3460_p4 = scmp.lt.u32.totalorder %s3453_s18, %s4133_s3 }
  0x21   : > { %p3456_p1 = pnand %p3773_p0, %p3454_p13 }
  0x23   : > { %p3457_p2 = pneg %p3456_p1 }
  0x25   : > { %p3462_p5 = pnand %p3460_p4, %p3457_p2 }
  0x27   : > { %3465 = shalt.err (!%p3462_p5)
}
  0x28   : > { %s3466_s14 = scalar_lea.vmem %s3748_s11, 1024  ;;  %p3474_p3 = scmp.lt.s32.totalorder %s3748_s11, %s3748_s11 }
  0x29   : > { %p3467_p7 = scmp.ne.s32.totalorder %s3748_s11, %s3466_s14  ;;  %p3475_p6 = scmp.lt.s32.totalorder %s3466_s14, %s3466_s14 }
  0x2b   : > { %p3469_p9 = pnand %p3467_p7, %p3773_p0  ;;  %p3476_p13 = por %p3475_p6, %p3474_p3 }
  0x2d   : > { %p3470_p10 = pneg %p3469_p9 }
  0x2f   : > { %p3477_p1 = pnand %p3476_p13, %p3470_p10 }
  0x31   : > { %3480 = shalt.err (!%p3477_p1)
}
  0x32   : > { %s3645_s16 = smov 64   ;;  %s3646_s17 = smov 4  }
  0x33   : > { %3202 = dma.hbm_to_vmem [thread:$0]  (!%p3755_p11), %s4133_s3, 1024, %s3748_s11, [#allocation6], %s3645_s16, %s3645_s16, %s3646_s17  }
  0x34   : > { %s4135_s4 = sld [smem:[#allocation15_spill]] }
  0x3a   : > { %s3481_s10 = scalar_lea.hbm %s4135_s4, 1024 }
  0x3b   : > { %p3482_p3 = scmp.ne.s32.totalorder %s4135_s4, %s3481_s10  ;;  %p3488_p4 = scmp.lt.u32.totalorder %s3481_s10, %s4135_s4 }
  0x3d   : > { %p3484_p6 = pnand %p3482_p3, %p3773_p0 }
  0x3f   : > { %p3485_p2 = pneg %p3484_p6 }
  0x41   : > { %p3490_p5 = pnand %p3488_p4, %p3485_p2 }
  0x43   : > { %3493 = shalt.err (!%p3490_p5)
}
  0x44   : > { %s3494_s11 = scalar_lea.vmem %s3763_s15, 1024  ;;  %p3502_p13 = scmp.lt.s32.totalorder %s3763_s15, %s3763_s15 }
  0x45   : > { %p3495_p7 = scmp.ne.s32.totalorder %s3763_s15, %s3494_s11  ;;  %p3503_p1 = scmp.lt.s32.totalorder %s3494_s11, %s3494_s11 }
  0x47   : > { %p3497_p9 = pnand %p3495_p7, %p3773_p0  ;;  %p3504_p3 = por %p3503_p1, %p3502_p13 }
  0x49   : > { %p3498_p10 = pneg %p3497_p9 }
  0x4b   : > { %p3505_p6 = pnand %p3504_p3, %p3498_p10 }
  0x4d   : > { %3508 = shalt.err (!%p3505_p6)
}
  0x4e   : > { %3205 = dma.hbm_to_vmem [thread:$0]  (!%p3755_p11), %s4135_s4, 1024, %s3763_s15, [#allocation6], %s3645_s16, %s3645_s16, %s3646_s17  }
  0x4f   : > { %s3647_s30 = smov [#allocation8]   ;;  %s3509_s29 = scalar_lea.hbm %s4116_s5, 16 }
  0x50   : > { %s246_s18 = sshll.u32 %s3647_s30, 4  ;;  %p3510_p2 = scmp.ne.s32.totalorder %s4116_s5, %s3509_s29  ;;  %s247_s18 = int_to_ptr.vmem [resolvable:$true] %s246_s18 }
  0x51   : > { %p3516_p7 = scmp.lt.u32.totalorder %s3509_s29, %s4116_s5 }
  0x52   : > { %p3512_p4 = pnand %p3510_p2, %p3773_p0 }
  0x54   : > { %p3513_p5 = pneg %p3512_p4 }
  0x56   : > { %p3518_p9 = pnand %p3516_p7, %p3513_p5 }
  0x58   : > { %3521 = shalt.err (!%p3518_p9)
}
  0x59   : > { %s3522_s15 = scalar_lea.vmem %s247_s18, 16  ;;  %s3529_s16 = scalar_lea.vmem %s247_s18, 32 }
  0x5a   : > { %p3523_p10 = scmp.ne.s32.totalorder %s247_s18, %s3522_s15  ;;  %p3530_p3 = scmp.lt.s32.totalorder %s247_s18, %s247_s18 }
  0x5b   : > { %p3531_p6 = scmp.lt.s32.totalorder %s3529_s16, %s3522_s15 }
  0x5c   : > { %p3525_p13 = pnand %p3523_p10, %p3773_p0 }
  0x5d   : > { %p3532_p8 = por %p3531_p6, %p3530_p3 }
  0x5e   : > { %p3526_p1 = pneg %p3525_p13 }
  0x60   : > { %p3533_p12 = pnand %p3532_p8, %p3526_p1 }
  0x62   : > { %3536 = shalt.err (!%p3533_p12)
}
  0x63   : > { %3208 = dma.hbm_to_vmem [thread:$0]  (!%p3755_p11), %s4116_s5, 16, %s247_s18, [#allocation9]  }
  0x64   : > { %s30_s3 = sadd.s32 1, %s3633_s26  ;;  %s33_s21 = sadd.s32 1, %s3637_s27 }
  0x65   : > { %p31_p0 = scmp.ge.s32.totalorder %s30_s3, 2  ;;  %s257_s28 = sand.u32 1, %s3621_s23  }
  0x66   : > { %s2476_s30 = sshll.u32 %s257_s28, 9  ;;  %s2478_s19 = sshll.u32 %s3633_s26, 2 }
  0x67   : > { %s4152_s3 = smov (%p31_p0, %s30_s3), 0  ;;  %s4154_s21 = smov (!%p31_p0, %s33_s21), %s3637_s27 }
  0x68   : > { %s38_s12 = ssub.s32 %s3633_s26, %s4152_s3  ;;  %p35_p8 = scmp.ge.s32.totalorder %s4154_s21, 4 }
  0x69   : > { %s2657_s20 = sshll.u32 %s3637_s27, 8  ;;  %s261_s29 = scalar_lea.vmem [#allocation3], %s2476_s30 }
  0x6a   : > { %s271_s18 = sshll.u32 %s261_s29, 4  ;;  %s4156_s21 = smov (%p35_p8, %s4154_s21), 0  ;;  %s3847_s18 = int_to_ptr.vmem [resolvable:$true] %s271_s18 }
  0x6b   : > { %s268_s10 = sadd.s32 %s2657_s20, %s2478_s19  ;;  %s37_s14 = ssub.s32 %s3637_s27, %s4156_s21 }
  0x6c   : > { %s2480_s11 = sshll.u32 %s268_s10, 6  ;;  %s39_s15 = sor.u32 %s38_s12, %s37_s14 }
  0x6d   : > { %s3854_s6 = scalar_lea.hbm %s4111_s0, %s2480_s11  ;;  %p40_p11 = scmp.eq.s32.totalorder %s39_s15, 0 }
  0x6e   : > { %s4136_s30 = sadd.s32 1, %s3621_s23  ;;  %s3861_s4 = scalar_lea.sflag [#allocation4], %s257_s28 }
  0x6f   : > { %s3859_s29 = scalar_select %p40_p11, %s3621_s23, %s4136_s30  }
  0x70   : > { %s3537_s19 = scalar_lea.hbm %s3854_s6, 8192  ;;  %p4137_p2 = scmp.ne.s32.totalorder %s4132_s13, 0 }
  0x71   : > { %p3538_p12 = scmp.ne.s32.totalorder %s3854_s6, %s3537_s19  ;;  %s3542_s10 = scalar_lea.hbm %s4111_s0, 65536 }
  0x72   : > { %p3539_p4 = pneg %p4137_p2  ;;  %p3543_p9 = scmp.lt.u32.totalorder %s3854_s6, %s4111_s0 }
  0x73   : > { %p3544_p10 = scmp.lt.u32.totalorder %s3542_s10, %s3537_s19  ;;  %p3546_p1 = scmp.lt.u32.totalorder %s3537_s19, %s3854_s6 }
  0x74   : > { %p3540_p5 = pnand %p3539_p4, %p3538_p12 }
  0x75   : > { %p3545_p13 = por %p3544_p10, %p3543_p9 }
  0x76   : > { %p3541_p7 = pneg %p3540_p5 }
  0x77   : > { %p3547_p3 = por %p3546_p1, %p3545_p13 }
  0x79   : > { %p3548_p6 = pnand %p3547_p3, %p3541_p7 }
  0x7b   : > { %3551 = shalt.err (!%p3548_p6)
}
  0x7c   : > { %s3552_s28 = scalar_lea.vmem %s3847_s18, 8192  ;;  %s3648_s15 = smov [#allocation3]  }
  0x7d   : > { %p3553_p0 = scmp.ne.s32.totalorder %s3847_s18, %s3552_s28  ;;  %s3557_s16 = sshll.u32 %s3648_s15, 4  ;;  %s3558_s16 = int_to_ptr.vmem [resolvable:$false] %s3557_s16 }
  0x7e   : > { %s3559_s17 = scalar_lea.vmem %s3558_s16, 16384  ;;  %p3560_p12 = scmp.lt.s32.totalorder %s3847_s18, %s3558_s16 }
  0x7f   : > { %p3555_p8 = pnand %p3553_p0, %p3539_p4  ;;  %p3561_p5 = scmp.lt.s32.totalorder %s3559_s17, %s3552_s28 }
  0x81   : > { %p3556_p11 = pneg %p3555_p8  ;;  %p3562_p9 = por %p3561_p5, %p3560_p12 }
  0x83   : > { %p3563_p10 = pnand %p3562_p9, %p3556_p11 }
  0x85   : > { %3566 = shalt.err (!%p3563_p10)
}
  0x86   : > { %s3649_s30 = smov 512   ;;  %s3650_s19 = smov 256  }
  0x87   : > { %s3651_s12 = smov 16   ;;  %p4138_p4 = scmp.ne.s32.totalorder %s4130_s9, 0 }
  0x88   : > { %3212 = dma.hbm_to_vmem [thread:$0]  (!%p4137_p2), %s3854_s6, 8192, %s3847_s18, %s3861_s4, %s3649_s30, %s3650_s19, %s3651_s12  }
  0x89   : > { %301 = sbr.rel (%p4138_p4) target bundleno = 832 (0x340), region = 44  ;;  %s303_s20 = sand.u32 (!%p4138_p4), 1, %s3617_s22  }
  0x8a   : > { %s2482_s10 = sshll.u32 (!%p4138_p4), %s303_s20, 9  ;;  %s304_s14 = scalar_lea.sflag (!%p4138_p4), [#allocation4], %s303_s20 }
  0x8b   : > { %s3892_s11 = scalar_lea.vmem (!%p4138_p4), [#allocation3], %s2482_s10  ;;  %p4139_p7 = scmp.ne.s32.totalorder (!%p4138_p4), %s4129_s8, 0 }
  0x90   : > { %3600 = dma.done.wait (%p4139_p7), %s304_s14, 8192  }
  0x91   : > { %3602 = vsyncadd (%p4139_p7), %s304_s14, 4294959104  ;;  %p4140_p13 = scmp.ne.s32.totalorder %s4128_s7, 0 }
  0x93   : > { %3604 = dma.done.wait (%p4140_p13), [#allocation6], 2048  }
  0x94   : > { %3606 = vsyncadd (%p4140_p13), [#allocation6], 4294965248 }
  0x95   : > { %3608 = dma.done.wait (%p4140_p13), [#allocation9], 16  }
  0x96   : > { %3610 = vsyncadd (%p4140_p13), [#allocation9], 4294967280  ;;  %s2486_s4 = sshll.u32 %s3625_s24, 6  ;;  %s2488_s9 = sshll.u32 %s3629_s25, 5 }
  0x97   : > { %p361_p2 = scmp.lt.s32.totalorder %s2486_s4, 127  ;;  %p367_p1 = scmp.lt.s32.totalorder %s2488_s9, 127 }
  0x98   : > { %s4141_s19 = sld [smem:[#allocation16_spill]]  ;;  %p2492_p3 = scmp.ne.s32.totalorder %s3625_s24, 0 }
  0x99   : > { %s4158_s4 = smov (!%p361_p2, %s2486_s4), 127  ;;  %s4160_s9 = smov (!%p367_p1, %s2488_s9), 127 }
  0x9a   : > { %s2487_s8 = sshll.u32 %s4158_s4, 2  ;;  %s2489_s28 = sshll.u32 %s4160_s9, 2  ;;  %v3652_v0 = vmov (!%p2492_p3), 0.0  }
  0x9b   : > { %s3911_s6 = scalar_lea.vmem %s4112_s1, %s2487_s8  ;;  %s3916_s7 = scalar_lea.vmem %s4113_s2, %s2489_s28  ;;  %383 = vst [vmem:[#allocation2] sm:$0xff] (!%p2492_p3), %v3652_v0  ;;  %384 = vst [vmem:[#allocation2 + $0x8] sm:$0xff] (!%p2492_p3), %v3652_v0 }
  0x9c   : > { %382 = sbr.rel (%p2492_p3) target bundleno = 171 (0xab), region = 64  ;;  %385 = vst [vmem:[#allocation2 + $0x10] sm:$0xff] (!%p2492_p3), %v3652_v0  ;;  %386 = vst [vmem:[#allocation2 + $0x18] sm:$0xff] (!%p2492_p3), %v3652_v0 }
  0x9d   : > { %387 = vst [vmem:[#allocation2 + $0x20] sm:$0xff] (!%p2492_p3), %v3652_v0  ;;  %388 = vst [vmem:[#allocation2 + $0x28] sm:$0xff] (!%p2492_p3), %v3652_v0 }
  0x9e   : > { %s3921_s25 = scalar_lea.vmem %s4141_s19, %s2489_s28  ;;  %389 = vst [vmem:[#allocation2 + $0x30] sm:$0xff] (!%p2492_p3), %v3652_v0  ;;  %390 = vst [vmem:[#allocation2 + $0x38] sm:$0xff] (!%p2492_p3), %v3652_v0 }
  0x9f   : > { %391 = vst [vmem:[#allocation2 + $0x40] sm:$0xff] (!%p2492_p3), %v3652_v0  ;;  %392 = vst [vmem:[#allocation2 + $0x48] sm:$0xff] (!%p2492_p3), %v3652_v0 }
  0xa0   : > { %393 = vst [vmem:[#allocation2 + $0x50] sm:$0xff] (!%p2492_p3), %v3652_v0  ;;  %394 = vst [vmem:[#allocation2 + $0x58] sm:$0xff] (!%p2492_p3), %v3652_v0 }
  0xa1   : > { %395 = vst [vmem:[#allocation2 + $0x60] sm:$0xff] (!%p2492_p3), %v3652_v0  ;;  %396 = vst [vmem:[#allocation2 + $0x68] sm:$0xff] (!%p2492_p3), %v3652_v0 }
  0xa2   : > { %397 = vst [vmem:[#allocation2 + $0x70] sm:$0xff] (!%p2492_p3), %v3652_v0  ;;  %398 = vst [vmem:[#allocation2 + $0x78] sm:$0xff] (!%p2492_p3), %v3652_v0 }
  0xa3   : > { %399 = vst [vmem:[#allocation2 + $0x80] sm:$0xff] %v3652_v0  ;;  %400 = vst [vmem:[#allocation2 + $0x88] sm:$0xff] %v3652_v0 }
  0xa4   : > { %401 = vst [vmem:[#allocation2 + $0x90] sm:$0xff] %v3652_v0  ;;  %402 = vst [vmem:[#allocation2 + $0x98] sm:$0xff] %v3652_v0 }
  0xa5   : > { %403 = vst [vmem:[#allocation2 + $0xa0] sm:$0xff] %v3652_v0  ;;  %404 = vst [vmem:[#allocation2 + $0xa8] sm:$0xff] %v3652_v0 }
  0xa6   : > { %405 = vst [vmem:[#allocation2 + $0xb0] sm:$0xff] %v3652_v0  ;;  %406 = vst [vmem:[#allocation2 + $0xb8] sm:$0xff] %v3652_v0 }
  0xa7   : > { %407 = vst [vmem:[#allocation2 + $0xc0] sm:$0xff] %v3652_v0  ;;  %408 = vst [vmem:[#allocation2 + $0xc8] sm:$0xff] %v3652_v0 }
  0xa8   : > { %409 = vst [vmem:[#allocation2 + $0xd0] sm:$0xff] %v3652_v0  ;;  %410 = vst [vmem:[#allocation2 + $0xd8] sm:$0xff] %v3652_v0 }
  0xa9   : > { %411 = vst [vmem:[#allocation2 + $0xe0] sm:$0xff] %v3652_v0  ;;  %412 = vst [vmem:[#allocation2 + $0xe8] sm:$0xff] %v3652_v0 }
  0xaa   : > { %413 = vst [vmem:[#allocation2 + $0xf0] sm:$0xff] %v3652_v0  ;;  %414 = vst [vmem:[#allocation2 + $0xf8] sm:$0xff] %v3652_v0 }
  0xab PF: > { %v3293_v1 = vld [vmem:[%s3911_s6 + $0x40] sm:$0xff]   ;;  %v3297_v5 = vld [vmem:[%s3911_s6 + $0x48] sm:$0xff]   ;;  %v3301_v9 = vld [vmem:[%s3911_s6 + $0x50] sm:$0xff]   ;;  %p2589_p6 = scmp.ne.s32.totalorder %s3625_s24, 1 }
  0xac   : > { %v3294_v2 = vld [vmem:[%s3911_s6 + $0xc0] sm:$0xff]   ;;  %2785 = vmatprep.subr.bf16.mxu0 %v3293_v1  ;;  %v3298_v6 = vld [vmem:[%s3911_s6 + $0xc8] sm:$0xff]   ;;  %v3302_v10 = vld [vmem:[%s3911_s6 + $0xd0] sm:$0xff]  }
  0xad   : > { %v3295_v3 = vld [vmem:[%s3911_s6] sm:$0xff]   ;;  %2897 = vmatprep.subr.bf16.mxu1 %v3294_v2  ;;  %v3299_v7 = vld [vmem:[%s3911_s6 + $0x8] sm:$0xff]   ;;  %v3303_v11 = vld [vmem:[%s3911_s6 + $0x10] sm:$0xff]  }
  0xae   : > { %v3296_v4 = vld [vmem:[%s3911_s6 + $0x80] sm:$0xff]   ;;  %2786 = vmatpush3.bf16.msra.mxu0 %v3295_v3  ;;  %v3300_v8 = vld [vmem:[%s3911_s6 + $0x88] sm:$0xff]   ;;  %v3304_v12 = vld [vmem:[%s3911_s6 + $0x90] sm:$0xff]  }
  0xaf   : > { %2898 = vmatpush3.bf16.msra.mxu1 %v3296_v4  ;;  %2787 = vmatprep.subr.bf16.mxu0 %v3297_v5  ;;  %v3305_v13 = vld [vmem:[%s3911_s6 + $0x58] sm:$0xff]   ;;  %v3309_v17 = vld [vmem:[%s3911_s6 + $0x60] sm:$0xff]   ;;  %v3313_v21 = vld [vmem:[%s3911_s6 + $0x68] sm:$0xff]  }
  0xb0   : > { %2899 = vmatprep.subr.bf16.mxu1 %v3298_v6  ;;  %v3306_v14 = vld [vmem:[%s3911_s6 + $0xd8] sm:$0xff]   ;;  %v3310_v18 = vld [vmem:[%s3911_s6 + $0xe0] sm:$0xff]   ;;  %v3314_v22 = vld [vmem:[%s3911_s6 + $0xe8] sm:$0xff]  }
  0xb1   : > { %v3307_v15 = vld [vmem:[%s3911_s6 + $0x18] sm:$0xff]   ;;  %v3311_v19 = vld [vmem:[%s3911_s6 + $0x20] sm:$0xff]   ;;  %v3315_v23 = vld [vmem:[%s3911_s6 + $0x28] sm:$0xff]  }
  0xb2   : > { %2788 = vmatpush3.bf16.msra.mxu0 %v3299_v7  ;;  %v3308_v16 = vld [vmem:[%s3911_s6 + $0x98] sm:$0xff]   ;;  %v3312_v20 = vld [vmem:[%s3911_s6 + $0xa0] sm:$0xff]   ;;  %v3316_v24 = vld [vmem:[%s3911_s6 + $0xa8] sm:$0xff]  }
  0xb3   : > { %2900 = vmatpush3.bf16.msra.mxu1 %v3300_v8  ;;  %2789 = vmatprep.subr.bf16.mxu0 %v3301_v9  ;;  %v3317_v25 = vld [vmem:[%s3911_s6 + $0x70] sm:$0xff]   ;;  %v3321_v29 = vld [vmem:[%s3911_s6 + $0x78] sm:$0xff]  }
  0xb4   : > { %2901 = vmatprep.subr.bf16.mxu1 %v3302_v10  ;;  %v3318_v26 = vld [vmem:[%s3911_s6 + $0xf0] sm:$0xff]   ;;  %v3322_v30 = vld [vmem:[%s3911_s6 + $0xf8] sm:$0xff]  }
  0xb5   : > { %v3319_v27 = vld [vmem:[%s3911_s6 + $0x30] sm:$0xff]   ;;  %v3323_v31 = vld [vmem:[%s3911_s6 + $0x38] sm:$0xff]  }
  0xb6   : > { %2790 = vmatpush3.bf16.msra.mxu0 %v3303_v11  ;;  %v3320_v28 = vld [vmem:[%s3911_s6 + $0xb0] sm:$0xff]   ;;  %v3324_v32 = vld [vmem:[%s3911_s6 + $0xb8] sm:$0xff]  }
  0xb7   : > { %2902 = vmatpush3.bf16.msra.mxu1 %v3304_v12  ;;  %2791 = vmatprep.subr.bf16.mxu0 %v3305_v13  ;;  %v3325_v33 = vld [vmem:[%s3892_s11] ss:$16 sps:$4 sm:$0xff]   ;;  %v3327_v34 = vld [vmem:[%s3892_s11 + $0x4] ss:$16 sps:$4 sm:$0xff]   ;;  %v3328_v35 = vld [vmem:[%s3892_s11 + $0x8] ss:$16 sps:$4 sm:$0xff]  }
  0xb8   : > { %2903 = vmatprep.subr.bf16.mxu1 %v3306_v14  ;;  %v3330_v36 = vld [vmem:[%s3892_s11 + $0xc] ss:$16 sps:$4 sm:$0xff]   ;;  %1119 = vmatprep.mubr.bf16.mxu0 %v3327_v34  ;;  %v3331_v37 = vld [vmem:[%s3892_s11 + $0x24] ss:$16 sps:$4 sm:$0xff]   ;;  %v3335_v39 = vld [vmem:[%s3892_s11 + $0x20] ss:$16 sps:$4 sm:$0xff]  }
  0xb9   : > { %1280 = vmatprep.mubr.bf16.mxu1 %v3330_v36  ;;  %v3333_v38 = vld [vmem:[%s3892_s11 + $0x2c] ss:$16 sps:$4 sm:$0xff]   ;;  %v3336_v40 = vld [vmem:[%s3892_s11 + $0x28] ss:$16 sps:$4 sm:$0xff]   ;;  %v3337_v41 = vld [vmem:[%s3892_s11 + $0x44] ss:$16 sps:$4 sm:$0xff]  }
  0xba   : > { %2792 = vmatpush3.bf16.msra.mxu0 %v3307_v15  ;;  %v3339_v42 = vld [vmem:[%s3892_s11 + $0x4c] ss:$16 sps:$4 sm:$0xff]   ;;  %v3341_v43 = vld [vmem:[%s3892_s11 + $0x40] ss:$16 sps:$4 sm:$0xff]   ;;  %v3342_v44 = vld [vmem:[%s3892_s11 + $0x48] ss:$16 sps:$4 sm:$0xff]  }
  0xbb   : > { %2904 = vmatpush3.bf16.msra.mxu1 %v3308_v16  ;;  %2793 = vmatprep.subr.bf16.mxu0 %v3309_v17  ;;  %v3343_v45 = vld [vmem:[%s3892_s11 + $0x64] ss:$16 sps:$4 sm:$0xff]   ;;  %v3345_v46 = vld [vmem:[%s3892_s11 + $0x6c] ss:$16 sps:$4 sm:$0xff]   ;;  %v3347_v47 = vld [vmem:[%s3892_s11 + $0x60] ss:$16 sps:$4 sm:$0xff]  }
  0xbc   : > { %2905 = vmatprep.subr.bf16.mxu1 %v3310_v18  ;;  %v3348_v48 = vld [vmem:[%s3892_s11 + $0x68] ss:$16 sps:$4 sm:$0xff]   ;;  %v3349_v49 = vld [vmem:[%s3892_s11 + $0x84] ss:$16 sps:$4 sm:$0xff]   ;;  %v3351_v50 = vld [vmem:[%s3892_s11 + $0x8c] ss:$16 sps:$4 sm:$0xff]  }
  0xbd   : > { %v3353_v51 = vld [vmem:[%s3892_s11 + $0x80] ss:$16 sps:$4 sm:$0xff]   ;;  %v3354_v52 = vld [vmem:[%s3892_s11 + $0x88] ss:$16 sps:$4 sm:$0xff]   ;;  %v3355_v53 = vld [vmem:[%s3892_s11 + $0xa4] ss:$16 sps:$4 sm:$0xff]  }
  0xbe   : > { %2794 = vmatpush3.bf16.msra.mxu0 %v3311_v19  ;;  %v3357_v54 = vld [vmem:[%s3892_s11 + $0xac] ss:$16 sps:$4 sm:$0xff]   ;;  %v3359_v55 = vld [vmem:[%s3892_s11 + $0xa0] ss:$16 sps:$4 sm:$0xff]   ;;  %v3360_v56 = vld [vmem:[%s3892_s11 + $0xa8] ss:$16 sps:$4 sm:$0xff]  }
  0xbf   : > { %2906 = vmatpush3.bf16.msra.mxu1 %v3312_v20  ;;  %2795 = vmatprep.subr.bf16.mxu0 %v3313_v21  ;;  %v3361_v57 = vld [vmem:[%s3892_s11 + $0xc4] ss:$16 sps:$4 sm:$0xff]   ;;  %v3363_v58 = vld [vmem:[%s3892_s11 + $0xcc] ss:$16 sps:$4 sm:$0xff]   ;;  %v3365_v59 = vld [vmem:[%s3892_s11 + $0xc0] ss:$16 sps:$4 sm:$0xff]  }
  0xc0   : > { %2907 = vmatprep.subr.bf16.mxu1 %v3314_v22  ;;  %v3366_v60 = vld [vmem:[%s3892_s11 + $0xc8] ss:$16 sps:$4 sm:$0xff]   ;;  %v3367_v61 = vld [vmem:[%s3892_s11 + $0xe4] ss:$16 sps:$4 sm:$0xff]   ;;  %v3369_v62 = vld [vmem:[%s3892_s11 + $0xec] ss:$16 sps:$4 sm:$0xff]  }
  0xc1   : > { %v3371_v63 = vld [vmem:[%s3892_s11 + $0xe0] ss:$16 sps:$4 sm:$0xff]   ;;  %v3372_v0 = vld [vmem:[%s3892_s11 + $0xe8] ss:$16 sps:$4 sm:$0xff]   ;;  %v3373_v1 = vld [vmem:[%s3892_s11 + $0x104] ss:$16 sps:$4 sm:$0xff]  }
  0xc2   : > { %2796 = vmatpush3.bf16.msra.mxu0 %v3315_v23  ;;  %v3375_v2 = vld [vmem:[%s3892_s11 + $0x10c] ss:$16 sps:$4 sm:$0xff]   ;;  %v3377_v3 = vld [vmem:[%s3892_s11 + $0x100] ss:$16 sps:$4 sm:$0xff]   ;;  %v3378_v4 = vld [vmem:[%s3892_s11 + $0x108] ss:$16 sps:$4 sm:$0xff]  }
  0xc3   : > { %2908 = vmatpush3.bf16.msra.mxu1 %v3316_v24  ;;  %2797 = vmatprep.subr.bf16.mxu0 %v3317_v25  ;;  %v3379_v5 = vld [vmem:[%s3892_s11 + $0x124] ss:$16 sps:$4 sm:$0xff]   ;;  %v3381_v6 = vld [vmem:[%s3892_s11 + $0x12c] ss:$16 sps:$4 sm:$0xff]   ;;  %v3383_v7 = vld [vmem:[%s3892_s11 + $0x120] ss:$16 sps:$4 sm:$0xff]  }
  0xc4   : > { %2909 = vmatprep.subr.bf16.mxu1 %v3318_v26  ;;  %v3384_v8 = vld [vmem:[%s3892_s11 + $0x128] ss:$16 sps:$4 sm:$0xff]   ;;  %v3385_v9 = vld [vmem:[%s3892_s11 + $0x144] ss:$16 sps:$4 sm:$0xff]   ;;  %v3387_v10 = vld [vmem:[%s3892_s11 + $0x14c] ss:$16 sps:$4 sm:$0xff]  }
  0xc5   : > { %v3389_v11 = vld [vmem:[%s3892_s11 + $0x140] ss:$16 sps:$4 sm:$0xff]   ;;  %v3390_v12 = vld [vmem:[%s3892_s11 + $0x148] ss:$16 sps:$4 sm:$0xff]   ;;  %v3391_v13 = vld [vmem:[%s3892_s11 + $0x164] ss:$16 sps:$4 sm:$0xff]  }
  0xc6   : > { %2798 = vmatpush3.bf16.msra.mxu0 %v3319_v27  ;;  %v3393_v14 = vld [vmem:[%s3892_s11 + $0x16c] ss:$16 sps:$4 sm:$0xff]   ;;  %v3395_v15 = vld [vmem:[%s3892_s11 + $0x160] ss:$16 sps:$4 sm:$0xff]   ;;  %v3396_v16 = vld [vmem:[%s3892_s11 + $0x168] ss:$16 sps:$4 sm:$0xff]  }
  0xc7   : > { %2910 = vmatpush3.bf16.msra.mxu1 %v3320_v28  ;;  %2799 = vmatprep.subr.bf16.mxu0 %v3321_v29  ;;  %v3397_v17 = vld [vmem:[%s3892_s11 + $0x184] ss:$16 sps:$4 sm:$0xff]   ;;  %v3399_v18 = vld [vmem:[%s3892_s11 + $0x18c] ss:$16 sps:$4 sm:$0xff]   ;;  %v3401_v19 = vld [vmem:[%s3892_s11 + $0x180] ss:$16 sps:$4 sm:$0xff]  }
  0xc8   : > { %2911 = vmatprep.subr.bf16.mxu1 %v3322_v30  ;;  %v3402_v20 = vld [vmem:[%s3892_s11 + $0x188] ss:$16 sps:$4 sm:$0xff]   ;;  %v3403_v21 = vld [vmem:[%s3892_s11 + $0x1a4] ss:$16 sps:$4 sm:$0xff]   ;;  %v3405_v22 = vld [vmem:[%s3892_s11 + $0x1ac] ss:$16 sps:$4 sm:$0xff]  }
  0xc9   : > { %v3407_v23 = vld [vmem:[%s3892_s11 + $0x1a0] ss:$16 sps:$4 sm:$0xff]   ;;  %v3408_v24 = vld [vmem:[%s3892_s11 + $0x1a8] ss:$16 sps:$4 sm:$0xff]   ;;  %v3409_v25 = vld [vmem:[%s3892_s11 + $0x1c4] ss:$16 sps:$4 sm:$0xff]  }
  0xca   : > { %2800 = vmatpush3.bf16.msra.mxu0 %v3323_v31  ;;  %v3411_v26 = vld [vmem:[%s3892_s11 + $0x1cc] ss:$16 sps:$4 sm:$0xff]   ;;  %v3413_v27 = vld [vmem:[%s3892_s11 + $0x1c0] ss:$16 sps:$4 sm:$0xff]   ;;  %v3414_v28 = vld [vmem:[%s3892_s11 + $0x1c8] ss:$16 sps:$4 sm:$0xff]  }
  0xcb   : > { %2912 = vmatpush3.bf16.msra.mxu1 %v3324_v32  ;;  %v3415_v29 = vld [vmem:[%s3892_s11 + $0x1e4] ss:$16 sps:$4 sm:$0xff]   ;;  %v3417_v30 = vld [vmem:[%s3892_s11 + $0x1ec] ss:$16 sps:$4 sm:$0xff]   ;;  %v3419_v31 = vld [vmem:[%s3892_s11 + $0x1e0] ss:$16 sps:$4 sm:$0xff]  }
  0xcc   : > { %v3420_v32 = vld [vmem:[%s3892_s11 + $0x1e8] ss:$16 sps:$4 sm:$0xff]  }
  0xcd   : > { %1120 = vmatmul.mubr.bf16.vlgmr.msra.gmra.mrb[0].mxu0 %v3325_v33 }
  0xce   : > { %1281 = vmatmul.mubr.bf16.vlgmr.msra.gmra.mrb[0].mxu1 %v3328_v35  ;;  %1127 = vmatprep.mubr.bf16.mxu0 %v3331_v37 }
  0xcf   : > { %1288 = vmatprep.mubr.bf16.mxu1 %v3333_v38 }
  0xd5   : > { %1128 = vmatmul.mubr.bf16.gmra.mrb[4].mxu0 %v3335_v39 }
  0xd6   : > { %1289 = vmatmul.mubr.bf16.gmra.mrb[4].mxu1 %v3336_v40  ;;  %1135 = vmatprep.mubr.bf16.mxu0 %v3337_v41 }
  0xd7   : > { %1296 = vmatprep.mubr.bf16.mxu1 %v3339_v42  ;;  %v415_v42 = vld [vmem:[#allocation2] sm:$0xff] }
  0xdd   : > { %1136 = vmatmul.mubr.bf16.gmra.mrb[8].mxu0 %v3341_v43 }
  0xde   : > { %1297 = vmatmul.mubr.bf16.gmra.mrb[8].mxu1 %v3342_v44  ;;  %1143 = vmatprep.mubr.bf16.mxu0 %v3343_v45 }
  0xdf   : > { %1304 = vmatprep.mubr.bf16.mxu1 %v3345_v46 }
  0xe5   : > { %1144 = vmatmul.mubr.bf16.gmra.mrb[12].mxu0 %v3347_v47  ;;  %v416_v47 = vld [vmem:[#allocation2 + $0x8] sm:$0xff] }
  0xe6   : > { %1305 = vmatmul.mubr.bf16.gmra.mrb[12].mxu1 %v3348_v48  ;;  %1151 = vmatprep.mubr.bf16.mxu0 %v3349_v49 }
  0xe7   : > { %1312 = vmatprep.mubr.bf16.mxu1 %v3351_v50 }
  0xed   : > { %1152 = vmatmul.mubr.bf16.gmra.mrb[16].mxu0 %v3353_v51 }
  0xee   : > { %1313 = vmatmul.mubr.bf16.gmra.mrb[16].mxu1 %v3354_v52  ;;  %1159 = vmatprep.mubr.bf16.mxu0 %v3355_v53 }
  0xef   : > { %1320 = vmatprep.mubr.bf16.mxu1 %v3357_v54 }
  0xf5   : > { %1160 = vmatmul.mubr.bf16.gmra.mrb[20].mxu0 %v3359_v55 }
  0xf6   : > { %1321 = vmatmul.mubr.bf16.gmra.mrb[20].mxu1 %v3360_v56  ;;  %1167 = vmatprep.mubr.bf16.mxu0 %v3361_v57 }
  0xf7   : > { %1328 = vmatprep.mubr.bf16.mxu1 %v3363_v58 }
  0xfd   : > { %1168 = vmatmul.mubr.bf16.gmra.mrb[24].mxu0 %v3365_v59 }
  0xfe   : > { %1329 = vmatmul.mubr.bf16.gmra.mrb[24].mxu1 %v3366_v60  ;;  %1175 = vmatprep.mubr.bf16.mxu0 %v3367_v61  ;;  %v417_v60 = vld [vmem:[#allocation2 + $0x10] sm:$0xff] }
  0xff   : > { %1336 = vmatprep.mubr.bf16.mxu1 %v3369_v62 }
 0x105   : > { %1176 = vmatmul.mubr.bf16.gmra.mrb[28].mxu0 %v3371_v63 }
 0x106   : > { %1337 = vmatmul.mubr.bf16.gmra.mrb[28].mxu1 %v3372_v0  ;;  %1183 = vmatprep.mubr.bf16.mxu0 %v3373_v1  ;;  %v418_v1 = vld [vmem:[#allocation2 + $0x18] sm:$0xff] }
 0x107   : > { %1344 = vmatprep.mubr.bf16.mxu1 %v3375_v2 }
 0x10d   : > { %1184 = vmatmul.mubr.bf16.gmra.mrb[32].mxu0 %v3377_v3 }
 0x10e   : > { %1345 = vmatmul.mubr.bf16.gmra.mrb[32].mxu1 %v3378_v4  ;;  %1191 = vmatprep.mubr.bf16.mxu0 %v3379_v5 }
 0x10f   : > { %1352 = vmatprep.mubr.bf16.mxu1 %v3381_v6 }
 0x115   : > { %1192 = vmatmul.mubr.bf16.gmra.mrb[36].mxu0 %v3383_v7 }
 0x116   : > { %1353 = vmatmul.mubr.bf16.gmra.mrb[36].mxu1 %v3384_v8  ;;  %1199 = vmatprep.mubr.bf16.mxu0 %v3385_v9 }
 0x117   : > { %1360 = vmatprep.mubr.bf16.mxu1 %v3387_v10 }
 0x11d   : > { %1200 = vmatmul.mubr.bf16.gmra.mrb[40].mxu0 %v3389_v11 }
 0x11e   : > { %1361 = vmatmul.mubr.bf16.gmra.mrb[40].mxu1 %v3390_v12  ;;  %1207 = vmatprep.mubr.bf16.mxu0 %v3391_v13 }
 0x11f   : > { %1368 = vmatprep.mubr.bf16.mxu1 %v3393_v14  ;;  %v419_v14 = vld [vmem:[#allocation2 + $0x20] sm:$0xff] }
 0x125   : > { %1208 = vmatmul.mubr.bf16.gmra.mrb[44].mxu0 %v3395_v15 }
 0x126   : > { %1369 = vmatmul.mubr.bf16.gmra.mrb[44].mxu1 %v3396_v16  ;;  %1215 = vmatprep.mubr.bf16.mxu0 %v3397_v17 }
 0x127   : > { %1376 = vmatprep.mubr.bf16.mxu1 %v3399_v18 }
 0x12d   : > { %1216 = vmatmul.mubr.bf16.gmra.mrb[48].mxu0 %v3401_v19  ;;  %v420_v19 = vld [vmem:[#allocation2 + $0x28] sm:$0xff] }
 0x12e   : > { %1377 = vmatmul.mubr.bf16.gmra.mrb[48].mxu1 %v3402_v20  ;;  %1223 = vmatprep.mubr.bf16.mxu0 %v3403_v21 }
 0x12f   : > { %1384 = vmatprep.mubr.bf16.mxu1 %v3405_v22 }
 0x135   : > { %1224 = vmatmul.mubr.bf16.gmra.mrb[52].mxu0 %v3407_v23 }
 0x136   : > { %1385 = vmatmul.mubr.bf16.gmra.mrb[52].mxu1 %v3408_v24  ;;  %1231 = vmatprep.mubr.bf16.mxu0 %v3409_v25 }
 0x137   : > { %1392 = vmatprep.mubr.bf16.mxu1 %v3411_v26 }
 0x13d   : > { %1232 = vmatmul.mubr.bf16.gmra.mrb[56].mxu0 %v3413_v27 }
 0x13e   : > { %1393 = vmatmul.mubr.bf16.gmra.mrb[56].mxu1 %v3414_v28  ;;  %1239 = vmatprep.mubr.bf16.mxu0 %v3415_v29 }
 0x13f   : > { %1400 = vmatprep.mubr.bf16.mxu1 %v3417_v30 }
 0x145   : > { %1240 = vmatmul.mubr.bf16.gmra.mrb[60].mxu0 %v3419_v31 }
 0x146   : > { %1401 = vmatmul.mubr.bf16.gmra.mrb[60].mxu1 %v3420_v32  ;;  %v421_v32 = vld [vmem:[#allocation2 + $0x30] sm:$0xff] }
 0x1a0   : > { %v2801_v33 = vpop.f32.mrb[0].mxu0 }
 0x1a1   : > { %v2913_v34 = vpop.f32.mrb[0].mxu1  ;;  %v2802_v35 = vpop.f32.mrb[1].mxu0 }
 0x1a2   : > { %v2803_v36 = vadd.f32 %v2802_v35, %v2801_v33  ;;  %v2914_v37 = vpop.f32.mrb[1].mxu1  ;;  %v2804_v38 = vpop.f32.mrb[2].mxu0 }
 0x1a3   : > { %v2915_v39 = vadd.f32 %v2914_v37, %v2913_v34  ;;  %v2916_v40 = vpop.f32.mrb[2].mxu1  ;;  %v2805_v41 = vpop.f32.mrb[3].mxu0  ;;  %v422_v37 = vld [vmem:[#allocation2 + $0x38] sm:$0xff] }
 0x1a4   : > { %v2806_v43 = vadd.f32 %v2805_v41, %v2804_v38  ;;  %v2917_v44 = vpop.f32.mrb[3].mxu1 }
 0x1a5   : > { %v1283_v45 = vadd.f32 %v2915_v39, %v2803_v36  ;;  %v2918_v46 = vadd.f32 %v2917_v44, %v2916_v40 }
 0x1a7   : > { %v1409_v48 = vadd.f32 %v1283_v45, %v415_v42  ;;  %v1286_v49 = vadd.f32 %v2918_v46, %v2806_v43 }
 0x1a8   : > { %v2807_v50 = vpop.f32.mrb[4].mxu0 }
 0x1a9   : > { %1441 = vst [vmem:[#allocation2] sm:$0xff] %v1409_v48  ;;  %v1410_v51 = vadd.f32 %v1286_v49, %v416_v47  ;;  %v2919_v52 = vpop.f32.mrb[4].mxu1  ;;  %v2808_v53 = vpop.f32.mrb[5].mxu0 }
 0x1aa   : > { %v2809_v54 = vadd.f32 %v2808_v53, %v2807_v50  ;;  %v2920_v55 = vpop.f32.mrb[5].mxu1  ;;  %v2810_v56 = vpop.f32.mrb[6].mxu0  ;;  %v423_v50 = vld [vmem:[#allocation2 + $0x40] sm:$0xff] }
 0x1ab   : > { %1442 = vst [vmem:[#allocation2 + $0x8] sm:$0xff] %v1410_v51  ;;  %v2921_v57 = vadd.f32 %v2920_v55, %v2919_v52  ;;  %v2922_v58 = vpop.f32.mrb[6].mxu1  ;;  %v2811_v59 = vpop.f32.mrb[7].mxu0  ;;  %v424_v55 = vld [vmem:[#allocation2 + $0x48] sm:$0xff] }
 0x1ac   : > { %v2812_v61 = vadd.f32 %v2811_v59, %v2810_v56  ;;  %v2923_v62 = vpop.f32.mrb[7].mxu1 }
 0x1ad   : > { %v1291_v63 = vadd.f32 %v2921_v57, %v2809_v54  ;;  %v2924_v0 = vadd.f32 %v2923_v62, %v2922_v58 }
 0x1af   : > { %v1411_v2 = vadd.f32 %v1291_v63, %v417_v60  ;;  %v1294_v3 = vadd.f32 %v2924_v0, %v2812_v61 }
 0x1b0   : > { %v2813_v4 = vpop.f32.mrb[8].mxu0 }
 0x1b1   : > { %1443 = vst [vmem:[#allocation2 + $0x10] sm:$0xff] %v1411_v2  ;;  %v1412_v5 = vadd.f32 %v1294_v3, %v418_v1  ;;  %v2925_v6 = vpop.f32.mrb[8].mxu1  ;;  %v2814_v7 = vpop.f32.mrb[9].mxu0 }
 0x1b2   : > { %v2815_v8 = vadd.f32 %v2814_v7, %v2813_v4  ;;  %v2926_v9 = vpop.f32.mrb[9].mxu1  ;;  %v2816_v10 = vpop.f32.mrb[10].mxu0  ;;  %v425_v4 = vld [vmem:[#allocation2 + $0x50] sm:$0xff] }
 0x1b3   : > { %1444 = vst [vmem:[#allocation2 + $0x18] sm:$0xff] %v1412_v5  ;;  %v2927_v11 = vadd.f32 %v2926_v9, %v2925_v6  ;;  %v2928_v12 = vpop.f32.mrb[10].mxu1  ;;  %v2817_v13 = vpop.f32.mrb[11].mxu0  ;;  %v426_v9 = vld [vmem:[#allocation2 + $0x58] sm:$0xff] }
 0x1b4   : > { %v2818_v15 = vadd.f32 %v2817_v13, %v2816_v10  ;;  %v2929_v16 = vpop.f32.mrb[11].mxu1 }
 0x1b5   : > { %v1299_v17 = vadd.f32 %v2927_v11, %v2815_v8  ;;  %v2930_v18 = vadd.f32 %v2929_v16, %v2928_v12 }
 0x1b7   : > { %v1413_v20 = vadd.f32 %v1299_v17, %v419_v14  ;;  %v1302_v21 = vadd.f32 %v2930_v18, %v2818_v15 }
 0x1b8   : > { %v2819_v22 = vpop.f32.mrb[12].mxu0 }
 0x1b9   : > { %1445 = vst [vmem:[#allocation2 + $0x20] sm:$0xff] %v1413_v20  ;;  %v1414_v23 = vadd.f32 %v1302_v21, %v420_v19  ;;  %v2931_v24 = vpop.f32.mrb[12].mxu1  ;;  %v2820_v25 = vpop.f32.mrb[13].mxu0 }
 0x1ba   : > { %v2821_v26 = vadd.f32 %v2820_v25, %v2819_v22  ;;  %v2932_v27 = vpop.f32.mrb[13].mxu1  ;;  %v2822_v28 = vpop.f32.mrb[14].mxu0  ;;  %v427_v22 = vld [vmem:[#allocation2 + $0x60] sm:$0xff] }
 0x1bb   : > { %1446 = vst [vmem:[#allocation2 + $0x28] sm:$0xff] %v1414_v23  ;;  %v2933_v29 = vadd.f32 %v2932_v27, %v2931_v24  ;;  %v2934_v30 = vpop.f32.mrb[14].mxu1  ;;  %v2823_v31 = vpop.f32.mrb[15].mxu0  ;;  %v428_v27 = vld [vmem:[#allocation2 + $0x68] sm:$0xff] }
 0x1bc   : > { %v2824_v33 = vadd.f32 %v2823_v31, %v2822_v28  ;;  %v2935_v34 = vpop.f32.mrb[15].mxu1 }
 0x1bd   : > { %v1307_v35 = vadd.f32 %v2933_v29, %v2821_v26  ;;  %v2936_v36 = vadd.f32 %v2935_v34, %v2934_v30 }
 0x1bf   : > { %v1415_v38 = vadd.f32 %v1307_v35, %v421_v32  ;;  %v1310_v39 = vadd.f32 %v2936_v36, %v2824_v33 }
 0x1c0   : > { %v2825_v40 = vpop.f32.mrb[16].mxu0 }
 0x1c1   : > { %1447 = vst [vmem:[#allocation2 + $0x30] sm:$0xff] %v1415_v38  ;;  %v1416_v41 = vadd.f32 %v1310_v39, %v422_v37  ;;  %v2937_v42 = vpop.f32.mrb[16].mxu1  ;;  %v2826_v43 = vpop.f32.mrb[17].mxu0 }
 0x1c2   : > { %v2827_v44 = vadd.f32 %v2826_v43, %v2825_v40  ;;  %v2938_v45 = vpop.f32.mrb[17].mxu1  ;;  %v2828_v46 = vpop.f32.mrb[18].mxu0  ;;  %v429_v40 = vld [vmem:[#allocation2 + $0x70] sm:$0xff] }
 0x1c3   : > { %1448 = vst [vmem:[#allocation2 + $0x38] sm:$0xff] %v1416_v41  ;;  %v2939_v47 = vadd.f32 %v2938_v45, %v2937_v42  ;;  %v2940_v48 = vpop.f32.mrb[18].mxu1  ;;  %v2829_v49 = vpop.f32.mrb[19].mxu0  ;;  %v430_v45 = vld [vmem:[#allocation2 + $0x78] sm:$0xff] }
 0x1c4   : > { %v2830_v51 = vadd.f32 %v2829_v49, %v2828_v46  ;;  %v2941_v52 = vpop.f32.mrb[19].mxu1 }
 0x1c5   : > { %v1315_v53 = vadd.f32 %v2939_v47, %v2827_v44  ;;  %v2942_v54 = vadd.f32 %v2941_v52, %v2940_v48 }
 0x1c7   : > { %v1417_v56 = vadd.f32 %v1315_v53, %v423_v50  ;;  %v1318_v57 = vadd.f32 %v2942_v54, %v2830_v51 }
 0x1c8   : > { %v2831_v58 = vpop.f32.mrb[20].mxu0 }
 0x1c9   : > { %1449 = vst [vmem:[#allocation2 + $0x40] sm:$0xff] %v1417_v56  ;;  %v1418_v59 = vadd.f32 %v1318_v57, %v424_v55  ;;  %v2943_v60 = vpop.f32.mrb[20].mxu1  ;;  %v2832_v61 = vpop.f32.mrb[21].mxu0 }
 0x1ca   : > { %v2833_v62 = vadd.f32 %v2832_v61, %v2831_v58  ;;  %v2944_v63 = vpop.f32.mrb[21].mxu1  ;;  %v2834_v0 = vpop.f32.mrb[22].mxu0  ;;  %v431_v58 = vld [vmem:[#allocation2 + $0x80] sm:$0xff] }
 0x1cb   : > { %1450 = vst [vmem:[#allocation2 + $0x48] sm:$0xff] %v1418_v59  ;;  %v2945_v1 = vadd.f32 %v2944_v63, %v2943_v60  ;;  %v2946_v2 = vpop.f32.mrb[22].mxu1  ;;  %v2835_v3 = vpop.f32.mrb[23].mxu0  ;;  %v432_v63 = vld [vmem:[#allocation2 + $0x88] sm:$0xff] }
 0x1cc   : > { %v2836_v5 = vadd.f32 %v2835_v3, %v2834_v0  ;;  %v2947_v6 = vpop.f32.mrb[23].mxu1 }
 0x1cd   : > { %v1323_v7 = vadd.f32 %v2945_v1, %v2833_v62  ;;  %v2948_v8 = vadd.f32 %v2947_v6, %v2946_v2 }
 0x1cf   : > { %v1419_v10 = vadd.f32 %v1323_v7, %v425_v4  ;;  %v1326_v11 = vadd.f32 %v2948_v8, %v2836_v5 }
 0x1d0   : > { %v2837_v12 = vpop.f32.mrb[24].mxu0 }
 0x1d1   : > { %1451 = vst [vmem:[#allocation2 + $0x50] sm:$0xff] %v1419_v10  ;;  %v1420_v13 = vadd.f32 %v1326_v11, %v426_v9  ;;  %v2949_v14 = vpop.f32.mrb[24].mxu1  ;;  %v2838_v15 = vpop.f32.mrb[25].mxu0 }
 0x1d2   : > { %v2839_v16 = vadd.f32 %v2838_v15, %v2837_v12  ;;  %v2950_v17 = vpop.f32.mrb[25].mxu1  ;;  %v2840_v18 = vpop.f32.mrb[26].mxu0  ;;  %v433_v12 = vld [vmem:[#allocation2 + $0x90] sm:$0xff] }
 0x1d3   : > { %1452 = vst [vmem:[#allocation2 + $0x58] sm:$0xff] %v1420_v13  ;;  %v2951_v19 = vadd.f32 %v2950_v17, %v2949_v14  ;;  %v2952_v20 = vpop.f32.mrb[26].mxu1  ;;  %v2841_v21 = vpop.f32.mrb[27].mxu0  ;;  %v434_v17 = vld [vmem:[#allocation2 + $0x98] sm:$0xff] }
 0x1d4   : > { %v2842_v23 = vadd.f32 %v2841_v21, %v2840_v18  ;;  %v2953_v24 = vpop.f32.mrb[27].mxu1 }
 0x1d5   : > { %v1331_v25 = vadd.f32 %v2951_v19, %v2839_v16  ;;  %v2954_v26 = vadd.f32 %v2953_v24, %v2952_v20 }
 0x1d7   : > { %v1421_v28 = vadd.f32 %v1331_v25, %v427_v22  ;;  %v1334_v29 = vadd.f32 %v2954_v26, %v2842_v23 }
 0x1d8   : > { %v2843_v30 = vpop.f32.mrb[28].mxu0 }
 0x1d9   : > { %1453 = vst [vmem:[#allocation2 + $0x60] sm:$0xff] %v1421_v28  ;;  %v1422_v31 = vadd.f32 %v1334_v29, %v428_v27  ;;  %v2955_v32 = vpop.f32.mrb[28].mxu1  ;;  %v2844_v33 = vpop.f32.mrb[29].mxu0 }
 0x1da   : > { %v2845_v34 = vadd.f32 %v2844_v33, %v2843_v30  ;;  %v2956_v35 = vpop.f32.mrb[29].mxu1  ;;  %v2846_v36 = vpop.f32.mrb[30].mxu0  ;;  %v435_v30 = vld [vmem:[#allocation2 + $0xa0] sm:$0xff] }
 0x1db   : > { %1454 = vst [vmem:[#allocation2 + $0x68] sm:$0xff] %v1422_v31  ;;  %v2957_v37 = vadd.f32 %v2956_v35, %v2955_v32  ;;  %v2958_v38 = vpop.f32.mrb[30].mxu1  ;;  %v2847_v39 = vpop.f32.mrb[31].mxu0  ;;  %v436_v35 = vld [vmem:[#allocation2 + $0xa8] sm:$0xff] }
 0x1dc   : > { %v2848_v41 = vadd.f32 %v2847_v39, %v2846_v36  ;;  %v2959_v42 = vpop.f32.mrb[31].mxu1 }
 0x1dd   : > { %v1339_v43 = vadd.f32 %v2957_v37, %v2845_v34  ;;  %v2960_v44 = vadd.f32 %v2959_v42, %v2958_v38 }
 0x1df   : > { %v1423_v46 = vadd.f32 %v1339_v43, %v429_v40  ;;  %v1342_v47 = vadd.f32 %v2960_v44, %v2848_v41 }
 0x1e0   : > { %v2849_v48 = vpop.f32.mrb[32].mxu0 }
 0x1e1   : > { %1455 = vst [vmem:[#allocation2 + $0x70] sm:$0xff] %v1423_v46  ;;  %v1424_v49 = vadd.f32 %v1342_v47, %v430_v45  ;;  %v2961_v50 = vpop.f32.mrb[32].mxu1  ;;  %v2850_v51 = vpop.f32.mrb[33].mxu0 }
 0x1e2   : > { %v2851_v52 = vadd.f32 %v2850_v51, %v2849_v48  ;;  %v2962_v53 = vpop.f32.mrb[33].mxu1  ;;  %v2852_v54 = vpop.f32.mrb[34].mxu0  ;;  %v437_v48 = vld [vmem:[#allocation2 + $0xb0] sm:$0xff] }
 0x1e3   : > { %1456 = vst [vmem:[#allocation2 + $0x78] sm:$0xff] %v1424_v49  ;;  %v2963_v55 = vadd.f32 %v2962_v53, %v2961_v50  ;;  %v2964_v56 = vpop.f32.mrb[34].mxu1  ;;  %v2853_v57 = vpop.f32.mrb[35].mxu0  ;;  %v438_v53 = vld [vmem:[#allocation2 + $0xb8] sm:$0xff] }
 0x1e4   : > { %v2854_v59 = vadd.f32 %v2853_v57, %v2852_v54  ;;  %v2965_v60 = vpop.f32.mrb[35].mxu1 }
 0x1e5   : > { %v1347_v61 = vadd.f32 %v2963_v55, %v2851_v52  ;;  %v2966_v62 = vadd.f32 %v2965_v60, %v2964_v56 }
 0x1e7   : > { %v1425_v0 = vadd.f32 %v1347_v61, %v431_v58  ;;  %v1350_v1 = vadd.f32 %v2966_v62, %v2854_v59 }
 0x1e8   : > { %v2855_v2 = vpop.f32.mrb[36].mxu0 }
 0x1e9   : > { %1457 = vst [vmem:[#allocation2 + $0x80] sm:$0xff] %v1425_v0  ;;  %v1426_v3 = vadd.f32 %v1350_v1, %v432_v63  ;;  %v2967_v4 = vpop.f32.mrb[36].mxu1  ;;  %v2856_v5 = vpop.f32.mrb[37].mxu0 }
 0x1ea   : > { %v2857_v6 = vadd.f32 %v2856_v5, %v2855_v2  ;;  %v2968_v7 = vpop.f32.mrb[37].mxu1  ;;  %v2858_v8 = vpop.f32.mrb[38].mxu0  ;;  %v439_v2 = vld [vmem:[#allocation2 + $0xc0] sm:$0xff] }
 0x1eb   : > { %1458 = vst [vmem:[#allocation2 + $0x88] sm:$0xff] %v1426_v3  ;;  %v2969_v9 = vadd.f32 %v2968_v7, %v2967_v4  ;;  %v2970_v10 = vpop.f32.mrb[38].mxu1  ;;  %v2859_v11 = vpop.f32.mrb[39].mxu0  ;;  %v440_v7 = vld [vmem:[#allocation2 + $0xc8] sm:$0xff] }
 0x1ec   : > { %v2860_v13 = vadd.f32 %v2859_v11, %v2858_v8  ;;  %v2971_v14 = vpop.f32.mrb[39].mxu1 }
 0x1ed   : > { %v1355_v15 = vadd.f32 %v2969_v9, %v2857_v6  ;;  %v2972_v16 = vadd.f32 %v2971_v14, %v2970_v10 }
 0x1ef   : > { %v1427_v18 = vadd.f32 %v1355_v15, %v433_v12  ;;  %v1358_v19 = vadd.f32 %v2972_v16, %v2860_v13 }
 0x1f0   : > { %v2861_v20 = vpop.f32.mrb[40].mxu0 }
 0x1f1   : > { %1459 = vst [vmem:[#allocation2 + $0x90] sm:$0xff] %v1427_v18  ;;  %v1428_v21 = vadd.f32 %v1358_v19, %v434_v17  ;;  %v2973_v22 = vpop.f32.mrb[40].mxu1  ;;  %v2862_v23 = vpop.f32.mrb[41].mxu0 }
 0x1f2   : > { %v2863_v24 = vadd.f32 %v2862_v23, %v2861_v20  ;;  %v2974_v25 = vpop.f32.mrb[41].mxu1  ;;  %v2864_v26 = vpop.f32.mrb[42].mxu0  ;;  %v441_v20 = vld [vmem:[#allocation2 + $0xd0] sm:$0xff] }
 0x1f3   : > { %1460 = vst [vmem:[#allocation2 + $0x98] sm:$0xff] %v1428_v21  ;;  %v2975_v27 = vadd.f32 %v2974_v25, %v2973_v22  ;;  %v2976_v28 = vpop.f32.mrb[42].mxu1  ;;  %v2865_v29 = vpop.f32.mrb[43].mxu0  ;;  %v442_v25 = vld [vmem:[#allocation2 + $0xd8] sm:$0xff] }
 0x1f4   : > { %v2866_v31 = vadd.f32 %v2865_v29, %v2864_v26  ;;  %v2977_v32 = vpop.f32.mrb[43].mxu1 }
 0x1f5   : > { %v1363_v33 = vadd.f32 %v2975_v27, %v2863_v24  ;;  %v2978_v34 = vadd.f32 %v2977_v32, %v2976_v28 }
 0x1f7   : > { %v1429_v36 = vadd.f32 %v1363_v33, %v435_v30  ;;  %v1366_v37 = vadd.f32 %v2978_v34, %v2866_v31 }
 0x1f8   : > { %v2867_v38 = vpop.f32.mrb[44].mxu0 }
 0x1f9   : > { %1461 = vst [vmem:[#allocation2 + $0xa0] sm:$0xff] %v1429_v36  ;;  %v1430_v39 = vadd.f32 %v1366_v37, %v436_v35  ;;  %v2979_v40 = vpop.f32.mrb[44].mxu1  ;;  %v2868_v41 = vpop.f32.mrb[45].mxu0 }
 0x1fa   : > { %v2869_v42 = vadd.f32 %v2868_v41, %v2867_v38  ;;  %v2980_v43 = vpop.f32.mrb[45].mxu1  ;;  %v2870_v44 = vpop.f32.mrb[46].mxu0  ;;  %v443_v38 = vld [vmem:[#allocation2 + $0xe0] sm:$0xff] }
 0x1fb   : > { %1462 = vst [vmem:[#allocation2 + $0xa8] sm:$0xff] %v1430_v39  ;;  %v2981_v45 = vadd.f32 %v2980_v43, %v2979_v40  ;;  %v2982_v46 = vpop.f32.mrb[46].mxu1  ;;  %v2871_v47 = vpop.f32.mrb[47].mxu0  ;;  %v444_v43 = vld [vmem:[#allocation2 + $0xe8] sm:$0xff] }
 0x1fc   : > { %v2872_v49 = vadd.f32 %v2871_v47, %v2870_v44  ;;  %v2983_v50 = vpop.f32.mrb[47].mxu1 }
 0x1fd   : > { %v1371_v51 = vadd.f32 %v2981_v45, %v2869_v42  ;;  %v2984_v52 = vadd.f32 %v2983_v50, %v2982_v46 }
 0x1ff   : > { %v1431_v54 = vadd.f32 %v1371_v51, %v437_v48  ;;  %v1374_v55 = vadd.f32 %v2984_v52, %v2872_v49 }
 0x200   : > { %v2873_v56 = vpop.f32.mrb[48].mxu0 }
 0x201   : > { %1463 = vst [vmem:[#allocation2 + $0xb0] sm:$0xff] %v1431_v54  ;;  %v1432_v57 = vadd.f32 %v1374_v55, %v438_v53  ;;  %v2985_v58 = vpop.f32.mrb[48].mxu1  ;;  %v2874_v59 = vpop.f32.mrb[49].mxu0 }
 0x202   : > { %v2875_v60 = vadd.f32 %v2874_v59, %v2873_v56  ;;  %v2986_v61 = vpop.f32.mrb[49].mxu1  ;;  %v2876_v62 = vpop.f32.mrb[50].mxu0  ;;  %v445_v56 = vld [vmem:[#allocation2 + $0xf0] sm:$0xff] }
 0x203   : > { %1464 = vst [vmem:[#allocation2 + $0xb8] sm:$0xff] %v1432_v57  ;;  %v2987_v63 = vadd.f32 %v2986_v61, %v2985_v58  ;;  %v2988_v0 = vpop.f32.mrb[50].mxu1  ;;  %v2877_v1 = vpop.f32.mrb[51].mxu0  ;;  %v446_v61 = vld [vmem:[#allocation2 + $0xf8] sm:$0xff] }
 0x204   : > { %v2878_v3 = vadd.f32 %v2877_v1, %v2876_v62  ;;  %v2989_v4 = vpop.f32.mrb[51].mxu1  ;;  %v3421_v1 = vld [vmem:[#allocation7] sm:$0xff] (!%p2589_p6)  }
 0x205   : > { %v1379_v5 = vadd.f32 %v2987_v63, %v2875_v60  ;;  %v2990_v6 = vadd.f32 %v2989_v4, %v2988_v0  ;;  %3057 = vmatprep.subr.bf16.mxu1 (!%p2589_p6), %v3421_v1  ;;  %v3424_v4 = vld [vmem:[#allocation5 + $0x8] sm:$0xff] (!%p2589_p6)  }
 0x206   : > { %3058 = vmatpush3.bf16.msra.mxu1 (!%p2589_p6), %v3421_v1 }
 0x207   : > { %v1433_v8 = vadd.f32 %v1379_v5, %v439_v2  ;;  %v1382_v9 = vadd.f32 %v2990_v6, %v2878_v3  ;;  %v3422_v2 = vld [vmem:[#allocation5] sm:$0xff] (!%p2589_p6)   ;;  %v3423_v3 = vld [vmem:[#allocation7 + $0x8] sm:$0xff] (!%p2589_p6)   ;;  %v3425_v5 = vld [vmem:[#allocation7 + $0x10] sm:$0xff] (!%p2589_p6)  }
 0x208   : > { %v2879_v10 = vpop.f32.mrb[52].mxu0  ;;  %3105 = vmatprep.subr.bf16.mxu0 (!%p2589_p6), %v3422_v2  ;;  %3059 = vmatprep.subr.bf16.mxu1 (!%p2589_p6), %v3423_v3  ;;  %v3426_v6 = vld [vmem:[#allocation5 + $0x10] sm:$0xff] (!%p2589_p6)  }
 0x209   : > { %1465 = vst [vmem:[#allocation2 + $0xc0] sm:$0xff] %v1433_v8  ;;  %v1434_v11 = vadd.f32 %v1382_v9, %v440_v7  ;;  %v2991_v12 = vpop.f32.mrb[52].mxu1  ;;  %v2880_v13 = vpop.f32.mrb[53].mxu0  ;;  %3106 = vmatpush3.bf16.msra.mxu0 (!%p2589_p6), %v3422_v2  ;;  %v3427_v7 = vld [vmem:[#allocation7 + $0x18] sm:$0xff] (!%p2589_p6)   ;;  %v3429_v9 = vld [vmem:[#allocation7 + $0x20] sm:$0xff] (!%p2589_p6)  }
 0x20a   : > { %v2881_v14 = vadd.f32 %v2880_v13, %v2879_v10  ;;  %v2992_v15 = vpop.f32.mrb[53].mxu1  ;;  %v2882_v16 = vpop.f32.mrb[54].mxu0  ;;  %3107 = vmatprep.subr.bf16.mxu0 (!%p2589_p6), %v3424_v4  ;;  %3060 = vmatpush3.bf16.msra.mxu1 (!%p2589_p6), %v3423_v3  ;;  %v3428_v8 = vld [vmem:[#allocation5 + $0x18] sm:$0xff] (!%p2589_p6)   ;;  %v3430_v10 = vld [vmem:[#allocation5 + $0x20] sm:$0xff] (!%p2589_p6)   ;;  %v1526_v13 = vld [vmem:[#allocation2 + $0x8] sm:$0xff] (!%p2589_p6) }
 0x20b   : > { %1466 = vst [vmem:[#allocation2 + $0xc8] sm:$0xff] %v1434_v11  ;;  %v2993_v17 = vadd.f32 %v2992_v15, %v2991_v12  ;;  %v2994_v18 = vpop.f32.mrb[54].mxu1  ;;  %v2883_v19 = vpop.f32.mrb[55].mxu0  ;;  %3061 = vmatprep.subr.bf16.mxu1 (!%p2589_p6), %v3425_v5  ;;  %v3431_v11 = vld [vmem:[#allocation7 + $0x28] sm:$0xff] (!%p2589_p6)   ;;  %v1525_v12 = vld [vmem:[#allocation2] sm:$0xff] (!%p2589_p6)  ;;  %v3448_v2 = vld [vmem:[%s3916_s7 + $0x58] sm:$0xff] (!%p2589_p6)  }
 0x20c   : > { %v2884_v21 = vadd.f32 %v2883_v19, %v2882_v16  ;;  %v2995_v22 = vpop.f32.mrb[55].mxu1  ;;  %v1557_v15 = vpack.c.bf16 (!%p2589_p6), %v1526_v13, %v1525_v12  ;;  %v3437_v16 = vld [vmem:[%s3916_s7] sm:$0xff] (!%p2589_p6)   ;;  %v3435_v19 = vld [vmem:[#allocation7 + $0x38] sm:$0xff] (!%p2589_p6)   ;;  %v3451_v12 = vld [vmem:[%s3916_s7 + $0x70] sm:$0xff] (!%p2589_p6)  }
 0x20d   : > { %v1387_v23 = vadd.f32 %v2993_v17, %v2881_v14  ;;  %v2996_v24 = vadd.f32 %v2995_v22, %v2994_v18  ;;  %3108 = vmatpush3.bf16.msra.mxu0 (!%p2589_p6), %v3424_v4  ;;  %v3432_v14 = vld [vmem:[#allocation5 + $0x28] sm:$0xff] (!%p2589_p6)   ;;  %v3433_v17 = vld [vmem:[#allocation7 + $0x30] sm:$0xff] (!%p2589_p6)   ;;  %3121 = vmatprep.mubr.bf16.mxu0 (!%p2589_p6), %v3437_v16  ;;  %v1528_v22 = vld [vmem:[#allocation2 + $0x18] sm:$0xff] (!%p2589_p6) }
 0x20e   : > { %3109 = vmatprep.subr.bf16.mxu0 (!%p2589_p6), %v3426_v6  ;;  %3062 = vmatpush3.bf16.msra.mxu1 (!%p2589_p6), %v3425_v5  ;;  %v3434_v18 = vld [vmem:[#allocation5 + $0x30] sm:$0xff] (!%p2589_p6)   ;;  %v3449_v4 = vld [vmem:[%s3916_s7 + $0x60] sm:$0xff] (!%p2589_p6)   ;;  %v3452_v16 = vld [vmem:[%s3916_s7 + $0x78] sm:$0xff] (!%p2589_p6)  }
 0x20f   : > { %v1435_v26 = vadd.f32 %v1387_v23, %v441_v20  ;;  %v1390_v27 = vadd.f32 %v2996_v24, %v2884_v21  ;;  %3063 = vmatprep.subr.bf16.mxu1 (!%p2589_p6), %v3427_v7  ;;  %3073 = vmatprep.mubr.bf16.mxu1 (!%p2589_p6), %v1557_v15  ;;  %v3436_v20 = vld [vmem:[#allocation5 + $0x38] sm:$0xff] (!%p2589_p6)   ;;  %v1527_v21 = vld [vmem:[#allocation2 + $0x10] sm:$0xff] (!%p2589_p6)  ;;  %v1529_v23 = vld [vmem:[#allocation2 + $0x20] sm:$0xff] (!%p2589_p6) }
 0x210   : > { %v2885_v28 = vpop.f32.mrb[56].mxu0  ;;  %v1530_v24 = vld [vmem:[#allocation2 + $0x28] sm:$0xff] (!%p2589_p6) }
 0x211   : > { %1467 = vst [vmem:[#allocation2 + $0xd0] sm:$0xff] %v1435_v26  ;;  %v1436_v29 = vadd.f32 %v1390_v27, %v442_v25  ;;  %v2997_v30 = vpop.f32.mrb[56].mxu1  ;;  %v2886_v31 = vpop.f32.mrb[57].mxu0  ;;  %3110 = vmatpush3.bf16.msra.mxu0 (!%p2589_p6), %v3426_v6  ;;  %v1558_v25 = vpack.c.bf16 (!%p2589_p6), %v1528_v22, %v1527_v21  ;;  %v3438_v26 = vld [vmem:[%s3916_s7 + $0x8] sm:$0xff] (!%p2589_p6)   ;;  %v1559_v27 = vpack.c.bf16 (!%p2589_p6), %v1530_v24, %v1529_v23 }
 0x212   : > { %v2887_v32 = vadd.f32 %v2886_v31, %v2885_v28  ;;  %v2998_v33 = vpop.f32.mrb[57].mxu1  ;;  %v2888_v34 = vpop.f32.mrb[58].mxu0  ;;  %3111 = vmatprep.subr.bf16.mxu0 (!%p2589_p6), %v3428_v8  ;;  %3064 = vmatpush3.bf16.msra.mxu1 (!%p2589_p6), %v3427_v7  ;;  %v3439_v28 = vld [vmem:[%s3916_s7 + $0x10] sm:$0xff] (!%p2589_p6)   ;;  %v1533_v31 = vld [vmem:[#allocation2 + $0x40] sm:$0xff] (!%p2589_p6) }
 0x213   : > { %1468 = vst [vmem:[#allocation2 + $0xd8] sm:$0xff] %v1436_v29  ;;  %v2999_v35 = vadd.f32 %v2998_v33, %v2997_v30  ;;  %v3000_v36 = vpop.f32.mrb[58].mxu1  ;;  %v2889_v37 = vpop.f32.mrb[59].mxu0  ;;  %3065 = vmatprep.subr.bf16.mxu1 (!%p2589_p6), %v3429_v9  ;;  %v1531_v29 = vld [vmem:[#allocation2 + $0x30] sm:$0xff] (!%p2589_p6)  ;;  %v1532_v30 = vld [vmem:[#allocation2 + $0x38] sm:$0xff] (!%p2589_p6) }
 0x214   : > { %v2890_v39 = vadd.f32 %v2889_v37, %v2888_v34  ;;  %v3001_v40 = vpop.f32.mrb[59].mxu1  ;;  %v1560_v33 = vpack.c.bf16 (!%p2589_p6), %v1532_v30, %v1531_v29  ;;  %v3440_v34 = vld [vmem:[%s3916_s7 + $0x18] sm:$0xff] (!%p2589_p6)   ;;  %v1535_v37 = vld [vmem:[#allocation2 + $0x50] sm:$0xff] (!%p2589_p6) }
 0x215   : > { %v1395_v41 = vadd.f32 %v2999_v35, %v2887_v32  ;;  %v3002_v42 = vadd.f32 %v3001_v40, %v3000_v36  ;;  %3112 = vmatpush3.bf16.msra.mxu0 (!%p2589_p6), %v3428_v8  ;;  %v1534_v32 = vld [vmem:[#allocation2 + $0x48] sm:$0xff] (!%p2589_p6)  ;;  %v3441_v36 = vld [vmem:[%s3916_s7 + $0x20] sm:$0xff] (!%p2589_p6)  }
 0x216   : > { %3113 = vmatprep.subr.bf16.mxu0 (!%p2589_p6), %v3430_v10  ;;  %3066 = vmatpush3.bf16.msra.mxu1 (!%p2589_p6), %v3429_v9  ;;  %v1561_v35 = vpack.c.bf16 (!%p2589_p6), %v1534_v32, %v1533_v31  ;;  %v1538_v40 = vld [vmem:[#allocation2 + $0x68] sm:$0xff] (!%p2589_p6) }
 0x217   : > { %v1437_v44 = vadd.f32 %v1395_v41, %v443_v38  ;;  %v1398_v45 = vadd.f32 %v3002_v42, %v2890_v39  ;;  %3067 = vmatprep.subr.bf16.mxu1 (!%p2589_p6), %v3431_v11  ;;  %v1536_v38 = vld [vmem:[#allocation2 + $0x58] sm:$0xff] (!%p2589_p6)  ;;  %v1537_v39 = vld [vmem:[#allocation2 + $0x60] sm:$0xff] (!%p2589_p6)  ;;  %v3442_v42 = vld [vmem:[%s3916_s7 + $0x28] sm:$0xff] (!%p2589_p6)  }
 0x218   : > { %v2891_v46 = vpop.f32.mrb[60].mxu0  ;;  %v1562_v41 = vpack.c.bf16 (!%p2589_p6), %v1536_v38, %v1535_v37  ;;  %v1551_v5 = vld [vmem:[#allocation2 + $0xd0] sm:$0xff] (!%p2589_p6) }
 0x219   : > { %1469 = vst [vmem:[#allocation2 + $0xe0] sm:$0xff] %v1437_v44  ;;  %v1438_v47 = vadd.f32 %v1398_v45, %v444_v43  ;;  %v3003_v48 = vpop.f32.mrb[60].mxu1  ;;  %v2892_v49 = vpop.f32.mrb[61].mxu0  ;;  %3114 = vmatpush3.bf16.msra.mxu0 (!%p2589_p6), %v3430_v10  ;;  %v1563_v43 = vpack.c.bf16 (!%p2589_p6), %v1538_v40, %v1537_v39  ;;  %v3443_v44 = vld [vmem:[%s3916_s7 + $0x30] sm:$0xff] (!%p2589_p6)   ;;  %v3450_v10 = vld [vmem:[%s3916_s7 + $0x68] sm:$0xff] (!%p2589_p6)  }
 0x21a   : > { %v2893_v50 = vadd.f32 %v2892_v49, %v2891_v46  ;;  %v3004_v51 = vpop.f32.mrb[61].mxu1  ;;  %v2894_v52 = vpop.f32.mrb[62].mxu0  ;;  %3115 = vmatprep.subr.bf16.mxu0 (!%p2589_p6), %v3432_v14  ;;  %3068 = vmatpush3.bf16.msra.mxu1 (!%p2589_p6), %v3431_v11  ;;  %v1539_v45 = vld [vmem:[#allocation2 + $0x70] sm:$0xff] (!%p2589_p6)  ;;  %v1540_v46 = vld [vmem:[#allocation2 + $0x78] sm:$0xff] (!%p2589_p6) }
 0x21b   : > { %1470 = vst [vmem:[#allocation2 + $0xe8] sm:$0xff] %v1438_v47  ;;  %v3005_v53 = vadd.f32 %v3004_v51, %v3003_v48  ;;  %v3006_v54 = vpop.f32.mrb[62].mxu1  ;;  %v2895_v55 = vpop.f32.mrb[63].mxu0  ;;  %3069 = vmatprep.subr.bf16.mxu1 (!%p2589_p6), %v3433_v17  ;;  %v1541_v47 = vld [vmem:[#allocation2 + $0x80] sm:$0xff] (!%p2589_p6)  ;;  %v1542_v48 = vld [vmem:[#allocation2 + $0x88] sm:$0xff] (!%p2589_p6)  ;;  %v1564_v49 = vpack.c.bf16 (!%p2589_p6), %v1540_v46, %v1539_v45  ;;  %v1552_v6 = vld [vmem:[#allocation2 + $0xd8] sm:$0xff] (!%p2589_p6) }
 0x21c   : > { %v2896_v57 = vadd.f32 %v2895_v55, %v2894_v52  ;;  %v3007_v58 = vpop.f32.mrb[63].mxu1  ;;  %v1565_v51 = vpack.c.bf16 (!%p2589_p6), %v1542_v48, %v1541_v47  ;;  %v3445_v52 = vld [vmem:[%s3916_s7 + $0x40] sm:$0xff] (!%p2589_p6)   ;;  %v1570_v9 = vpack.c.bf16 (!%p2589_p6), %v1552_v6, %v1551_v5 }
 0x21d   : > { %v1403_v59 = vadd.f32 %v3005_v53, %v2893_v50  ;;  %v3008_v60 = vadd.f32 %v3007_v58, %v3006_v54  ;;  %1476 = sbr.rel (%p2589_p6) target bundleno = 832 (0x340), region = 68  ;;  %3116 = vmatpush3.bf16.msra.mxu0 (!%p2589_p6), %v3432_v14  ;;  %v3444_v50 = vld [vmem:[%s3916_s7 + $0x38] sm:$0xff] (!%p2589_p6)   ;;  %v1543_v53 = vld [vmem:[#allocation2 + $0x90] sm:$0xff] (!%p2589_p6)  ;;  %v1545_v55 = vld [vmem:[#allocation2 + $0xa0] sm:$0xff] (!%p2589_p6) }
 0x21e   : > { %3117 = vmatprep.subr.bf16.mxu0 (!%p2589_p6), %v3434_v18  ;;  %3070 = vmatpush3.bf16.msra.mxu1 (!%p2589_p6), %v3433_v17  ;;  %v1544_v54 = vld [vmem:[#allocation2 + $0x98] sm:$0xff] (!%p2589_p6)  ;;  %v3446_v58 = vld [vmem:[%s3916_s7 + $0x48] sm:$0xff] (!%p2589_p6)  }
 0x21f   : > { %v1439_v62 = vadd.f32 %v1403_v59, %v445_v56  ;;  %v1406_v63 = vadd.f32 %v3008_v60, %v2896_v57  ;;  %3071 = vmatprep.subr.bf16.mxu1 (!%p2589_p6), %v3435_v19  ;;  %v1546_v56 = vld [vmem:[#allocation2 + $0xa8] sm:$0xff] (!%p2589_p6)  ;;  %v1566_v57 = vpack.c.bf16 (!%p2589_p6), %v1544_v54, %v1543_v53  ;;  %v3447_v60 = vld [vmem:[%s3916_s7 + $0x50] sm:$0xff] (!%p2589_p6)  }
 0x220   : > { %v1567_v59 = vpack.c.bf16 (!%p2589_p6), %v1546_v56, %v1545_v55  ;;  %v1553_v7 = vld [vmem:[#allocation2 + $0xe0] sm:$0xff] (!%p2589_p6) }
 0x221   : > { %1471 = vst [vmem:[#allocation2 + $0xf0] sm:$0xff] %v1439_v62  ;;  %v1440_v0 = vadd.f32 %v1406_v63, %v446_v61  ;;  %3118 = vmatpush3.bf16.msra.mxu0 (!%p2589_p6), %v3434_v18  ;;  %v1547_v61 = vld [vmem:[#allocation2 + $0xb0] sm:$0xff] (!%p2589_p6)  ;;  %v1548_v62 = vld [vmem:[#allocation2 + $0xb8] sm:$0xff] (!%p2589_p6)  ;;  %v1549_v63 = vld [vmem:[#allocation2 + $0xc0] sm:$0xff] (!%p2589_p6) }
 0x222   : > { %3119 = vmatprep.subr.bf16.mxu0 (!%p2589_p6), %v3436_v20  ;;  %3072 = vmatpush3.bf16.msra.mxu1 (!%p2589_p6), %v3435_v19  ;;  %v1568_v1 = vpack.c.bf16 (!%p2589_p6), %v1548_v62, %v1547_v61  ;;  %v1554_v8 = vld [vmem:[#allocation2 + $0xe8] sm:$0xff] (!%p2589_p6)  ;;  %v4037_v19 = vld [vmem:[#allocation8] ss:$0 sm:$0xff] (!%p2589_p6) }
 0x223   : > { %1472 = vst [vmem:[#allocation2 + $0xf8] sm:$0xff] %v1440_v0  ;;  %v1550_v0 = vld [vmem:[#allocation2 + $0xc8] sm:$0xff] (!%p2589_p6)  ;;  %v1571_v11 = vpack.c.bf16 (!%p2589_p6), %v1554_v8, %v1553_v7 }
 0x224   : > { %v1569_v3 = vpack.c.bf16 %v1550_v0, %v1549_v63 }
 0x225   : > { %3120 = vmatpush3.bf16.msra.mxu0 %v3436_v20  ;;  %3074 = vmatmul.mubr.bf16.vlgmr.msra.gmra.mrb[0].mxu1 %v1558_v25 }
 0x226   : > { %3077 = vmatprep.mubr.bf16.mxu1 %v1559_v27 }
 0x228   : > { %3122 = vmatmul.mubr.bf16.vlgmr.msra.gmra.mrb[0].mxu0 %v3438_v26  ;;  %v1555_v13 = vld [vmem:[#allocation2 + $0xf0] sm:$0xff] }
 0x229   : > { %3125 = vmatprep.mubr.bf16.mxu0 %v3439_v28 }
 0x22a   : > { %v1556_v14 = vld [vmem:[#allocation2 + $0xf8] sm:$0xff] }
 0x22b   : > { %v1572_v15 = vpack.c.bf16 %v1556_v14, %v1555_v13 }
 0x22d   : > { %3078 = vmatmul.mubr.bf16.gmra.mrb[4].mxu1 %v1560_v33 }
 0x22e   : > { %3081 = vmatprep.mubr.bf16.mxu1 %v1561_v35 }
 0x230   : > { %3126 = vmatmul.mubr.bf16.gmra.mrb[4].mxu0 %v3440_v34 }
 0x231   : > { %3129 = vmatprep.mubr.bf16.mxu0 %v3441_v36 }
 0x235   : > { %3082 = vmatmul.mubr.bf16.gmra.mrb[8].mxu1 %v1562_v41 }
 0x236   : > { %3085 = vmatprep.mubr.bf16.mxu1 %v1563_v43 }
 0x238   : > { %3130 = vmatmul.mubr.bf16.gmra.mrb[8].mxu0 %v3442_v42 }
 0x239   : > { %3133 = vmatprep.mubr.bf16.mxu0 %v3443_v44 }
 0x23d   : > { %3086 = vmatmul.mubr.bf16.gmra.mrb[12].mxu1 %v1564_v49 }
 0x23e   : > { %3089 = vmatprep.mubr.bf16.mxu1 %v1565_v51 }
 0x240   : > { %3134 = vmatmul.mubr.bf16.gmra.mrb[12].mxu0 %v3444_v50 }
 0x241   : > { %3137 = vmatprep.mubr.bf16.mxu0 %v3445_v52 }
 0x245   : > { %3090 = vmatmul.mubr.bf16.gmra.mrb[16].mxu1 %v1566_v57 }
 0x246   : > { %3093 = vmatprep.mubr.bf16.mxu1 %v1567_v59 }
 0x248   : > { %3138 = vmatmul.mubr.bf16.gmra.mrb[16].mxu0 %v3446_v58 }
 0x249   : > { %3141 = vmatprep.mubr.bf16.mxu0 %v3447_v60 }
 0x24d   : > { %3094 = vmatmul.mubr.bf16.gmra.mrb[20].mxu1 %v1568_v1 }
 0x24e   : > { %3097 = vmatprep.mubr.bf16.mxu1 %v1569_v3 }
 0x250   : > { %3142 = vmatmul.mubr.bf16.gmra.mrb[20].mxu0 %v3448_v2 }
 0x251   : > { %3145 = vmatprep.mubr.bf16.mxu0 %v3449_v4 }
 0x255   : > { %3098 = vmatmul.mubr.bf16.gmra.mrb[24].mxu1 %v1570_v9 }
 0x256   : > { %3101 = vmatprep.mubr.bf16.mxu1 %v1571_v11 }
 0x258   : > { %3146 = vmatmul.mubr.bf16.gmra.mrb[24].mxu0 %v3450_v10 }
 0x259   : > { %3149 = vmatprep.mubr.bf16.mxu0 %v3451_v12 }
 0x25d   : > { %3102 = vmatmul.mubr.bf16.gmra.mrb[28].mxu1 %v1572_v15 }
 0x260   : > { %3150 = vmatmul.mubr.bf16.gmra.mrb[28].mxu0 %v3452_v16 }
 0x2f8   : > { %v3075_v17 = vpop.f32.mrb[0].mxu1 }
 0x2f9   : > { %v1671_v20 = vpop.f32.mrb[1].mxu1 }
 0x2fa   : > { %v3076_v23 = vpop.f32.mrb[2].mxu1 }
 0x2fb   : > { %v3123_v18 = vpop.f32.mrb[0].mxu0  ;;  %v1674_v26 = vpop.f32.mrb[3].mxu1 }
 0x2fc   : > { %v1985_v21 = vadd.f32 %v3123_v18, %v3075_v17  ;;  %v1976_v22 = vpop.f32.mrb[1].mxu0 }
 0x2fd   : > { %v1977_v24 = vadd.f32 %v1976_v22, %v1671_v20  ;;  %v3124_v25 = vpop.f32.mrb[2].mxu0 }
 0x2fe   : > { %v2112_v27 = vadd.f32 %v4037_v19, %v1985_v21  ;;  %v1988_v28 = vadd.f32 %v3124_v25, %v3076_v23  ;;  %v1979_v29 = vpop.f32.mrb[3].mxu0 }
 0x2ff   : > { %v2110_v30 = vadd.f32 %v4037_v19, %v1977_v24  ;;  %v1980_v31 = vadd.f32 %v1979_v29, %v1674_v26 }
 0x300   : > { %v2113_v32 = vadd.f32 %v4037_v19, %v1988_v28  ;;  %v2144_v34 = vmax.f32 %v2112_v27, 0.0  ;;  %v3079_v36 = vpop.f32.mrb[4].mxu1 }
 0x301   : > { %v2111_v33 = vadd.f32 %v4037_v19, %v1980_v31  ;;  %v2142_v37 = vmax.f32 %v2110_v30, 0.0  ;;  %v1687_v40 = vpop.f32.mrb[5].mxu1 }
 0x302   : > { %v2145_v35 = vmax.f32 %v2113_v32, 0.0  ;;  %v3080_v44 = vpop.f32.mrb[6].mxu1 }
 0x303   : > { %v2143_v38 = vmax.f32 %v2111_v33, 0.0  ;;  %v3127_v39 = vpop.f32.mrb[4].mxu0  ;;  %v1690_v48 = vpop.f32.mrb[7].mxu1 }
 0x304   : > { %v2698_v41 = vpack.c.bf16 %v2145_v35, %v2144_v34  ;;  %v2001_v42 = vadd.f32 %v3127_v39, %v3079_v36  ;;  %v1992_v43 = vpop.f32.mrb[5].mxu0 }
 0x305   : > { %v2693_v45 = vpack.c.bf16 %v2143_v38, %v2142_v37  ;;  %v1993_v46 = vadd.f32 %v1992_v43, %v1687_v40  ;;  %v3128_v47 = vpop.f32.mrb[6].mxu0 }
 0x306   : > { %2770 = vst [vmem:[%s3921_s25 + $0x8] sm:$0xff] %v2698_v41   ;;  %v2116_v49 = vadd.f32 %v4037_v19, %v2001_v42  ;;  %v2004_v50 = vadd.f32 %v3128_v47, %v3080_v44  ;;  %v1995_v51 = vpop.f32.mrb[7].mxu0 }
 0x307   : > { %2694 = vst [vmem:[%s3921_s25] sm:$0xff] %v2693_v45   ;;  %v2114_v52 = vadd.f32 %v4037_v19, %v1993_v46  ;;  %v1996_v53 = vadd.f32 %v1995_v51, %v1690_v48 }
 0x308   : > { %v2117_v54 = vadd.f32 %v4037_v19, %v2004_v50  ;;  %v2148_v56 = vmax.f32 %v2116_v49, 0.0  ;;  %v3083_v58 = vpop.f32.mrb[8].mxu1 }
 0x309   : > { %v2115_v55 = vadd.f32 %v4037_v19, %v1996_v53  ;;  %v2146_v59 = vmax.f32 %v2114_v52, 0.0  ;;  %v1703_v62 = vpop.f32.mrb[9].mxu1 }
 0x30a   : > { %v2149_v57 = vmax.f32 %v2117_v54, 0.0  ;;  %v3084_v2 = vpop.f32.mrb[10].mxu1 }
 0x30b   : > { %v2147_v60 = vmax.f32 %v2115_v55, 0.0  ;;  %v3131_v61 = vpop.f32.mrb[8].mxu0  ;;  %v1706_v6 = vpop.f32.mrb[11].mxu1 }
 0x30c   : > { %v2708_v63 = vpack.c.bf16 %v2149_v57, %v2148_v56  ;;  %v2017_v0 = vadd.f32 %v3131_v61, %v3083_v58  ;;  %v2008_v1 = vpop.f32.mrb[9].mxu0 }
 0x30d   : > { %v2703_v3 = vpack.c.bf16 %v2147_v60, %v2146_v59  ;;  %v2009_v4 = vadd.f32 %v2008_v1, %v1703_v62  ;;  %v3132_v5 = vpop.f32.mrb[10].mxu0 }
 0x30e   : > { %2772 = vst [vmem:[%s3921_s25 + $0x18] sm:$0xff] %v2708_v63   ;;  %v2120_v7 = vadd.f32 %v4037_v19, %v2017_v0  ;;  %v2020_v8 = vadd.f32 %v3132_v5, %v3084_v2  ;;  %v2011_v9 = vpop.f32.mrb[11].mxu0 }
 0x30f   : > { %2771 = vst [vmem:[%s3921_s25 + $0x10] sm:$0xff] %v2703_v3   ;;  %v2118_v10 = vadd.f32 %v4037_v19, %v2009_v4  ;;  %v2012_v11 = vadd.f32 %v2011_v9, %v1706_v6 }
 0x310   : > { %v2121_v12 = vadd.f32 %v4037_v19, %v2020_v8  ;;  %v2152_v14 = vmax.f32 %v2120_v7, 0.0  ;;  %v3087_v16 = vpop.f32.mrb[12].mxu1 }
 0x311   : > { %v2119_v13 = vadd.f32 %v4037_v19, %v2012_v11  ;;  %v2150_v17 = vmax.f32 %v2118_v10, 0.0  ;;  %v1719_v21 = vpop.f32.mrb[13].mxu1 }
 0x312   : > { %v2153_v15 = vmax.f32 %v2121_v12, 0.0  ;;  %v3088_v25 = vpop.f32.mrb[14].mxu1 }
 0x313   : > { %v2151_v18 = vmax.f32 %v2119_v13, 0.0  ;;  %v3135_v20 = vpop.f32.mrb[12].mxu0  ;;  %v1722_v29 = vpop.f32.mrb[15].mxu1 }
 0x314   : > { %v2718_v22 = vpack.c.bf16 %v2153_v15, %v2152_v14  ;;  %v2033_v23 = vadd.f32 %v3135_v20, %v3087_v16  ;;  %v2024_v24 = vpop.f32.mrb[13].mxu0 }
 0x315   : > { %v2713_v26 = vpack.c.bf16 %v2151_v18, %v2150_v17  ;;  %v2025_v27 = vadd.f32 %v2024_v24, %v1719_v21  ;;  %v3136_v28 = vpop.f32.mrb[14].mxu0 }
 0x316   : > { %2774 = vst [vmem:[%s3921_s25 + $0x28] sm:$0xff] %v2718_v22   ;;  %v2124_v30 = vadd.f32 %v4037_v19, %v2033_v23  ;;  %v2036_v31 = vadd.f32 %v3136_v28, %v3088_v25  ;;  %v2027_v32 = vpop.f32.mrb[15].mxu0 }
 0x317   : > { %2773 = vst [vmem:[%s3921_s25 + $0x20] sm:$0xff] %v2713_v26   ;;  %v2122_v33 = vadd.f32 %v4037_v19, %v2025_v27  ;;  %v2028_v34 = vadd.f32 %v2027_v32, %v1722_v29 }
 0x318   : > { %v2125_v35 = vadd.f32 %v4037_v19, %v2036_v31  ;;  %v2156_v37 = vmax.f32 %v2124_v30, 0.0  ;;  %v3091_v39 = vpop.f32.mrb[16].mxu1 }
 0x319   : > { %v2123_v36 = vadd.f32 %v4037_v19, %v2028_v34  ;;  %v2154_v40 = vmax.f32 %v2122_v33, 0.0  ;;  %v1735_v43 = vpop.f32.mrb[17].mxu1 }
 0x31a   : > { %v2157_v38 = vmax.f32 %v2125_v35, 0.0  ;;  %v3092_v47 = vpop.f32.mrb[18].mxu1 }
 0x31b   : > { %v2155_v41 = vmax.f32 %v2123_v36, 0.0  ;;  %v3139_v42 = vpop.f32.mrb[16].mxu0  ;;  %v1738_v51 = vpop.f32.mrb[19].mxu1 }
 0x31c   : > { %v2728_v44 = vpack.c.bf16 %v2157_v38, %v2156_v37  ;;  %v2049_v45 = vadd.f32 %v3139_v42, %v3091_v39  ;;  %v2040_v46 = vpop.f32.mrb[17].mxu0 }
 0x31d   : > { %v2723_v48 = vpack.c.bf16 %v2155_v41, %v2154_v40  ;;  %v2041_v49 = vadd.f32 %v2040_v46, %v1735_v43  ;;  %v3140_v50 = vpop.f32.mrb[18].mxu0 }
 0x31e   : > { %2776 = vst [vmem:[%s3921_s25 + $0x38] sm:$0xff] %v2728_v44   ;;  %v2128_v52 = vadd.f32 %v4037_v19, %v2049_v45  ;;  %v2052_v53 = vadd.f32 %v3140_v50, %v3092_v47  ;;  %v2043_v54 = vpop.f32.mrb[19].mxu0 }
 0x31f   : > { %2775 = vst [vmem:[%s3921_s25 + $0x30] sm:$0xff] %v2723_v48   ;;  %v2126_v55 = vadd.f32 %v4037_v19, %v2041_v49  ;;  %v2044_v56 = vadd.f32 %v2043_v54, %v1738_v51 }
 0x320   : > { %v2129_v57 = vadd.f32 %v4037_v19, %v2052_v53  ;;  %v2160_v59 = vmax.f32 %v2128_v52, 0.0  ;;  %v3095_v61 = vpop.f32.mrb[20].mxu1 }
 0x321   : > { %v2127_v58 = vadd.f32 %v4037_v19, %v2044_v56  ;;  %v2158_v62 = vmax.f32 %v2126_v55, 0.0  ;;  %v1751_v1 = vpop.f32.mrb[21].mxu1 }
 0x322   : > { %v2161_v60 = vmax.f32 %v2129_v57, 0.0  ;;  %v3096_v5 = vpop.f32.mrb[22].mxu1 }
 0x323   : > { %v2159_v63 = vmax.f32 %v2127_v58, 0.0  ;;  %v3143_v0 = vpop.f32.mrb[20].mxu0  ;;  %v1754_v9 = vpop.f32.mrb[23].mxu1 }
 0x324   : > { %v2738_v2 = vpack.c.bf16 %v2161_v60, %v2160_v59  ;;  %v2065_v3 = vadd.f32 %v3143_v0, %v3095_v61  ;;  %v2056_v4 = vpop.f32.mrb[21].mxu0 }
 0x325   : > { %v2733_v6 = vpack.c.bf16 %v2159_v63, %v2158_v62  ;;  %v2057_v7 = vadd.f32 %v2056_v4, %v1751_v1  ;;  %v3144_v8 = vpop.f32.mrb[22].mxu0 }
 0x326   : > { %2778 = vst [vmem:[%s3921_s25 + $0x48] sm:$0xff] %v2738_v2   ;;  %v2132_v10 = vadd.f32 %v4037_v19, %v2065_v3  ;;  %v2068_v11 = vadd.f32 %v3144_v8, %v3096_v5  ;;  %v2059_v12 = vpop.f32.mrb[23].mxu0 }
 0x327   : > { %2777 = vst [vmem:[%s3921_s25 + $0x40] sm:$0xff] %v2733_v6   ;;  %v2130_v13 = vadd.f32 %v4037_v19, %v2057_v7  ;;  %v2060_v14 = vadd.f32 %v2059_v12, %v1754_v9 }
 0x328   : > { %v2133_v15 = vadd.f32 %v4037_v19, %v2068_v11  ;;  %v2164_v17 = vmax.f32 %v2132_v10, 0.0  ;;  %v3099_v20 = vpop.f32.mrb[24].mxu1 }
 0x329   : > { %v2131_v16 = vadd.f32 %v4037_v19, %v2060_v14  ;;  %v2162_v21 = vmax.f32 %v2130_v13, 0.0  ;;  %v1767_v24 = vpop.f32.mrb[25].mxu1 }
 0x32a   : > { %v2165_v18 = vmax.f32 %v2133_v15, 0.0  ;;  %v3100_v28 = vpop.f32.mrb[26].mxu1 }
 0x32b   : > { %v2163_v22 = vmax.f32 %v2131_v16, 0.0  ;;  %v3147_v23 = vpop.f32.mrb[24].mxu0  ;;  %v1770_v32 = vpop.f32.mrb[27].mxu1 }
 0x32c   : > { %v2748_v25 = vpack.c.bf16 %v2165_v18, %v2164_v17  ;;  %v2081_v26 = vadd.f32 %v3147_v23, %v3099_v20  ;;  %v2072_v27 = vpop.f32.mrb[25].mxu0 }
 0x32d   : > { %v2743_v29 = vpack.c.bf16 %v2163_v22, %v2162_v21  ;;  %v2073_v30 = vadd.f32 %v2072_v27, %v1767_v24  ;;  %v3148_v31 = vpop.f32.mrb[26].mxu0 }
 0x32e   : > { %2780 = vst [vmem:[%s3921_s25 + $0x58] sm:$0xff] %v2748_v25   ;;  %v2136_v33 = vadd.f32 %v4037_v19, %v2081_v26  ;;  %v2084_v34 = vadd.f32 %v3148_v31, %v3100_v28  ;;  %v2075_v35 = vpop.f32.mrb[27].mxu0 }
 0x32f   : > { %2779 = vst [vmem:[%s3921_s25 + $0x50] sm:$0xff] %v2743_v29   ;;  %v2134_v36 = vadd.f32 %v4037_v19, %v2073_v30  ;;  %v2076_v37 = vadd.f32 %v2075_v35, %v1770_v32 }
 0x330   : > { %v2137_v38 = vadd.f32 %v4037_v19, %v2084_v34  ;;  %v2168_v40 = vmax.f32 %v2136_v33, 0.0  ;;  %v3103_v42 = vpop.f32.mrb[28].mxu1 }
 0x331   : > { %v2135_v39 = vadd.f32 %v4037_v19, %v2076_v37  ;;  %v2166_v43 = vmax.f32 %v2134_v36, 0.0  ;;  %v1783_v46 = vpop.f32.mrb[29].mxu1 }
 0x332   : > { %v2169_v41 = vmax.f32 %v2137_v38, 0.0  ;;  %v3104_v50 = vpop.f32.mrb[30].mxu1 }
 0x333   : > { %v2167_v44 = vmax.f32 %v2135_v39, 0.0  ;;  %v3151_v45 = vpop.f32.mrb[28].mxu0  ;;  %v1786_v54 = vpop.f32.mrb[31].mxu1 }
 0x334   : > { %v2758_v47 = vpack.c.bf16 %v2169_v41, %v2168_v40  ;;  %v2097_v48 = vadd.f32 %v3151_v45, %v3103_v42  ;;  %v2088_v49 = vpop.f32.mrb[29].mxu0 }
 0x335   : > { %v2753_v51 = vpack.c.bf16 %v2167_v44, %v2166_v43  ;;  %v2089_v52 = vadd.f32 %v2088_v49, %v1783_v46  ;;  %v3152_v53 = vpop.f32.mrb[30].mxu0 }
 0x336   : > { %2782 = vst [vmem:[%s3921_s25 + $0x68] sm:$0xff] %v2758_v47   ;;  %v2140_v55 = vadd.f32 %v4037_v19, %v2097_v48  ;;  %v2100_v56 = vadd.f32 %v3152_v53, %v3104_v50  ;;  %v2091_v57 = vpop.f32.mrb[31].mxu0 }
 0x337   : > { %2781 = vst [vmem:[%s3921_s25 + $0x60] sm:$0xff] %v2753_v51   ;;  %v2138_v58 = vadd.f32 %v4037_v19, %v2089_v52  ;;  %v2092_v59 = vadd.f32 %v2091_v57, %v1786_v54 }
 0x338   : > { %v2141_v60 = vadd.f32 %v4037_v19, %v2100_v56  ;;  %v2172_v62 = vmax.f32 %v2140_v55, 0.0 }
 0x339   : > { %v2139_v61 = vadd.f32 %v4037_v19, %v2092_v59  ;;  %v2170_v0 = vmax.f32 %v2138_v58, 0.0 }
 0x33a   : > { %v2173_v63 = vmax.f32 %v2141_v60, 0.0 }
 0x33b   : > { %v2171_v1 = vmax.f32 %v2139_v61, 0.0 }
 0x33c   : > { %v2768_v2 = vpack.c.bf16 %v2173_v63, %v2172_v62 }
 0x33d   : > { %v2763_v3 = vpack.c.bf16 %v2171_v1, %v2170_v0 }
 0x33e   : > { %2784 = vst [vmem:[%s3921_s25 + $0x78] sm:$0xff] %v2768_v2  }
 0x33f   : > { %2783 = vst [vmem:[%s3921_s25 + $0x70] sm:$0xff] %v2763_v3  }
 0x340 PF: > { %s4142_s24 = sld [smem:[#allocation13_spill]]  ;;  %s4143_s12 = smov %s4156_s21 }
 0x341   : > { %s4144_s21 = smov %s3617_s22  ;;  %s4145_s22 = smov %s3621_s23 }
 0x342   : > { %s4146_s23 = smov %s3859_s29  ;;  %s4148_s25 = smov %s3637_s27 }
 0x343   : > { %s4150_s27 = smov %s4143_s12 }
 0x346   : > { %s21_s28 = sadd.s32 1, %s4142_s24   ;;  %s4147_s24 = smov %s3633_s26 }
 0x347   : > { %p18_p0 = scmp.ge.s32.totalorder %s21_s28, 10   ;;  %s4149_s26 = smov %s4152_s3 }
 0x349   :  { %20 = sbr.rel (!%p18_p0) target bundleno = 11 (0xb), region = 110 }
 0x350   :  { %2356 = vsyncpa [#allocation4], 1 }
 0x351   :  { %2358 = vsyncpa [#allocation4 + $0x1], 1 }
 0x352   :  { %2359 = vsyncpa [#allocation6], 1 }
 0x353   :  { %2360 = vsyncpa [#allocation9], 1 }

// kernel: sage_forward.3
= control target key start
LH: loop header
LB: loop body
LE: loop exit
PB: predicated region body
PF: predicated region fallthrough
CT: control target
= control target key end

     0   :  { %s4243_s0 = inlined_call_operand.vmem [shape: bf16[1024,1024], index: 0, kind: input, shape index: {}]   ;;  %s4244_s1 = inlined_call_operand.vmem [shape: bf16[1024,128], index: 1, kind: input, shape index: {}, may-alias: {1,2}]   ;;  %s4245_s2 = inlined_call_operand.vmem [shape: bf16[1024,128], index: 2, kind: input, shape index: {}, may-alias: {1,2}]   ;;  %s4246_s3 = inlined_call_operand.vmem [shape: bf16[128,128], index: 3, kind: input, shape index: {}]   ;;  %s4247_s4 = inlined_call_operand.vmem [shape: bf16[128,128], index: 4, kind: input, shape index: {}]   ;;  %s4248_s5 = inlined_call_operand.vmem [shape: f32[1,128], index: 5, kind: input, shape index: {}]   ;;  %s4249_s6 = inlined_call_operand.vmem [shape: bf16[128,128], index: 6, kind: input, shape index: {}]   ;;  %s4250_s7 = inlined_call_operand.vmem [shape: f32[1,128], index: 7, kind: input, shape index: {}]   ;;  %s4251_s8 = inlined_call_operand.vmem [shape: f32[1024,128], index: 8, kind: output, shape index: {}]  }
   0x1   :  { %4253 = sst [smem:[#allocation5_spill]] %s4243_s0 }
   0x2   :  { %s3668_s27 = smov 0   ;;  %s3670_s28 = smov 0  }
   0x3   :  { %s3672_s29 = smov 0   ;;  %s3674_s30 = smov 0  }
   0x4   :  { %s3676_s9 = smov 0   ;;  %s3678_s10 = smov 0  }
   0x5   :  { %s3680_s11 = smov 0  }
   0x6 LB: > { %s27_s12 = sadd.s32 1, %s3612_s9  ;;  %s30_s13 = sadd.s32 1, %s3616_s10  ;;  %s3620_s11 = sphi %s3680_s11, %s18_s11   ;;  %s3616_s10 = sphi %s3678_s10, %s4262_s10   ;;  %s3612_s9 = sphi %s3676_s9, %s4261_s9   ;;  %s3608_s30 = sphi %s3674_s30, %s4260_s30   ;;  %s3604_s29 = sphi %s3672_s29, %s4259_s29   ;;  %s3600_s28 = sphi %s3670_s28, %s4258_s28   ;;  %s3596_s27 = sphi %s3668_s27, %s4257_s27  }
   0x7   : > { %p28_p0 = scmp.ge.s32.totalorder %s27_s12, 2  ;;  %p46_p1 = scmp.ne.s32.totalorder %s3600_s28, %s3596_s27 }
   0x8   : > { %p47_p2 = scmp.eq.s32.totalorder %s3620_s11, 0  ;;  %s39_s17 = sadd.s32 1, %s3600_s28 }
   0x9   : > { %s4264_s12 = smov (%p28_p0, %s27_s12), 0  ;;  %s4266_s13 = smov (!%p28_p0, %s30_s13), %s3616_s10 }
   0xa   : > { %p48_p3 = por %p47_p2, %p46_p1  ;;  %p32_p4 = scmp.ge.s32.totalorder %s4266_s13, 4 }
   0xb   : > { %s35_s14 = ssub.s32 %s3612_s9, %s4264_s12  ;;  %p2696_p6 = scmp.ge.s32.totalorder %s3620_s11, 8 }
   0xc   : > { %s4268_s13 = smov (%p32_p4, %s4266_s13), 0 }
   0xd   : > { %4254 = sst [smem:[#allocation4_spill]] %s4268_s13  ;;  %s34_s15 = ssub.s32 %s3616_s10, %s4268_s13 }
   0xe   : > { %s36_s16 = sor.u32 %s35_s14, %s34_s15  ;;  %270 = sbr.rel (%p2696_p6) target bundleno = 63 (0x3f), region = 36 }
   0xf   : > { %p37_p5 = scmp.eq.s32.totalorder %s36_s16, 0 }
  0x11   : > { %s3719_s18 = scalar_select %p37_p5, %s3600_s28, %s39_s17  }
  0x15   : > { %273 = sbr.rel (!%p48_p3) target bundleno = 63 (0x3f), region = 40  ;;  %s275_s19 = sand.u32 (%p48_p3), 1, %s3600_s28  }
  0x16   : > { %s2699_s20 = sshll.u32 (%p48_p3), %s3612_s9, 2  ;;  %s2697_s21 = sshll.u32 (%p48_p3), %s275_s19, 9 }
  0x17   : > { %s2852_s22 = sshll.u32 (%p48_p3), %s3616_s10, 8  ;;  %s4255_s0 = sld [smem:[#allocation5_spill]] (%p48_p3) }
  0x18   : > { %s281_s23 = sadd.s32 (%p48_p3), %s2852_s22, %s2699_s20  ;;  %s3733_s15 = scalar_lea.vmem (%p48_p3), [#allocation3], %s2697_s21 }
  0x19   : > { %s2701_s24 = sshll.u32 (%p48_p3), %s281_s23, 2 }
  0x1d   : > { %s3728_s14 = scalar_lea.vmem %s4255_s0, %s2701_s24 }
  0x1e   : > { %v296_v0 = vld [vmem:[%s3728_s14] sm:$0xff]  ;;  %v298_v1 = vld [vmem:[%s3728_s14 + $0x8] sm:$0xff] }
  0x1f   : > { %v300_v2 = vld [vmem:[%s3728_s14 + $0x20] sm:$0xff]  ;;  %297 = vst [vmem:[%s3733_s15] sm:$0xff] %v296_v0  ;;  %299 = vst [vmem:[%s3733_s15 + $0x8] sm:$0xff] %v298_v1  ;;  %v302_v3 = vld [vmem:[%s3728_s14 + $0x28] sm:$0xff] }
  0x20   : > { %301 = vst [vmem:[%s3733_s15 + $0x10] sm:$0xff] %v300_v2  ;;  %v304_v4 = vld [vmem:[%s3728_s14 + $0x40] sm:$0xff]  ;;  %v306_v5 = vld [vmem:[%s3728_s14 + $0x48] sm:$0xff]  ;;  %303 = vst [vmem:[%s3733_s15 + $0x18] sm:$0xff] %v302_v3 }
  0x21   : > { %305 = vst [vmem:[%s3733_s15 + $0x20] sm:$0xff] %v304_v4  ;;  %307 = vst [vmem:[%s3733_s15 + $0x28] sm:$0xff] %v306_v5  ;;  %v308_v6 = vld [vmem:[%s3728_s14 + $0x60] sm:$0xff]  ;;  %v310_v7 = vld [vmem:[%s3728_s14 + $0x68] sm:$0xff] }
  0x22   : > { %v312_v8 = vld [vmem:[%s3728_s14 + $0x80] sm:$0xff]  ;;  %309 = vst [vmem:[%s3733_s15 + $0x30] sm:$0xff] %v308_v6  ;;  %311 = vst [vmem:[%s3733_s15 + $0x38] sm:$0xff] %v310_v7  ;;  %v314_v9 = vld [vmem:[%s3728_s14 + $0x88] sm:$0xff] }
  0x23   : > { %313 = vst [vmem:[%s3733_s15 + $0x40] sm:$0xff] %v312_v8  ;;  %v316_v10 = vld [vmem:[%s3728_s14 + $0xa0] sm:$0xff]  ;;  %v318_v11 = vld [vmem:[%s3728_s14 + $0xa8] sm:$0xff]  ;;  %315 = vst [vmem:[%s3733_s15 + $0x48] sm:$0xff] %v314_v9 }
  0x24   : > { %317 = vst [vmem:[%s3733_s15 + $0x50] sm:$0xff] %v316_v10  ;;  %319 = vst [vmem:[%s3733_s15 + $0x58] sm:$0xff] %v318_v11  ;;  %v320_v12 = vld [vmem:[%s3728_s14 + $0xc0] sm:$0xff]  ;;  %v322_v13 = vld [vmem:[%s3728_s14 + $0xc8] sm:$0xff] }
  0x25   : > { %v324_v14 = vld [vmem:[%s3728_s14 + $0xe0] sm:$0xff]  ;;  %321 = vst [vmem:[%s3733_s15 + $0x60] sm:$0xff] %v320_v12  ;;  %323 = vst [vmem:[%s3733_s15 + $0x68] sm:$0xff] %v322_v13  ;;  %v326_v15 = vld [vmem:[%s3728_s14 + $0xe8] sm:$0xff] }
  0x26   : > { %325 = vst [vmem:[%s3733_s15 + $0x70] sm:$0xff] %v324_v14  ;;  %v328_v16 = vld [vmem:[%s3728_s14 + $0x100] sm:$0xff]  ;;  %v330_v17 = vld [vmem:[%s3728_s14 + $0x108] sm:$0xff]  ;;  %327 = vst [vmem:[%s3733_s15 + $0x78] sm:$0xff] %v326_v15 }
  0x27   : > { %329 = vst [vmem:[%s3733_s15 + $0x80] sm:$0xff] %v328_v16  ;;  %331 = vst [vmem:[%s3733_s15 + $0x88] sm:$0xff] %v330_v17  ;;  %v332_v18 = vld [vmem:[%s3728_s14 + $0x120] sm:$0xff]  ;;  %v334_v19 = vld [vmem:[%s3728_s14 + $0x128] sm:$0xff] }
  0x28   : > { %v336_v20 = vld [vmem:[%s3728_s14 + $0x140] sm:$0xff]  ;;  %333 = vst [vmem:[%s3733_s15 + $0x90] sm:$0xff] %v332_v18  ;;  %335 = vst [vmem:[%s3733_s15 + $0x98] sm:$0xff] %v334_v19  ;;  %v338_v21 = vld [vmem:[%s3728_s14 + $0x148] sm:$0xff] }
  0x29   : > { %337 = vst [vmem:[%s3733_s15 + $0xa0] sm:$0xff] %v336_v20  ;;  %v340_v22 = vld [vmem:[%s3728_s14 + $0x160] sm:$0xff]  ;;  %v342_v23 = vld [vmem:[%s3728_s14 + $0x168] sm:$0xff]  ;;  %339 = vst [vmem:[%s3733_s15 + $0xa8] sm:$0xff] %v338_v21 }
  0x2a   : > { %341 = vst [vmem:[%s3733_s15 + $0xb0] sm:$0xff] %v340_v22  ;;  %343 = vst [vmem:[%s3733_s15 + $0xb8] sm:$0xff] %v342_v23  ;;  %v344_v24 = vld [vmem:[%s3728_s14 + $0x180] sm:$0xff]  ;;  %v346_v25 = vld [vmem:[%s3728_s14 + $0x188] sm:$0xff] }
  0x2b   : > { %v348_v26 = vld [vmem:[%s3728_s14 + $0x1a0] sm:$0xff]  ;;  %345 = vst [vmem:[%s3733_s15 + $0xc0] sm:$0xff] %v344_v24  ;;  %347 = vst [vmem:[%s3733_s15 + $0xc8] sm:$0xff] %v346_v25  ;;  %v350_v27 = vld [vmem:[%s3728_s14 + $0x1a8] sm:$0xff] }
  0x2c   : > { %349 = vst [vmem:[%s3733_s15 + $0xd0] sm:$0xff] %v348_v26  ;;  %v352_v28 = vld [vmem:[%s3728_s14 + $0x1c0] sm:$0xff]  ;;  %v354_v29 = vld [vmem:[%s3728_s14 + $0x1c8] sm:$0xff]  ;;  %351 = vst [vmem:[%s3733_s15 + $0xd8] sm:$0xff] %v350_v27 }
  0x2d   : > { %353 = vst [vmem:[%s3733_s15 + $0xe0] sm:$0xff] %v352_v28  ;;  %355 = vst [vmem:[%s3733_s15 + $0xe8] sm:$0xff] %v354_v29  ;;  %v356_v30 = vld [vmem:[%s3728_s14 + $0x1e0] sm:$0xff]  ;;  %v358_v31 = vld [vmem:[%s3728_s14 + $0x1e8] sm:$0xff] }
  0x2e   : > { %v360_v32 = vld [vmem:[%s3728_s14 + $0x200] sm:$0xff]  ;;  %357 = vst [vmem:[%s3733_s15 + $0xf0] sm:$0xff] %v356_v30  ;;  %359 = vst [vmem:[%s3733_s15 + $0xf8] sm:$0xff] %v358_v31  ;;  %v362_v33 = vld [vmem:[%s3728_s14 + $0x208] sm:$0xff] }
  0x2f   : > { %361 = vst [vmem:[%s3733_s15 + $0x100] sm:$0xff] %v360_v32  ;;  %v364_v34 = vld [vmem:[%s3728_s14 + $0x220] sm:$0xff]  ;;  %v366_v35 = vld [vmem:[%s3728_s14 + $0x228] sm:$0xff]  ;;  %363 = vst [vmem:[%s3733_s15 + $0x108] sm:$0xff] %v362_v33 }
  0x30   : > { %365 = vst [vmem:[%s3733_s15 + $0x110] sm:$0xff] %v364_v34  ;;  %367 = vst [vmem:[%s3733_s15 + $0x118] sm:$0xff] %v366_v35  ;;  %v368_v36 = vld [vmem:[%s3728_s14 + $0x240] sm:$0xff]  ;;  %v370_v37 = vld [vmem:[%s3728_s14 + $0x248] sm:$0xff] }
  0x31   : > { %v372_v38 = vld [vmem:[%s3728_s14 + $0x260] sm:$0xff]  ;;  %369 = vst [vmem:[%s3733_s15 + $0x120] sm:$0xff] %v368_v36  ;;  %371 = vst [vmem:[%s3733_s15 + $0x128] sm:$0xff] %v370_v37  ;;  %v374_v39 = vld [vmem:[%s3728_s14 + $0x268] sm:$0xff] }
  0x32   : > { %373 = vst [vmem:[%s3733_s15 + $0x130] sm:$0xff] %v372_v38  ;;  %v376_v40 = vld [vmem:[%s3728_s14 + $0x280] sm:$0xff]  ;;  %v378_v41 = vld [vmem:[%s3728_s14 + $0x288] sm:$0xff]  ;;  %375 = vst [vmem:[%s3733_s15 + $0x138] sm:$0xff] %v374_v39 }
  0x33   : > { %377 = vst [vmem:[%s3733_s15 + $0x140] sm:$0xff] %v376_v40  ;;  %379 = vst [vmem:[%s3733_s15 + $0x148] sm:$0xff] %v378_v41  ;;  %v380_v42 = vld [vmem:[%s3728_s14 + $0x2a0] sm:$0xff]  ;;  %v382_v43 = vld [vmem:[%s3728_s14 + $0x2a8] sm:$0xff] }
  0x34   : > { %v384_v44 = vld [vmem:[%s3728_s14 + $0x2c0] sm:$0xff]  ;;  %381 = vst [vmem:[%s3733_s15 + $0x150] sm:$0xff] %v380_v42  ;;  %383 = vst [vmem:[%s3733_s15 + $0x158] sm:$0xff] %v382_v43  ;;  %v386_v45 = vld [vmem:[%s3728_s14 + $0x2c8] sm:$0xff] }
  0x35   : > { %385 = vst [vmem:[%s3733_s15 + $0x160] sm:$0xff] %v384_v44  ;;  %v388_v46 = vld [vmem:[%s3728_s14 + $0x2e0] sm:$0xff]  ;;  %v390_v47 = vld [vmem:[%s3728_s14 + $0x2e8] sm:$0xff]  ;;  %387 = vst [vmem:[%s3733_s15 + $0x168] sm:$0xff] %v386_v45 }
  0x36   : > { %389 = vst [vmem:[%s3733_s15 + $0x170] sm:$0xff] %v388_v46  ;;  %391 = vst [vmem:[%s3733_s15 + $0x178] sm:$0xff] %v390_v47  ;;  %v392_v48 = vld [vmem:[%s3728_s14 + $0x300] sm:$0xff]  ;;  %v394_v49 = vld [vmem:[%s3728_s14 + $0x308] sm:$0xff] }
  0x37   : > { %v396_v50 = vld [vmem:[%s3728_s14 + $0x320] sm:$0xff]  ;;  %393 = vst [vmem:[%s3733_s15 + $0x180] sm:$0xff] %v392_v48  ;;  %395 = vst [vmem:[%s3733_s15 + $0x188] sm:$0xff] %v394_v49  ;;  %v398_v51 = vld [vmem:[%s3728_s14 + $0x328] sm:$0xff] }
  0x38   : > { %397 = vst [vmem:[%s3733_s15 + $0x190] sm:$0xff] %v396_v50  ;;  %v400_v52 = vld [vmem:[%s3728_s14 + $0x340] sm:$0xff]  ;;  %v402_v53 = vld [vmem:[%s3728_s14 + $0x348] sm:$0xff]  ;;  %399 = vst [vmem:[%s3733_s15 + $0x198] sm:$0xff] %v398_v51 }
  0x39   : > { %401 = vst [vmem:[%s3733_s15 + $0x1a0] sm:$0xff] %v400_v52  ;;  %403 = vst [vmem:[%s3733_s15 + $0x1a8] sm:$0xff] %v402_v53  ;;  %v404_v54 = vld [vmem:[%s3728_s14 + $0x360] sm:$0xff]  ;;  %v406_v55 = vld [vmem:[%s3728_s14 + $0x368] sm:$0xff] }
  0x3a   : > { %v408_v56 = vld [vmem:[%s3728_s14 + $0x380] sm:$0xff]  ;;  %405 = vst [vmem:[%s3733_s15 + $0x1b0] sm:$0xff] %v404_v54  ;;  %407 = vst [vmem:[%s3733_s15 + $0x1b8] sm:$0xff] %v406_v55  ;;  %v410_v57 = vld [vmem:[%s3728_s14 + $0x388] sm:$0xff] }
  0x3b   : > { %409 = vst [vmem:[%s3733_s15 + $0x1c0] sm:$0xff] %v408_v56  ;;  %v412_v58 = vld [vmem:[%s3728_s14 + $0x3a0] sm:$0xff]  ;;  %v414_v59 = vld [vmem:[%s3728_s14 + $0x3a8] sm:$0xff]  ;;  %411 = vst [vmem:[%s3733_s15 + $0x1c8] sm:$0xff] %v410_v57 }
  0x3c   : > { %413 = vst [vmem:[%s3733_s15 + $0x1d0] sm:$0xff] %v412_v58  ;;  %415 = vst [vmem:[%s3733_s15 + $0x1d8] sm:$0xff] %v414_v59  ;;  %v416_v60 = vld [vmem:[%s3728_s14 + $0x3c0] sm:$0xff]  ;;  %v418_v61 = vld [vmem:[%s3728_s14 + $0x3c8] sm:$0xff] }
  0x3d   : > { %v420_v62 = vld [vmem:[%s3728_s14 + $0x3e0] sm:$0xff]  ;;  %417 = vst [vmem:[%s3733_s15 + $0x1e0] sm:$0xff] %v416_v60  ;;  %419 = vst [vmem:[%s3733_s15 + $0x1e8] sm:$0xff] %v418_v61  ;;  %v422_v63 = vld [vmem:[%s3728_s14 + $0x3e8] sm:$0xff] }
  0x3e   : > { %421 = vst [vmem:[%s3733_s15 + $0x1f0] sm:$0xff] %v420_v62  ;;  %423 = vst [vmem:[%s3733_s15 + $0x1f8] sm:$0xff] %v422_v63 }
  0x3f PF: > { %p2702_p7 = scmp.ge.s32.totalorder %s3620_s11, 1  ;;  %p446_p8 = scmp.lt.s32.totalorder %s3620_s11, 9 }
  0x41   : > { %p447_p9 = pnand %p2702_p7, %p446_p8 }
  0x42   : > { %s453_s16 = sand.u32 (!%p447_p9), 1, %s3596_s27   ;;  %s2704_s17 = sshll.u32 (!%p447_p9), %s3604_s29, 6 }
  0x43   : > { %450 = sbr.rel (%p447_p9) target bundleno = 1000 (0x3e8), region = 71  ;;  %s2703_s19 = sshll.u32 (!%p447_p9), %s453_s16, 9 }
  0x44   : > { %p499_p10 = scmp.lt.s32.totalorder (!%p447_p9), %s2704_s17, 127  ;;  %s2706_s20 = sshll.u32 (!%p447_p9), %s3608_s30, 5 }
  0x45   : > { %p505_p11 = scmp.lt.s32.totalorder (!%p447_p9), %s2706_s20, 127  ;;  %s3880_s13 = scalar_lea.vmem (!%p447_p9), [#allocation3], %s2703_s19 }
  0x46   : > { %p2710_p12 = scmp.ne.s32.totalorder (!%p447_p9), %s3604_s29, 0 }
  0x4a   : > { %s4270_s17 = smov (!%p499_p10, %s2704_s17), 127  ;;  %s4272_s20 = smov (!%p505_p11, %s2706_s20), 127 }
  0x4b   : > { %s2705_s21 = sshll.u32 %s4270_s17, 2  ;;  %s2707_s25 = sshll.u32 %s4272_s20, 2  ;;  %v3622_v0 = vmov (!%p2710_p12), 0.0  }
  0x4c   : > { %s3868_s24 = scalar_lea.vmem %s4244_s1, %s2705_s21  ;;  %s2709_s26 = sshll.u32 %s4272_s20, 3  ;;  %521 = vst [vmem:[#allocation2] sm:$0xff] (!%p2710_p12), %v3622_v0  ;;  %522 = vst [vmem:[#allocation2 + $0x8] sm:$0xff] (!%p2710_p12), %v3622_v0 }
  0x4d   : > { %s3873_s0 = scalar_lea.vmem %s4245_s2, %s2707_s25  ;;  %s3878_s30 = scalar_lea.vmem %s4251_s8, %s2709_s26  ;;  %523 = vst [vmem:[#allocation2 + $0x10] sm:$0xff] (!%p2710_p12), %v3622_v0  ;;  %524 = vst [vmem:[#allocation2 + $0x18] sm:$0xff] (!%p2710_p12), %v3622_v0 }
  0x4e   : > { %520 = sbr.rel (%p2710_p12) target bundleno = 92 (0x5c), region = 79  ;;  %525 = vst [vmem:[#allocation2 + $0x20] sm:$0xff] (!%p2710_p12), %v3622_v0  ;;  %526 = vst [vmem:[#allocation2 + $0x28] sm:$0xff] (!%p2710_p12), %v3622_v0 }
  0x4f   : > { %527 = vst [vmem:[#allocation2 + $0x30] sm:$0xff] (!%p2710_p12), %v3622_v0  ;;  %528 = vst [vmem:[#allocation2 + $0x38] sm:$0xff] (!%p2710_p12), %v3622_v0 }
  0x50   : > { %529 = vst [vmem:[#allocation2 + $0x40] sm:$0xff] (!%p2710_p12), %v3622_v0  ;;  %530 = vst [vmem:[#allocation2 + $0x48] sm:$0xff] (!%p2710_p12), %v3622_v0 }
  0x51   : > { %531 = vst [vmem:[#allocation2 + $0x50] sm:$0xff] (!%p2710_p12), %v3622_v0  ;;  %532 = vst [vmem:[#allocation2 + $0x58] sm:$0xff] (!%p2710_p12), %v3622_v0 }
  0x52   : > { %533 = vst [vmem:[#allocation2 + $0x60] sm:$0xff] (!%p2710_p12), %v3622_v0  ;;  %534 = vst [vmem:[#allocation2 + $0x68] sm:$0xff] (!%p2710_p12), %v3622_v0 }
  0x53   : > { %535 = vst [vmem:[#allocation2 + $0x70] sm:$0xff] (!%p2710_p12), %v3622_v0  ;;  %536 = vst [vmem:[#allocation2 + $0x78] sm:$0xff] (!%p2710_p12), %v3622_v0 }
  0x54   : > { %537 = vst [vmem:[#allocation2 + $0x80] sm:$0xff] (!%p2710_p12), %v3622_v0  ;;  %538 = vst [vmem:[#allocation2 + $0x88] sm:$0xff] (!%p2710_p12), %v3622_v0 }
  0x55   : > { %539 = vst [vmem:[#allocation2 + $0x90] sm:$0xff] %v3622_v0  ;;  %540 = vst [vmem:[#allocation2 + $0x98] sm:$0xff] %v3622_v0 }
  0x56   : > { %541 = vst [vmem:[#allocation2 + $0xa0] sm:$0xff] %v3622_v0  ;;  %542 = vst [vmem:[#allocation2 + $0xa8] sm:$0xff] %v3622_v0 }
  0x57   : > { %543 = vst [vmem:[#allocation2 + $0xb0] sm:$0xff] %v3622_v0  ;;  %544 = vst [vmem:[#allocation2 + $0xb8] sm:$0xff] %v3622_v0 }
  0x58   : > { %545 = vst [vmem:[#allocation2 + $0xc0] sm:$0xff] %v3622_v0  ;;  %546 = vst [vmem:[#allocation2 + $0xc8] sm:$0xff] %v3622_v0 }
  0x59   : > { %547 = vst [vmem:[#allocation2 + $0xd0] sm:$0xff] %v3622_v0  ;;  %548 = vst [vmem:[#allocation2 + $0xd8] sm:$0xff] %v3622_v0 }
  0x5a   : > { %549 = vst [vmem:[#allocation2 + $0xe0] sm:$0xff] %v3622_v0  ;;  %550 = vst [vmem:[#allocation2 + $0xe8] sm:$0xff] %v3622_v0 }
  0x5b   : > { %551 = vst [vmem:[#allocation2 + $0xf0] sm:$0xff] %v3622_v0  ;;  %552 = vst [vmem:[#allocation2 + $0xf8] sm:$0xff] %v3622_v0 }
  0x5c PF: > { %v3398_v1 = vld [vmem:[%s3868_s24 + $0x40] sm:$0xff]   ;;  %v3402_v5 = vld [vmem:[%s3868_s24 + $0x48] sm:$0xff]   ;;  %v3406_v9 = vld [vmem:[%s3868_s24 + $0x50] sm:$0xff]   ;;  %p2807_p13 = scmp.ne.s32.totalorder %s3604_s29, 1 }
  0x5d   : > { %v3399_v2 = vld [vmem:[%s3868_s24 + $0xc0] sm:$0xff]   ;;  %2853 = vmatprep.subr.bf16.mxu0 %v3398_v1  ;;  %v3403_v6 = vld [vmem:[%s3868_s24 + $0xc8] sm:$0xff]   ;;  %v3407_v10 = vld [vmem:[%s3868_s24 + $0xd0] sm:$0xff]  }
  0x5e   : > { %v3400_v3 = vld [vmem:[%s3868_s24] sm:$0xff]   ;;  %2965 = vmatprep.subr.bf16.mxu1 %v3399_v2  ;;  %v3404_v7 = vld [vmem:[%s3868_s24 + $0x8] sm:$0xff]   ;;  %v3408_v11 = vld [vmem:[%s3868_s24 + $0x10] sm:$0xff]  }
  0x5f   : > { %v3401_v4 = vld [vmem:[%s3868_s24 + $0x80] sm:$0xff]   ;;  %2854 = vmatpush3.bf16.msra.mxu0 %v3400_v3  ;;  %v3405_v8 = vld [vmem:[%s3868_s24 + $0x88] sm:$0xff]   ;;  %v3409_v12 = vld [vmem:[%s3868_s24 + $0x90] sm:$0xff]  }
  0x60   : > { %2966 = vmatpush3.bf16.msra.mxu1 %v3401_v4  ;;  %2855 = vmatprep.subr.bf16.mxu0 %v3402_v5  ;;  %v3410_v13 = vld [vmem:[%s3868_s24 + $0x58] sm:$0xff]   ;;  %v3414_v17 = vld [vmem:[%s3868_s24 + $0x60] sm:$0xff]   ;;  %v3418_v21 = vld [vmem:[%s3868_s24 + $0x68] sm:$0xff]  }
  0x61   : > { %2967 = vmatprep.subr.bf16.mxu1 %v3403_v6  ;;  %v3411_v14 = vld [vmem:[%s3868_s24 + $0xd8] sm:$0xff]   ;;  %v3415_v18 = vld [vmem:[%s3868_s24 + $0xe0] sm:$0xff]   ;;  %v3419_v22 = vld [vmem:[%s3868_s24 + $0xe8] sm:$0xff]  }
  0x62   : > { %v3412_v15 = vld [vmem:[%s3868_s24 + $0x18] sm:$0xff]   ;;  %v3416_v19 = vld [vmem:[%s3868_s24 + $0x20] sm:$0xff]   ;;  %v3420_v23 = vld [vmem:[%s3868_s24 + $0x28] sm:$0xff]  }
  0x63   : > { %2856 = vmatpush3.bf16.msra.mxu0 %v3404_v7  ;;  %v3413_v16 = vld [vmem:[%s3868_s24 + $0x98] sm:$0xff]   ;;  %v3417_v20 = vld [vmem:[%s3868_s24 + $0xa0] sm:$0xff]   ;;  %v3421_v24 = vld [vmem:[%s3868_s24 + $0xa8] sm:$0xff]  }
  0x64   : > { %2968 = vmatpush3.bf16.msra.mxu1 %v3405_v8  ;;  %2857 = vmatprep.subr.bf16.mxu0 %v3406_v9  ;;  %v3422_v25 = vld [vmem:[%s3868_s24 + $0x70] sm:$0xff]   ;;  %v3426_v29 = vld [vmem:[%s3868_s24 + $0x78] sm:$0xff]  }
  0x65   : > { %2969 = vmatprep.subr.bf16.mxu1 %v3407_v10  ;;  %v3423_v26 = vld [vmem:[%s3868_s24 + $0xf0] sm:$0xff]   ;;  %v3427_v30 = vld [vmem:[%s3868_s24 + $0xf8] sm:$0xff]  }
  0x66   : > { %v3424_v27 = vld [vmem:[%s3868_s24 + $0x30] sm:$0xff]   ;;  %v3428_v31 = vld [vmem:[%s3868_s24 + $0x38] sm:$0xff]  }
  0x67   : > { %2858 = vmatpush3.bf16.msra.mxu0 %v3408_v11  ;;  %v3425_v28 = vld [vmem:[%s3868_s24 + $0xb0] sm:$0xff]   ;;  %v3429_v32 = vld [vmem:[%s3868_s24 + $0xb8] sm:$0xff]  }
  0x68   : > { %2970 = vmatpush3.bf16.msra.mxu1 %v3409_v12  ;;  %2859 = vmatprep.subr.bf16.mxu0 %v3410_v13  ;;  %v3430_v33 = vld [vmem:[%s3880_s13] ss:$16 sps:$4 sm:$0xff]   ;;  %v3432_v34 = vld [vmem:[%s3880_s13 + $0x4] ss:$16 sps:$4 sm:$0xff]   ;;  %v3433_v35 = vld [vmem:[%s3880_s13 + $0x8] ss:$16 sps:$4 sm:$0xff]  }
  0x69   : > { %2971 = vmatprep.subr.bf16.mxu1 %v3411_v14  ;;  %v3435_v36 = vld [vmem:[%s3880_s13 + $0xc] ss:$16 sps:$4 sm:$0xff]   ;;  %1257 = vmatprep.mubr.bf16.mxu0 %v3432_v34  ;;  %v3436_v37 = vld [vmem:[%s3880_s13 + $0x24] ss:$16 sps:$4 sm:$0xff]   ;;  %v3440_v39 = vld [vmem:[%s3880_s13 + $0x20] ss:$16 sps:$4 sm:$0xff]  }
  0x6a   : > { %1418 = vmatprep.mubr.bf16.mxu1 %v3435_v36  ;;  %v3438_v38 = vld [vmem:[%s3880_s13 + $0x2c] ss:$16 sps:$4 sm:$0xff]   ;;  %v3441_v40 = vld [vmem:[%s3880_s13 + $0x28] ss:$16 sps:$4 sm:$0xff]   ;;  %v3442_v41 = vld [vmem:[%s3880_s13 + $0x44] ss:$16 sps:$4 sm:$0xff]  }
  0x6b   : > { %2860 = vmatpush3.bf16.msra.mxu0 %v3412_v15  ;;  %v3444_v42 = vld [vmem:[%s3880_s13 + $0x4c] ss:$16 sps:$4 sm:$0xff]   ;;  %v3446_v43 = vld [vmem:[%s3880_s13 + $0x40] ss:$16 sps:$4 sm:$0xff]   ;;  %v3447_v44 = vld [vmem:[%s3880_s13 + $0x48] ss:$16 sps:$4 sm:$0xff]  }
  0x6c   : > { %2972 = vmatpush3.bf16.msra.mxu1 %v3413_v16  ;;  %2861 = vmatprep.subr.bf16.mxu0 %v3414_v17  ;;  %v3448_v45 = vld [vmem:[%s3880_s13 + $0x64] ss:$16 sps:$4 sm:$0xff]   ;;  %v3450_v46 = vld [vmem:[%s3880_s13 + $0x6c] ss:$16 sps:$4 sm:$0xff]   ;;  %v3452_v47 = vld [vmem:[%s3880_s13 + $0x60] ss:$16 sps:$4 sm:$0xff]  }
  0x6d   : > { %2973 = vmatprep.subr.bf16.mxu1 %v3415_v18  ;;  %v3453_v48 = vld [vmem:[%s3880_s13 + $0x68] ss:$16 sps:$4 sm:$0xff]   ;;  %v3454_v49 = vld [vmem:[%s3880_s13 + $0x84] ss:$16 sps:$4 sm:$0xff]   ;;  %v3456_v50 = vld [vmem:[%s3880_s13 + $0x8c] ss:$16 sps:$4 sm:$0xff]  }
  0x6e   : > { %v3458_v51 = vld [vmem:[%s3880_s13 + $0x80] ss:$16 sps:$4 sm:$0xff]   ;;  %v3459_v52 = vld [vmem:[%s3880_s13 + $0x88] ss:$16 sps:$4 sm:$0xff]   ;;  %v3460_v53 = vld [vmem:[%s3880_s13 + $0xa4] ss:$16 sps:$4 sm:$0xff]  }
  0x6f   : > { %2862 = vmatpush3.bf16.msra.mxu0 %v3416_v19  ;;  %v3462_v54 = vld [vmem:[%s3880_s13 + $0xac] ss:$16 sps:$4 sm:$0xff]   ;;  %v3464_v55 = vld [vmem:[%s3880_s13 + $0xa0] ss:$16 sps:$4 sm:$0xff]   ;;  %v3465_v56 = vld [vmem:[%s3880_s13 + $0xa8] ss:$16 sps:$4 sm:$0xff]  }
  0x70   : > { %2974 = vmatpush3.bf16.msra.mxu1 %v3417_v20  ;;  %2863 = vmatprep.subr.bf16.mxu0 %v3418_v21  ;;  %v3466_v57 = vld [vmem:[%s3880_s13 + $0xc4] ss:$16 sps:$4 sm:$0xff]   ;;  %v3468_v58 = vld [vmem:[%s3880_s13 + $0xcc] ss:$16 sps:$4 sm:$0xff]   ;;  %v3470_v59 = vld [vmem:[%s3880_s13 + $0xc0] ss:$16 sps:$4 sm:$0xff]  }
  0x71   : > { %2975 = vmatprep.subr.bf16.mxu1 %v3419_v22  ;;  %v3471_v60 = vld [vmem:[%s3880_s13 + $0xc8] ss:$16 sps:$4 sm:$0xff]   ;;  %v3472_v61 = vld [vmem:[%s3880_s13 + $0xe4] ss:$16 sps:$4 sm:$0xff]   ;;  %v3474_v62 = vld [vmem:[%s3880_s13 + $0xec] ss:$16 sps:$4 sm:$0xff]  }
  0x72   : > { %v3476_v63 = vld [vmem:[%s3880_s13 + $0xe0] ss:$16 sps:$4 sm:$0xff]   ;;  %v3477_v0 = vld [vmem:[%s3880_s13 + $0xe8] ss:$16 sps:$4 sm:$0xff]   ;;  %v3478_v1 = vld [vmem:[%s3880_s13 + $0x104] ss:$16 sps:$4 sm:$0xff]  }
  0x73   : > { %2864 = vmatpush3.bf16.msra.mxu0 %v3420_v23  ;;  %v3480_v2 = vld [vmem:[%s3880_s13 + $0x10c] ss:$16 sps:$4 sm:$0xff]   ;;  %v3482_v3 = vld [vmem:[%s3880_s13 + $0x100] ss:$16 sps:$4 sm:$0xff]   ;;  %v3483_v4 = vld [vmem:[%s3880_s13 + $0x108] ss:$16 sps:$4 sm:$0xff]  }
  0x74   : > { %2976 = vmatpush3.bf16.msra.mxu1 %v3421_v24  ;;  %2865 = vmatprep.subr.bf16.mxu0 %v3422_v25  ;;  %v3484_v5 = vld [vmem:[%s3880_s13 + $0x124] ss:$16 sps:$4 sm:$0xff]   ;;  %v3486_v6 = vld [vmem:[%s3880_s13 + $0x12c] ss:$16 sps:$4 sm:$0xff]   ;;  %v3488_v7 = vld [vmem:[%s3880_s13 + $0x120] ss:$16 sps:$4 sm:$0xff]  }
  0x75   : > { %2977 = vmatprep.subr.bf16.mxu1 %v3423_v26  ;;  %v3489_v8 = vld [vmem:[%s3880_s13 + $0x128] ss:$16 sps:$4 sm:$0xff]   ;;  %v3490_v9 = vld [vmem:[%s3880_s13 + $0x144] ss:$16 sps:$4 sm:$0xff]   ;;  %v3492_v10 = vld [vmem:[%s3880_s13 + $0x14c] ss:$16 sps:$4 sm:$0xff]  }
  0x76   : > { %v3494_v11 = vld [vmem:[%s3880_s13 + $0x140] ss:$16 sps:$4 sm:$0xff]   ;;  %v3495_v12 = vld [vmem:[%s3880_s13 + $0x148] ss:$16 sps:$4 sm:$0xff]   ;;  %v3496_v13 = vld [vmem:[%s3880_s13 + $0x164] ss:$16 sps:$4 sm:$0xff]  }
  0x77   : > { %2866 = vmatpush3.bf16.msra.mxu0 %v3424_v27  ;;  %v3498_v14 = vld [vmem:[%s3880_s13 + $0x16c] ss:$16 sps:$4 sm:$0xff]   ;;  %v3500_v15 = vld [vmem:[%s3880_s13 + $0x160] ss:$16 sps:$4 sm:$0xff]   ;;  %v3501_v16 = vld [vmem:[%s3880_s13 + $0x168] ss:$16 sps:$4 sm:$0xff]  }
  0x78   : > { %2978 = vmatpush3.bf16.msra.mxu1 %v3425_v28  ;;  %2867 = vmatprep.subr.bf16.mxu0 %v3426_v29  ;;  %v3502_v17 = vld [vmem:[%s3880_s13 + $0x184] ss:$16 sps:$4 sm:$0xff]   ;;  %v3504_v18 = vld [vmem:[%s3880_s13 + $0x18c] ss:$16 sps:$4 sm:$0xff]   ;;  %v3506_v19 = vld [vmem:[%s3880_s13 + $0x180] ss:$16 sps:$4 sm:$0xff]  }
  0x79   : > { %2979 = vmatprep.subr.bf16.mxu1 %v3427_v30  ;;  %v3507_v20 = vld [vmem:[%s3880_s13 + $0x188] ss:$16 sps:$4 sm:$0xff]   ;;  %v3508_v21 = vld [vmem:[%s3880_s13 + $0x1a4] ss:$16 sps:$4 sm:$0xff]   ;;  %v3510_v22 = vld [vmem:[%s3880_s13 + $0x1ac] ss:$16 sps:$4 sm:$0xff]  }
  0x7a   : > { %v3512_v23 = vld [vmem:[%s3880_s13 + $0x1a0] ss:$16 sps:$4 sm:$0xff]   ;;  %v3513_v24 = vld [vmem:[%s3880_s13 + $0x1a8] ss:$16 sps:$4 sm:$0xff]   ;;  %v3514_v25 = vld [vmem:[%s3880_s13 + $0x1c4] ss:$16 sps:$4 sm:$0xff]  }
  0x7b   : > { %2868 = vmatpush3.bf16.msra.mxu0 %v3428_v31  ;;  %v3516_v26 = vld [vmem:[%s3880_s13 + $0x1cc] ss:$16 sps:$4 sm:$0xff]   ;;  %v3518_v27 = vld [vmem:[%s3880_s13 + $0x1c0] ss:$16 sps:$4 sm:$0xff]   ;;  %v3519_v28 = vld [vmem:[%s3880_s13 + $0x1c8] ss:$16 sps:$4 sm:$0xff]  }
  0x7c   : > { %2980 = vmatpush3.bf16.msra.mxu1 %v3429_v32  ;;  %v3520_v29 = vld [vmem:[%s3880_s13 + $0x1e4] ss:$16 sps:$4 sm:$0xff]   ;;  %v3522_v30 = vld [vmem:[%s3880_s13 + $0x1ec] ss:$16 sps:$4 sm:$0xff]   ;;  %v3524_v31 = vld [vmem:[%s3880_s13 + $0x1e0] ss:$16 sps:$4 sm:$0xff]  }
  0x7d   : > { %v3525_v32 = vld [vmem:[%s3880_s13 + $0x1e8] ss:$16 sps:$4 sm:$0xff]  }
  0x7e   : > { %1258 = vmatmul.mubr.bf16.vlgmr.msra.gmra.mrb[0].mxu0 %v3430_v33 }
  0x7f   : > { %1419 = vmatmul.mubr.bf16.vlgmr.msra.gmra.mrb[0].mxu1 %v3433_v35  ;;  %1265 = vmatprep.mubr.bf16.mxu0 %v3436_v37 }
  0x80   : > { %1426 = vmatprep.mubr.bf16.mxu1 %v3438_v38 }
  0x86   : > { %1266 = vmatmul.mubr.bf16.gmra.mrb[4].mxu0 %v3440_v39 }
  0x87   : > { %1427 = vmatmul.mubr.bf16.gmra.mrb[4].mxu1 %v3441_v40  ;;  %1273 = vmatprep.mubr.bf16.mxu0 %v3442_v41 }
  0x88   : > { %1434 = vmatprep.mubr.bf16.mxu1 %v3444_v42  ;;  %v553_v42 = vld [vmem:[#allocation2] sm:$0xff] }
  0x8e   : > { %1274 = vmatmul.mubr.bf16.gmra.mrb[8].mxu0 %v3446_v43 }
  0x8f   : > { %1435 = vmatmul.mubr.bf16.gmra.mrb[8].mxu1 %v3447_v44  ;;  %1281 = vmatprep.mubr.bf16.mxu0 %v3448_v45 }
  0x90   : > { %1442 = vmatprep.mubr.bf16.mxu1 %v3450_v46 }
  0x96   : > { %1282 = vmatmul.mubr.bf16.gmra.mrb[12].mxu0 %v3452_v47  ;;  %v554_v47 = vld [vmem:[#allocation2 + $0x8] sm:$0xff] }
  0x97   : > { %1443 = vmatmul.mubr.bf16.gmra.mrb[12].mxu1 %v3453_v48  ;;  %1289 = vmatprep.mubr.bf16.mxu0 %v3454_v49 }
  0x98   : > { %1450 = vmatprep.mubr.bf16.mxu1 %v3456_v50 }
  0x9e   : > { %1290 = vmatmul.mubr.bf16.gmra.mrb[16].mxu0 %v3458_v51 }
  0x9f   : > { %1451 = vmatmul.mubr.bf16.gmra.mrb[16].mxu1 %v3459_v52  ;;  %1297 = vmatprep.mubr.bf16.mxu0 %v3460_v53 }
  0xa0   : > { %1458 = vmatprep.mubr.bf16.mxu1 %v3462_v54 }
  0xa6   : > { %1298 = vmatmul.mubr.bf16.gmra.mrb[20].mxu0 %v3464_v55 }
  0xa7   : > { %1459 = vmatmul.mubr.bf16.gmra.mrb[20].mxu1 %v3465_v56  ;;  %1305 = vmatprep.mubr.bf16.mxu0 %v3466_v57 }
  0xa8   : > { %1466 = vmatprep.mubr.bf16.mxu1 %v3468_v58 }
  0xae   : > { %1306 = vmatmul.mubr.bf16.gmra.mrb[24].mxu0 %v3470_v59 }
  0xaf   : > { %1467 = vmatmul.mubr.bf16.gmra.mrb[24].mxu1 %v3471_v60  ;;  %1313 = vmatprep.mubr.bf16.mxu0 %v3472_v61  ;;  %v555_v60 = vld [vmem:[#allocation2 + $0x10] sm:$0xff] }
  0xb0   : > { %1474 = vmatprep.mubr.bf16.mxu1 %v3474_v62 }
  0xb6   : > { %1314 = vmatmul.mubr.bf16.gmra.mrb[28].mxu0 %v3476_v63 }
  0xb7   : > { %1475 = vmatmul.mubr.bf16.gmra.mrb[28].mxu1 %v3477_v0  ;;  %1321 = vmatprep.mubr.bf16.mxu0 %v3478_v1  ;;  %v556_v1 = vld [vmem:[#allocation2 + $0x18] sm:$0xff] }
  0xb8   : > { %1482 = vmatprep.mubr.bf16.mxu1 %v3480_v2 }
  0xbe   : > { %1322 = vmatmul.mubr.bf16.gmra.mrb[32].mxu0 %v3482_v3 }
  0xbf   : > { %1483 = vmatmul.mubr.bf16.gmra.mrb[32].mxu1 %v3483_v4  ;;  %1329 = vmatprep.mubr.bf16.mxu0 %v3484_v5 }
  0xc0   : > { %1490 = vmatprep.mubr.bf16.mxu1 %v3486_v6 }
  0xc6   : > { %1330 = vmatmul.mubr.bf16.gmra.mrb[36].mxu0 %v3488_v7 }
  0xc7   : > { %1491 = vmatmul.mubr.bf16.gmra.mrb[36].mxu1 %v3489_v8  ;;  %1337 = vmatprep.mubr.bf16.mxu0 %v3490_v9 }
  0xc8   : > { %1498 = vmatprep.mubr.bf16.mxu1 %v3492_v10 }
  0xce   : > { %1338 = vmatmul.mubr.bf16.gmra.mrb[40].mxu0 %v3494_v11 }
  0xcf   : > { %1499 = vmatmul.mubr.bf16.gmra.mrb[40].mxu1 %v3495_v12  ;;  %1345 = vmatprep.mubr.bf16.mxu0 %v3496_v13 }
  0xd0   : > { %1506 = vmatprep.mubr.bf16.mxu1 %v3498_v14  ;;  %v557_v14 = vld [vmem:[#allocation2 + $0x20] sm:$0xff] }
  0xd6   : > { %1346 = vmatmul.mubr.bf16.gmra.mrb[44].mxu0 %v3500_v15 }
  0xd7   : > { %1507 = vmatmul.mubr.bf16.gmra.mrb[44].mxu1 %v3501_v16  ;;  %1353 = vmatprep.mubr.bf16.mxu0 %v3502_v17 }
  0xd8   : > { %1514 = vmatprep.mubr.bf16.mxu1 %v3504_v18 }
  0xde   : > { %1354 = vmatmul.mubr.bf16.gmra.mrb[48].mxu0 %v3506_v19  ;;  %v558_v19 = vld [vmem:[#allocation2 + $0x28] sm:$0xff] }
  0xdf   : > { %1515 = vmatmul.mubr.bf16.gmra.mrb[48].mxu1 %v3507_v20  ;;  %1361 = vmatprep.mubr.bf16.mxu0 %v3508_v21 }
  0xe0   : > { %1522 = vmatprep.mubr.bf16.mxu1 %v3510_v22 }
  0xe6   : > { %1362 = vmatmul.mubr.bf16.gmra.mrb[52].mxu0 %v3512_v23 }
  0xe7   : > { %1523 = vmatmul.mubr.bf16.gmra.mrb[52].mxu1 %v3513_v24  ;;  %1369 = vmatprep.mubr.bf16.mxu0 %v3514_v25 }
  0xe8   : > { %1530 = vmatprep.mubr.bf16.mxu1 %v3516_v26 }
  0xee   : > { %1370 = vmatmul.mubr.bf16.gmra.mrb[56].mxu0 %v3518_v27 }
  0xef   : > { %1531 = vmatmul.mubr.bf16.gmra.mrb[56].mxu1 %v3519_v28  ;;  %1377 = vmatprep.mubr.bf16.mxu0 %v3520_v29 }
  0xf0   : > { %1538 = vmatprep.mubr.bf16.mxu1 %v3522_v30 }
  0xf6   : > { %1378 = vmatmul.mubr.bf16.gmra.mrb[60].mxu0 %v3524_v31 }
  0xf7   : > { %1539 = vmatmul.mubr.bf16.gmra.mrb[60].mxu1 %v3525_v32  ;;  %v559_v32 = vld [vmem:[#allocation2 + $0x30] sm:$0xff] }
 0x151   : > { %v2869_v33 = vpop.f32.mrb[0].mxu0 }
 0x152   : > { %v2981_v34 = vpop.f32.mrb[0].mxu1  ;;  %v2870_v35 = vpop.f32.mrb[1].mxu0 }
 0x153   : > { %v2871_v36 = vadd.f32 %v2870_v35, %v2869_v33  ;;  %v2982_v37 = vpop.f32.mrb[1].mxu1  ;;  %v2872_v38 = vpop.f32.mrb[2].mxu0 }
 0x154   : > { %v2983_v39 = vadd.f32 %v2982_v37, %v2981_v34  ;;  %v2984_v40 = vpop.f32.mrb[2].mxu1  ;;  %v2873_v41 = vpop.f32.mrb[3].mxu0  ;;  %v560_v37 = vld [vmem:[#allocation2 + $0x38] sm:$0xff] }
 0x155   : > { %v2874_v43 = vadd.f32 %v2873_v41, %v2872_v38  ;;  %v2985_v44 = vpop.f32.mrb[3].mxu1 }
 0x156   : > { %v1421_v45 = vadd.f32 %v2983_v39, %v2871_v36  ;;  %v2986_v46 = vadd.f32 %v2985_v44, %v2984_v40 }
 0x158   : > { %v1547_v48 = vadd.f32 %v1421_v45, %v553_v42  ;;  %v1424_v49 = vadd.f32 %v2986_v46, %v2874_v43 }
 0x159   : > { %v2875_v50 = vpop.f32.mrb[4].mxu0 }
 0x15a   : > { %1579 = vst [vmem:[#allocation2] sm:$0xff] %v1547_v48  ;;  %v1548_v51 = vadd.f32 %v1424_v49, %v554_v47  ;;  %v2987_v52 = vpop.f32.mrb[4].mxu1  ;;  %v2876_v53 = vpop.f32.mrb[5].mxu0 }
 0x15b   : > { %v2877_v54 = vadd.f32 %v2876_v53, %v2875_v50  ;;  %v2988_v55 = vpop.f32.mrb[5].mxu1  ;;  %v2878_v56 = vpop.f32.mrb[6].mxu0  ;;  %v561_v50 = vld [vmem:[#allocation2 + $0x40] sm:$0xff] }
 0x15c   : > { %1580 = vst [vmem:[#allocation2 + $0x8] sm:$0xff] %v1548_v51  ;;  %v2989_v57 = vadd.f32 %v2988_v55, %v2987_v52  ;;  %v2990_v58 = vpop.f32.mrb[6].mxu1  ;;  %v2879_v59 = vpop.f32.mrb[7].mxu0  ;;  %v562_v55 = vld [vmem:[#allocation2 + $0x48] sm:$0xff] }
 0x15d   : > { %v2880_v61 = vadd.f32 %v2879_v59, %v2878_v56  ;;  %v2991_v62 = vpop.f32.mrb[7].mxu1 }
 0x15e   : > { %v1429_v63 = vadd.f32 %v2989_v57, %v2877_v54  ;;  %v2992_v0 = vadd.f32 %v2991_v62, %v2990_v58 }
 0x160   : > { %v1549_v2 = vadd.f32 %v1429_v63, %v555_v60  ;;  %v1432_v3 = vadd.f32 %v2992_v0, %v2880_v61 }
 0x161   : > { %v2881_v4 = vpop.f32.mrb[8].mxu0 }
 0x162   : > { %1581 = vst [vmem:[#allocation2 + $0x10] sm:$0xff] %v1549_v2  ;;  %v1550_v5 = vadd.f32 %v1432_v3, %v556_v1  ;;  %v2993_v6 = vpop.f32.mrb[8].mxu1  ;;  %v2882_v7 = vpop.f32.mrb[9].mxu0 }
 0x163   : > { %v2883_v8 = vadd.f32 %v2882_v7, %v2881_v4  ;;  %v2994_v9 = vpop.f32.mrb[9].mxu1  ;;  %v2884_v10 = vpop.f32.mrb[10].mxu0  ;;  %v563_v4 = vld [vmem:[#allocation2 + $0x50] sm:$0xff] }
 0x164   : > { %1582 = vst [vmem:[#allocation2 + $0x18] sm:$0xff] %v1550_v5  ;;  %v2995_v11 = vadd.f32 %v2994_v9, %v2993_v6  ;;  %v2996_v12 = vpop.f32.mrb[10].mxu1  ;;  %v2885_v13 = vpop.f32.mrb[11].mxu0  ;;  %v564_v9 = vld [vmem:[#allocation2 + $0x58] sm:$0xff] }
 0x165   : > { %v2886_v15 = vadd.f32 %v2885_v13, %v2884_v10  ;;  %v2997_v16 = vpop.f32.mrb[11].mxu1 }
 0x166   : > { %v1437_v17 = vadd.f32 %v2995_v11, %v2883_v8  ;;  %v2998_v18 = vadd.f32 %v2997_v16, %v2996_v12 }
 0x168   : > { %v1551_v20 = vadd.f32 %v1437_v17, %v557_v14  ;;  %v1440_v21 = vadd.f32 %v2998_v18, %v2886_v15 }
 0x169   : > { %v2887_v22 = vpop.f32.mrb[12].mxu0 }
 0x16a   : > { %1583 = vst [vmem:[#allocation2 + $0x20] sm:$0xff] %v1551_v20  ;;  %v1552_v23 = vadd.f32 %v1440_v21, %v558_v19  ;;  %v2999_v24 = vpop.f32.mrb[12].mxu1  ;;  %v2888_v25 = vpop.f32.mrb[13].mxu0 }
 0x16b   : > { %v2889_v26 = vadd.f32 %v2888_v25, %v2887_v22  ;;  %v3000_v27 = vpop.f32.mrb[13].mxu1  ;;  %v2890_v28 = vpop.f32.mrb[14].mxu0  ;;  %v565_v22 = vld [vmem:[#allocation2 + $0x60] sm:$0xff] }
 0x16c   : > { %1584 = vst [vmem:[#allocation2 + $0x28] sm:$0xff] %v1552_v23  ;;  %v3001_v29 = vadd.f32 %v3000_v27, %v2999_v24  ;;  %v3002_v30 = vpop.f32.mrb[14].mxu1  ;;  %v2891_v31 = vpop.f32.mrb[15].mxu0  ;;  %v566_v27 = vld [vmem:[#allocation2 + $0x68] sm:$0xff] }
 0x16d   : > { %v2892_v33 = vadd.f32 %v2891_v31, %v2890_v28  ;;  %v3003_v34 = vpop.f32.mrb[15].mxu1 }
 0x16e   : > { %v1445_v35 = vadd.f32 %v3001_v29, %v2889_v26  ;;  %v3004_v36 = vadd.f32 %v3003_v34, %v3002_v30 }
 0x170   : > { %v1553_v38 = vadd.f32 %v1445_v35, %v559_v32  ;;  %v1448_v39 = vadd.f32 %v3004_v36, %v2892_v33 }
 0x171   : > { %v2893_v40 = vpop.f32.mrb[16].mxu0 }
 0x172   : > { %1585 = vst [vmem:[#allocation2 + $0x30] sm:$0xff] %v1553_v38  ;;  %v1554_v41 = vadd.f32 %v1448_v39, %v560_v37  ;;  %v3005_v42 = vpop.f32.mrb[16].mxu1  ;;  %v2894_v43 = vpop.f32.mrb[17].mxu0 }
 0x173   : > { %v2895_v44 = vadd.f32 %v2894_v43, %v2893_v40  ;;  %v3006_v45 = vpop.f32.mrb[17].mxu1  ;;  %v2896_v46 = vpop.f32.mrb[18].mxu0  ;;  %v567_v40 = vld [vmem:[#allocation2 + $0x70] sm:$0xff] }
 0x174   : > { %1586 = vst [vmem:[#allocation2 + $0x38] sm:$0xff] %v1554_v41  ;;  %v3007_v47 = vadd.f32 %v3006_v45, %v3005_v42  ;;  %v3008_v48 = vpop.f32.mrb[18].mxu1  ;;  %v2897_v49 = vpop.f32.mrb[19].mxu0  ;;  %v568_v45 = vld [vmem:[#allocation2 + $0x78] sm:$0xff] }
 0x175   : > { %v2898_v51 = vadd.f32 %v2897_v49, %v2896_v46  ;;  %v3009_v52 = vpop.f32.mrb[19].mxu1 }
 0x176   : > { %v1453_v53 = vadd.f32 %v3007_v47, %v2895_v44  ;;  %v3010_v54 = vadd.f32 %v3009_v52, %v3008_v48 }
 0x178   : > { %v1555_v56 = vadd.f32 %v1453_v53, %v561_v50  ;;  %v1456_v57 = vadd.f32 %v3010_v54, %v2898_v51 }
 0x179   : > { %v2899_v58 = vpop.f32.mrb[20].mxu0 }
 0x17a   : > { %1587 = vst [vmem:[#allocation2 + $0x40] sm:$0xff] %v1555_v56  ;;  %v1556_v59 = vadd.f32 %v1456_v57, %v562_v55  ;;  %v3011_v60 = vpop.f32.mrb[20].mxu1  ;;  %v2900_v61 = vpop.f32.mrb[21].mxu0 }
 0x17b   : > { %v2901_v62 = vadd.f32 %v2900_v61, %v2899_v58  ;;  %v3012_v63 = vpop.f32.mrb[21].mxu1  ;;  %v2902_v0 = vpop.f32.mrb[22].mxu0  ;;  %v569_v58 = vld [vmem:[#allocation2 + $0x80] sm:$0xff] }
 0x17c   : > { %1588 = vst [vmem:[#allocation2 + $0x48] sm:$0xff] %v1556_v59  ;;  %v3013_v1 = vadd.f32 %v3012_v63, %v3011_v60  ;;  %v3014_v2 = vpop.f32.mrb[22].mxu1  ;;  %v2903_v3 = vpop.f32.mrb[23].mxu0  ;;  %v570_v63 = vld [vmem:[#allocation2 + $0x88] sm:$0xff] }
 0x17d   : > { %v2904_v5 = vadd.f32 %v2903_v3, %v2902_v0  ;;  %v3015_v6 = vpop.f32.mrb[23].mxu1 }
 0x17e   : > { %v1461_v7 = vadd.f32 %v3013_v1, %v2901_v62  ;;  %v3016_v8 = vadd.f32 %v3015_v6, %v3014_v2 }
 0x180   : > { %v1557_v10 = vadd.f32 %v1461_v7, %v563_v4  ;;  %v1464_v11 = vadd.f32 %v3016_v8, %v2904_v5 }
 0x181   : > { %v2905_v12 = vpop.f32.mrb[24].mxu0 }
 0x182   : > { %1589 = vst [vmem:[#allocation2 + $0x50] sm:$0xff] %v1557_v10  ;;  %v1558_v13 = vadd.f32 %v1464_v11, %v564_v9  ;;  %v3017_v14 = vpop.f32.mrb[24].mxu1  ;;  %v2906_v15 = vpop.f32.mrb[25].mxu0 }
 0x183   : > { %v2907_v16 = vadd.f32 %v2906_v15, %v2905_v12  ;;  %v3018_v17 = vpop.f32.mrb[25].mxu1  ;;  %v2908_v18 = vpop.f32.mrb[26].mxu0  ;;  %v571_v12 = vld [vmem:[#allocation2 + $0x90] sm:$0xff] }
 0x184   : > { %1590 = vst [vmem:[#allocation2 + $0x58] sm:$0xff] %v1558_v13  ;;  %v3019_v19 = vadd.f32 %v3018_v17, %v3017_v14  ;;  %v3020_v20 = vpop.f32.mrb[26].mxu1  ;;  %v2909_v21 = vpop.f32.mrb[27].mxu0  ;;  %v572_v17 = vld [vmem:[#allocation2 + $0x98] sm:$0xff] }
 0x185   : > { %v2910_v23 = vadd.f32 %v2909_v21, %v2908_v18  ;;  %v3021_v24 = vpop.f32.mrb[27].mxu1 }
 0x186   : > { %v1469_v25 = vadd.f32 %v3019_v19, %v2907_v16  ;;  %v3022_v26 = vadd.f32 %v3021_v24, %v3020_v20 }
 0x188   : > { %v1559_v28 = vadd.f32 %v1469_v25, %v565_v22  ;;  %v1472_v29 = vadd.f32 %v3022_v26, %v2910_v23 }
 0x189   : > { %v2911_v30 = vpop.f32.mrb[28].mxu0 }
 0x18a   : > { %1591 = vst [vmem:[#allocation2 + $0x60] sm:$0xff] %v1559_v28  ;;  %v1560_v31 = vadd.f32 %v1472_v29, %v566_v27  ;;  %v3023_v32 = vpop.f32.mrb[28].mxu1  ;;  %v2912_v33 = vpop.f32.mrb[29].mxu0 }
 0x18b   : > { %v2913_v34 = vadd.f32 %v2912_v33, %v2911_v30  ;;  %v3024_v35 = vpop.f32.mrb[29].mxu1  ;;  %v2914_v36 = vpop.f32.mrb[30].mxu0  ;;  %v573_v30 = vld [vmem:[#allocation2 + $0xa0] sm:$0xff] }
 0x18c   : > { %1592 = vst [vmem:[#allocation2 + $0x68] sm:$0xff] %v1560_v31  ;;  %v3025_v37 = vadd.f32 %v3024_v35, %v3023_v32  ;;  %v3026_v38 = vpop.f32.mrb[30].mxu1  ;;  %v2915_v39 = vpop.f32.mrb[31].mxu0  ;;  %v574_v35 = vld [vmem:[#allocation2 + $0xa8] sm:$0xff] }
 0x18d   : > { %v2916_v41 = vadd.f32 %v2915_v39, %v2914_v36  ;;  %v3027_v42 = vpop.f32.mrb[31].mxu1 }
 0x18e   : > { %v1477_v43 = vadd.f32 %v3025_v37, %v2913_v34  ;;  %v3028_v44 = vadd.f32 %v3027_v42, %v3026_v38 }
 0x190   : > { %v1561_v46 = vadd.f32 %v1477_v43, %v567_v40  ;;  %v1480_v47 = vadd.f32 %v3028_v44, %v2916_v41 }
 0x191   : > { %v2917_v48 = vpop.f32.mrb[32].mxu0 }
 0x192   : > { %1593 = vst [vmem:[#allocation2 + $0x70] sm:$0xff] %v1561_v46  ;;  %v1562_v49 = vadd.f32 %v1480_v47, %v568_v45  ;;  %v3029_v50 = vpop.f32.mrb[32].mxu1  ;;  %v2918_v51 = vpop.f32.mrb[33].mxu0 }
 0x193   : > { %v2919_v52 = vadd.f32 %v2918_v51, %v2917_v48  ;;  %v3030_v53 = vpop.f32.mrb[33].mxu1  ;;  %v2920_v54 = vpop.f32.mrb[34].mxu0  ;;  %v575_v48 = vld [vmem:[#allocation2 + $0xb0] sm:$0xff] }
 0x194   : > { %1594 = vst [vmem:[#allocation2 + $0x78] sm:$0xff] %v1562_v49  ;;  %v3031_v55 = vadd.f32 %v3030_v53, %v3029_v50  ;;  %v3032_v56 = vpop.f32.mrb[34].mxu1  ;;  %v2921_v57 = vpop.f32.mrb[35].mxu0  ;;  %v576_v53 = vld [vmem:[#allocation2 + $0xb8] sm:$0xff] }
 0x195   : > { %v2922_v59 = vadd.f32 %v2921_v57, %v2920_v54  ;;  %v3033_v60 = vpop.f32.mrb[35].mxu1 }
 0x196   : > { %v1485_v61 = vadd.f32 %v3031_v55, %v2919_v52  ;;  %v3034_v62 = vadd.f32 %v3033_v60, %v3032_v56 }
 0x198   : > { %v1563_v0 = vadd.f32 %v1485_v61, %v569_v58  ;;  %v1488_v1 = vadd.f32 %v3034_v62, %v2922_v59 }
 0x199   : > { %v2923_v2 = vpop.f32.mrb[36].mxu0 }
 0x19a   : > { %1595 = vst [vmem:[#allocation2 + $0x80] sm:$0xff] %v1563_v0  ;;  %v1564_v3 = vadd.f32 %v1488_v1, %v570_v63  ;;  %v3035_v4 = vpop.f32.mrb[36].mxu1  ;;  %v2924_v5 = vpop.f32.mrb[37].mxu0 }
 0x19b   : > { %v2925_v6 = vadd.f32 %v2924_v5, %v2923_v2  ;;  %v3036_v7 = vpop.f32.mrb[37].mxu1  ;;  %v2926_v8 = vpop.f32.mrb[38].mxu0  ;;  %v577_v2 = vld [vmem:[#allocation2 + $0xc0] sm:$0xff] }
 0x19c   : > { %1596 = vst [vmem:[#allocation2 + $0x88] sm:$0xff] %v1564_v3  ;;  %v3037_v9 = vadd.f32 %v3036_v7, %v3035_v4  ;;  %v3038_v10 = vpop.f32.mrb[38].mxu1  ;;  %v2927_v11 = vpop.f32.mrb[39].mxu0  ;;  %v578_v7 = vld [vmem:[#allocation2 + $0xc8] sm:$0xff] }
 0x19d   : > { %v2928_v13 = vadd.f32 %v2927_v11, %v2926_v8  ;;  %v3039_v14 = vpop.f32.mrb[39].mxu1 }
 0x19e   : > { %v1493_v15 = vadd.f32 %v3037_v9, %v2925_v6  ;;  %v3040_v16 = vadd.f32 %v3039_v14, %v3038_v10 }
 0x1a0   : > { %v1565_v18 = vadd.f32 %v1493_v15, %v571_v12  ;;  %v1496_v19 = vadd.f32 %v3040_v16, %v2928_v13 }
 0x1a1   : > { %v2929_v20 = vpop.f32.mrb[40].mxu0 }
 0x1a2   : > { %1597 = vst [vmem:[#allocation2 + $0x90] sm:$0xff] %v1565_v18  ;;  %v1566_v21 = vadd.f32 %v1496_v19, %v572_v17  ;;  %v3041_v22 = vpop.f32.mrb[40].mxu1  ;;  %v2930_v23 = vpop.f32.mrb[41].mxu0 }
 0x1a3   : > { %v2931_v24 = vadd.f32 %v2930_v23, %v2929_v20  ;;  %v3042_v25 = vpop.f32.mrb[41].mxu1  ;;  %v2932_v26 = vpop.f32.mrb[42].mxu0  ;;  %v579_v20 = vld [vmem:[#allocation2 + $0xd0] sm:$0xff] }
 0x1a4   : > { %1598 = vst [vmem:[#allocation2 + $0x98] sm:$0xff] %v1566_v21  ;;  %v3043_v27 = vadd.f32 %v3042_v25, %v3041_v22  ;;  %v3044_v28 = vpop.f32.mrb[42].mxu1  ;;  %v2933_v29 = vpop.f32.mrb[43].mxu0  ;;  %v580_v25 = vld [vmem:[#allocation2 + $0xd8] sm:$0xff] }
 0x1a5   : > { %v2934_v31 = vadd.f32 %v2933_v29, %v2932_v26  ;;  %v3045_v32 = vpop.f32.mrb[43].mxu1 }
 0x1a6   : > { %v1501_v33 = vadd.f32 %v3043_v27, %v2931_v24  ;;  %v3046_v34 = vadd.f32 %v3045_v32, %v3044_v28 }
 0x1a8   : > { %v1567_v36 = vadd.f32 %v1501_v33, %v573_v30  ;;  %v1504_v37 = vadd.f32 %v3046_v34, %v2934_v31 }
 0x1a9   : > { %v2935_v38 = vpop.f32.mrb[44].mxu0 }
 0x1aa   : > { %1599 = vst [vmem:[#allocation2 + $0xa0] sm:$0xff] %v1567_v36  ;;  %v1568_v39 = vadd.f32 %v1504_v37, %v574_v35  ;;  %v3047_v40 = vpop.f32.mrb[44].mxu1  ;;  %v2936_v41 = vpop.f32.mrb[45].mxu0 }
 0x1ab   : > { %v2937_v42 = vadd.f32 %v2936_v41, %v2935_v38  ;;  %v3048_v43 = vpop.f32.mrb[45].mxu1  ;;  %v2938_v44 = vpop.f32.mrb[46].mxu0  ;;  %v581_v38 = vld [vmem:[#allocation2 + $0xe0] sm:$0xff] }
 0x1ac   : > { %1600 = vst [vmem:[#allocation2 + $0xa8] sm:$0xff] %v1568_v39  ;;  %v3049_v45 = vadd.f32 %v3048_v43, %v3047_v40  ;;  %v3050_v46 = vpop.f32.mrb[46].mxu1  ;;  %v2939_v47 = vpop.f32.mrb[47].mxu0  ;;  %v582_v43 = vld [vmem:[#allocation2 + $0xe8] sm:$0xff] }
 0x1ad   : > { %v2940_v49 = vadd.f32 %v2939_v47, %v2938_v44  ;;  %v3051_v50 = vpop.f32.mrb[47].mxu1 }
 0x1ae   : > { %v1509_v51 = vadd.f32 %v3049_v45, %v2937_v42  ;;  %v3052_v52 = vadd.f32 %v3051_v50, %v3050_v46 }
 0x1b0   : > { %v1569_v54 = vadd.f32 %v1509_v51, %v575_v48  ;;  %v1512_v55 = vadd.f32 %v3052_v52, %v2940_v49 }
 0x1b1   : > { %v2941_v56 = vpop.f32.mrb[48].mxu0 }
 0x1b2   : > { %1601 = vst [vmem:[#allocation2 + $0xb0] sm:$0xff] %v1569_v54  ;;  %v1570_v57 = vadd.f32 %v1512_v55, %v576_v53  ;;  %v3053_v58 = vpop.f32.mrb[48].mxu1  ;;  %v2942_v59 = vpop.f32.mrb[49].mxu0 }
 0x1b3   : > { %v2943_v60 = vadd.f32 %v2942_v59, %v2941_v56  ;;  %v3054_v61 = vpop.f32.mrb[49].mxu1  ;;  %v2944_v62 = vpop.f32.mrb[50].mxu0  ;;  %v583_v56 = vld [vmem:[#allocation2 + $0xf0] sm:$0xff] }
 0x1b4   : > { %1602 = vst [vmem:[#allocation2 + $0xb8] sm:$0xff] %v1570_v57  ;;  %v3055_v63 = vadd.f32 %v3054_v61, %v3053_v58  ;;  %v3056_v0 = vpop.f32.mrb[50].mxu1  ;;  %v2945_v1 = vpop.f32.mrb[51].mxu0  ;;  %v584_v61 = vld [vmem:[#allocation2 + $0xf8] sm:$0xff] }
 0x1b5   : > { %v2946_v3 = vadd.f32 %v2945_v1, %v2944_v62  ;;  %v3057_v4 = vpop.f32.mrb[51].mxu1  ;;  %v3526_v1 = vld [vmem:[%s4247_s4] sm:$0xff] (!%p2807_p13)  }
 0x1b6   : > { %v1517_v5 = vadd.f32 %v3055_v63, %v2943_v60  ;;  %v3058_v6 = vadd.f32 %v3057_v4, %v3056_v0  ;;  %3149 = vmatprep.subr.bf16.mxu0 (!%p2807_p13), %v3526_v1  ;;  %3293 = vmatprep.subr.bf16.mxu1 (!%p2807_p13), %v3526_v1  ;;  %v3529_v4 = vld [vmem:[%s4247_s4 + $0x18] sm:$0xff] (!%p2807_p13)  }
 0x1b7   : > { %3150 = vmatpush3.bf16.msra.mxu0 (!%p2807_p13), %v3526_v1  ;;  %3301 = vmatpush3.bf16.msra.mxu1 (!%p2807_p13), %v3526_v1 }
 0x1b8   : > { %v1571_v8 = vadd.f32 %v1517_v5, %v577_v2  ;;  %v1520_v9 = vadd.f32 %v3058_v6, %v2946_v3  ;;  %v3527_v2 = vld [vmem:[%s4247_s4 + $0x8] sm:$0xff] (!%p2807_p13)   ;;  %v3528_v3 = vld [vmem:[%s4247_s4 + $0x10] sm:$0xff] (!%p2807_p13)   ;;  %v1663_v5 = vld [vmem:[#allocation2] sm:$0xff] (!%p2807_p13) }
 0x1b9   : > { %v2947_v10 = vpop.f32.mrb[52].mxu0  ;;  %3151 = vmatprep.subr.bf16.mxu0 (!%p2807_p13), %v3527_v2  ;;  %3294 = vmatprep.subr.bf16.mxu1 (!%p2807_p13), %v3527_v2  ;;  %v1664_v6 = vld [vmem:[#allocation2 + $0x8] sm:$0xff] (!%p2807_p13) }
 0x1ba   : > { %1603 = vst [vmem:[#allocation2 + $0xc0] sm:$0xff] %v1571_v8  ;;  %v1572_v11 = vadd.f32 %v1520_v9, %v578_v7  ;;  %v3059_v12 = vpop.f32.mrb[52].mxu1  ;;  %v2948_v13 = vpop.f32.mrb[53].mxu0  ;;  %v1695_v7 = vpack.c.bf16 (!%p2807_p13), %v1664_v6, %v1663_v5  ;;  %v3530_v8 = vld [vmem:[%s4247_s4 + $0x20] sm:$0xff] (!%p2807_p13)   ;;  %v3531_v9 = vld [vmem:[%s4247_s4 + $0x28] sm:$0xff] (!%p2807_p13)  }
 0x1bb   : > { %v2949_v14 = vadd.f32 %v2948_v13, %v2947_v10  ;;  %v3060_v15 = vpop.f32.mrb[53].mxu1  ;;  %v2950_v16 = vpop.f32.mrb[54].mxu0  ;;  %3152 = vmatpush3.bf16.msra.mxu0 (!%p2807_p13), %v3527_v2  ;;  %3302 = vmatpush3.bf16.msra.mxu1 (!%p2807_p13), %v3527_v2  ;;  %v3532_v10 = vld [vmem:[%s4247_s4 + $0x30] sm:$0xff] (!%p2807_p13)   ;;  %v1666_v13 = vld [vmem:[#allocation2 + $0x18] sm:$0xff] (!%p2807_p13)  ;;  %v3562_v6 = vld [vmem:[%s4249_s6 + $0x20] sm:$0xff] (!%p2807_p13)  }
 0x1bc   : > { %1604 = vst [vmem:[#allocation2 + $0xc8] sm:$0xff] %v1572_v11  ;;  %v3061_v17 = vadd.f32 %v3060_v15, %v3059_v12  ;;  %v3062_v18 = vpop.f32.mrb[54].mxu1  ;;  %v2951_v19 = vpop.f32.mrb[55].mxu0  ;;  %3153 = vmatprep.subr.bf16.mxu0 (!%p2807_p13), %v3528_v3  ;;  %3295 = vmatprep.subr.bf16.mxu1 (!%p2807_p13), %v3528_v3  ;;  %v3533_v11 = vld [vmem:[%s4247_s4 + $0x38] sm:$0xff] (!%p2807_p13)   ;;  %v1665_v12 = vld [vmem:[#allocation2 + $0x10] sm:$0xff] (!%p2807_p13)  ;;  %v1667_v15 = vld [vmem:[#allocation2 + $0x20] sm:$0xff] (!%p2807_p13) }
 0x1bd   : > { %v2952_v21 = vadd.f32 %v2951_v19, %v2950_v16  ;;  %v3063_v22 = vpop.f32.mrb[55].mxu1  ;;  %3165 = vmatprep.mubr.bf16.mxu0 (!%p2807_p13), %v1695_v7  ;;  %v1668_v16 = vld [vmem:[#allocation2 + $0x28] sm:$0xff] (!%p2807_p13)  ;;  %v1696_v19 = vpack.c.bf16 (!%p2807_p13), %v1666_v13, %v1665_v12  ;;  %v3548_v13 = vld [vmem:[%s3873_s0 + $0x30] sm:$0xff] (!%p2807_p13)  }
 0x1be   : > { %v1525_v23 = vadd.f32 %v3061_v17, %v2949_v14  ;;  %v3064_v24 = vadd.f32 %v3063_v22, %v3062_v18  ;;  %v3534_v14 = vld [vmem:[%s4246_s3] sm:$0xff] (!%p2807_p13)   ;;  %v1680_v18 = vld [vmem:[#allocation2 + $0x88] sm:$0xff] (!%p2807_p13)  ;;  %v1682_v22 = vld [vmem:[#allocation2 + $0x98] sm:$0xff] (!%p2807_p13) }
 0x1bf   : > { %3154 = vmatpush3.bf16.msra.mxu0 (!%p2807_p13), %v3528_v3  ;;  %3303 = vmatpush3.bf16.msra.mxu1 (!%p2807_p13), %v3528_v3  ;;  %v1679_v17 = vld [vmem:[#allocation2 + $0x80] sm:$0xff] (!%p2807_p13)  ;;  %v3563_v7 = vld [vmem:[%s4249_s6 + $0x28] sm:$0xff] (!%p2807_p13)  }
 0x1c0   : > { %v1573_v26 = vadd.f32 %v1525_v23, %v579_v20  ;;  %v1528_v27 = vadd.f32 %v3064_v24, %v2952_v21  ;;  %3155 = vmatprep.subr.bf16.mxu0 (!%p2807_p13), %v3529_v4  ;;  %3296 = vmatprep.subr.bf16.mxu1 (!%p2807_p13), %v3529_v4  ;;  %v1703_v20 = vpack.c.bf16 (!%p2807_p13), %v1680_v18, %v1679_v17  ;;  %v1681_v21 = vld [vmem:[#allocation2 + $0x90] sm:$0xff] (!%p2807_p13)  ;;  %v3535_v24 = vld [vmem:[%s4246_s3 + $0x8] sm:$0xff] (!%p2807_p13)   ;;  %v3542_v3 = vld [vmem:[%s3873_s0] sm:$0xff] (!%p2807_p13)  }
 0x1c1   : > { %v2953_v28 = vpop.f32.mrb[56].mxu0  ;;  %v1697_v23 = vpack.c.bf16 (!%p2807_p13), %v1668_v16, %v1667_v15  ;;  %v3547_v12 = vld [vmem:[%s3873_s0 + $0x28] sm:$0xff] (!%p2807_p13)   ;;  %v3550_v15 = vld [vmem:[%s3873_s0 + $0x40] sm:$0xff] (!%p2807_p13)   ;;  %v3552_v17 = vld [vmem:[%s3873_s0 + $0x50] sm:$0xff] (!%p2807_p13)  }
 0x1c2   : > { %1605 = vst [vmem:[#allocation2 + $0xd0] sm:$0xff] %v1573_v26  ;;  %v1574_v29 = vadd.f32 %v1528_v27, %v580_v25  ;;  %v3065_v30 = vpop.f32.mrb[56].mxu1  ;;  %v2954_v31 = vpop.f32.mrb[57].mxu0  ;;  %v1704_v25 = vpack.c.bf16 (!%p2807_p13), %v1682_v22, %v1681_v21  ;;  %v1683_v26 = vld [vmem:[#allocation2 + $0xa0] sm:$0xff] (!%p2807_p13)  ;;  %v1669_v27 = vld [vmem:[#allocation2 + $0x30] sm:$0xff] (!%p2807_p13)  ;;  %3181 = vmatprep.mubr.bf16.mxu1 (!%p2807_p13), %v1703_v20  ;;  %v3551_v16 = vld [vmem:[%s3873_s0 + $0x48] sm:$0xff] (!%p2807_p13)  }
 0x1c3   : > { %v2955_v32 = vadd.f32 %v2954_v31, %v2953_v28  ;;  %v3066_v33 = vpop.f32.mrb[57].mxu1  ;;  %v2956_v34 = vpop.f32.mrb[58].mxu0  ;;  %3156 = vmatpush3.bf16.msra.mxu0 (!%p2807_p13), %v3529_v4  ;;  %3304 = vmatpush3.bf16.msra.mxu1 (!%p2807_p13), %v3529_v4  ;;  %v1670_v28 = vld [vmem:[#allocation2 + $0x38] sm:$0xff] (!%p2807_p13)  ;;  %v3555_v20 = vld [vmem:[%s3873_s0 + $0x68] sm:$0xff] (!%p2807_p13)   ;;  %v3556_v21 = vld [vmem:[%s3873_s0 + $0x70] sm:$0xff] (!%p2807_p13)  }
 0x1c4   : > { %1606 = vst [vmem:[#allocation2 + $0xd8] sm:$0xff] %v1574_v29  ;;  %v3067_v35 = vadd.f32 %v3066_v33, %v3065_v30  ;;  %v3068_v36 = vpop.f32.mrb[58].mxu1  ;;  %v2957_v37 = vpop.f32.mrb[59].mxu0  ;;  %3157 = vmatprep.subr.bf16.mxu0 (!%p2807_p13), %v3530_v8  ;;  %3297 = vmatprep.subr.bf16.mxu1 (!%p2807_p13), %v3530_v8  ;;  %v1684_v29 = vld [vmem:[#allocation2 + $0xa8] sm:$0xff] (!%p2807_p13)  ;;  %v3536_v30 = vld [vmem:[%s4246_s3 + $0x10] sm:$0xff] (!%p2807_p13)   ;;  %v3541_v4 = vld [vmem:[%s4246_s3 + $0x38] sm:$0xff] (!%p2807_p13)  }
 0x1c5   : > { %v2958_v39 = vadd.f32 %v2957_v37, %v2956_v34  ;;  %v3069_v40 = vpop.f32.mrb[59].mxu1  ;;  %v1705_v31 = vpack.c.bf16 (!%p2807_p13), %v1684_v29, %v1683_v26  ;;  %v1672_v33 = vld [vmem:[#allocation2 + $0x48] sm:$0xff] (!%p2807_p13)  ;;  %v1685_v34 = vld [vmem:[#allocation2 + $0xb0] sm:$0xff] (!%p2807_p13)  ;;  %v1698_v37 = vpack.c.bf16 (!%p2807_p13), %v1670_v28, %v1669_v27  ;;  %v3553_v18 = vld [vmem:[%s3873_s0 + $0x58] sm:$0xff] (!%p2807_p13)  }
 0x1c6   : > { %v1533_v41 = vadd.f32 %v3067_v35, %v2955_v32  ;;  %v3070_v42 = vadd.f32 %v3069_v40, %v3068_v36  ;;  %v1671_v32 = vld [vmem:[#allocation2 + $0x40] sm:$0xff] (!%p2807_p13)  ;;  %v1686_v35 = vld [vmem:[#allocation2 + $0xb8] sm:$0xff] (!%p2807_p13) }
 0x1c7   : > { %3158 = vmatpush3.bf16.msra.mxu0 (!%p2807_p13), %v3530_v8  ;;  %3305 = vmatpush3.bf16.msra.mxu1 (!%p2807_p13), %v3530_v8  ;;  %v1687_v36 = vld [vmem:[#allocation2 + $0xc0] sm:$0xff] (!%p2807_p13)  ;;  %v3537_v40 = vld [vmem:[%s4246_s3 + $0x18] sm:$0xff] (!%p2807_p13)   ;;  %v3543_v8 = vld [vmem:[%s3873_s0 + $0x8] sm:$0xff] (!%p2807_p13)  }
 0x1c8   : > { %v1575_v44 = vadd.f32 %v1533_v41, %v581_v38  ;;  %v1536_v45 = vadd.f32 %v3070_v42, %v2958_v39  ;;  %3159 = vmatprep.subr.bf16.mxu0 (!%p2807_p13), %v3531_v9  ;;  %3298 = vmatprep.subr.bf16.mxu1 (!%p2807_p13), %v3531_v9  ;;  %v1688_v38 = vld [vmem:[#allocation2 + $0xc8] sm:$0xff] (!%p2807_p13)  ;;  %v1699_v39 = vpack.c.bf16 (!%p2807_p13), %v1672_v33, %v1671_v32  ;;  %v1673_v42 = vld [vmem:[#allocation2 + $0x50] sm:$0xff] (!%p2807_p13)  ;;  %v3557_v22 = vld [vmem:[%s3873_s0 + $0x78] sm:$0xff] (!%p2807_p13)  }
 0x1c9   : > { %v2959_v46 = vpop.f32.mrb[60].mxu0  ;;  %v1706_v41 = vpack.c.bf16 (!%p2807_p13), %v1686_v35, %v1685_v34 }
 0x1ca   : > { %1607 = vst [vmem:[#allocation2 + $0xe0] sm:$0xff] %v1575_v44  ;;  %v1576_v47 = vadd.f32 %v1536_v45, %v582_v43  ;;  %v3071_v48 = vpop.f32.mrb[60].mxu1  ;;  %v2960_v49 = vpop.f32.mrb[61].mxu0  ;;  %v1674_v43 = vld [vmem:[#allocation2 + $0x58] sm:$0xff] (!%p2807_p13)  ;;  %v1707_v44 = vpack.c.bf16 (!%p2807_p13), %v1688_v38, %v1687_v36  ;;  %v3538_v45 = vld [vmem:[%s4246_s3 + $0x20] sm:$0xff] (!%p2807_p13)  }
 0x1cb   : > { %v2961_v50 = vadd.f32 %v2960_v49, %v2959_v46  ;;  %v3072_v51 = vpop.f32.mrb[61].mxu1  ;;  %v2962_v52 = vpop.f32.mrb[62].mxu0  ;;  %3160 = vmatpush3.bf16.msra.mxu0 (!%p2807_p13), %v3531_v9  ;;  %3306 = vmatpush3.bf16.msra.mxu1 (!%p2807_p13), %v3531_v9  ;;  %v1675_v46 = vld [vmem:[#allocation2 + $0x60] sm:$0xff] (!%p2807_p13)  ;;  %v1690_v49 = vld [vmem:[#allocation2 + $0xd8] sm:$0xff] (!%p2807_p13)  ;;  %v3544_v9 = vld [vmem:[%s3873_s0 + $0x10] sm:$0xff] (!%p2807_p13)  }
 0x1cc   : > { %1608 = vst [vmem:[#allocation2 + $0xe8] sm:$0xff] %v1576_v47  ;;  %v3073_v53 = vadd.f32 %v3072_v51, %v3071_v48  ;;  %v3074_v54 = vpop.f32.mrb[62].mxu1  ;;  %v2963_v55 = vpop.f32.mrb[63].mxu0  ;;  %3161 = vmatprep.subr.bf16.mxu0 (!%p2807_p13), %v3532_v10  ;;  %3299 = vmatprep.subr.bf16.mxu1 (!%p2807_p13), %v3532_v10  ;;  %v1676_v47 = vld [vmem:[#allocation2 + $0x68] sm:$0xff] (!%p2807_p13)  ;;  %v1689_v48 = vld [vmem:[#allocation2 + $0xd0] sm:$0xff] (!%p2807_p13) }
 0x1cd   : > { %v2964_v57 = vadd.f32 %v2963_v55, %v2962_v52  ;;  %v3075_v58 = vpop.f32.mrb[63].mxu1  ;;  %v3559_v51 = vld [vmem:[%s4249_s6 + $0x8] sm:$0xff] (!%p2807_p13)  }
 0x1ce   : > { %v1541_v59 = vadd.f32 %v3073_v53, %v2961_v50  ;;  %v3076_v60 = vadd.f32 %v3075_v58, %v3074_v54  ;;  %1614 = sbr.rel (%p2807_p13) target bundleno = 1000 (0x3e8), region = 83  ;;  %v3558_v50 = vld [vmem:[%s4249_s6] sm:$0xff] (!%p2807_p13)   ;;  %v1700_v53 = vpack.c.bf16 (!%p2807_p13), %v1674_v43, %v1673_v42  ;;  %v3539_v55 = vld [vmem:[%s4246_s3 + $0x28] sm:$0xff] (!%p2807_p13)   ;;  %v3560_v58 = vld [vmem:[%s4249_s6 + $0x10] sm:$0xff] (!%p2807_p13)  }
 0x1cf   : > { %3162 = vmatpush3.bf16.msra.mxu0 (!%p2807_p13), %v3532_v10  ;;  %3307 = vmatpush3.bf16.msra.mxu1 (!%p2807_p13), %v3532_v10  ;;  %v3545_v10 = vld [vmem:[%s3873_s0 + $0x18] sm:$0xff] (!%p2807_p13)  }
 0x1d0   : > { %v1577_v62 = vadd.f32 %v1541_v59, %v583_v56  ;;  %v1544_v63 = vadd.f32 %v3076_v60, %v2964_v57  ;;  %3163 = vmatprep.subr.bf16.mxu0 (!%p2807_p13), %v3533_v11  ;;  %3300 = vmatprep.subr.bf16.mxu1 (!%p2807_p13), %v3533_v11  ;;  %v1701_v56 = vpack.c.bf16 (!%p2807_p13), %v1676_v47, %v1675_v46  ;;  %v1677_v60 = vld [vmem:[#allocation2 + $0x70] sm:$0xff] (!%p2807_p13) }
 0x1d1   : > { %v1691_v52 = vld [vmem:[#allocation2 + $0xe0] sm:$0xff] (!%p2807_p13)  ;;  %v1708_v57 = vpack.c.bf16 (!%p2807_p13), %v1690_v49, %v1689_v48 }
 0x1d2   : > { %1609 = vst [vmem:[#allocation2 + $0xf0] sm:$0xff] %v1577_v62  ;;  %v1578_v0 = vadd.f32 %v1544_v63, %v584_v61  ;;  %v1678_v61 = vld [vmem:[#allocation2 + $0x78] sm:$0xff] (!%p2807_p13)  ;;  %v3540_v63 = vld [vmem:[%s4246_s3 + $0x30] sm:$0xff] (!%p2807_p13)  }
 0x1d3   : > { %3164 = vmatpush3.bf16.msra.mxu0 (!%p2807_p13), %v3533_v11  ;;  %3308 = vmatpush3.bf16.msra.mxu1 (!%p2807_p13), %v3533_v11  ;;  %v1692_v54 = vld [vmem:[#allocation2 + $0xe8] sm:$0xff] (!%p2807_p13)  ;;  %v3561_v62 = vld [vmem:[%s4249_s6 + $0x18] sm:$0xff] (!%p2807_p13)   ;;  %v1702_v2 = vpack.c.bf16 (!%p2807_p13), %v1678_v61, %v1677_v60  ;;  %v3546_v11 = vld [vmem:[%s3873_s0 + $0x20] sm:$0xff] (!%p2807_p13)  }
 0x1d4   : > { %1610 = vst [vmem:[#allocation2 + $0xf8] sm:$0xff] %v1578_v0  ;;  %3197 = vmatprep.subr.bf16.mxu0 (!%p2807_p13), %v3534_v14  ;;  %3245 = vmatprep.subr.bf16.mxu1 (!%p2807_p13), %v3558_v50  ;;  %v1709_v59 = vpack.c.bf16 (!%p2807_p13), %v1692_v54, %v1691_v52 }
 0x1d6   : > { %3166 = vmatmul.mubr.bf16.vlgmr.msra.gmra.mrb[0].mxu0 %v1696_v19  ;;  %3182 = vmatmul.mubr.bf16.vlgmr.msra.gmra.mrb[0].mxu1 %v1704_v25  ;;  %v3554_v19 = vld [vmem:[%s3873_s0 + $0x60] sm:$0xff]  }
 0x1d7   : > { %3198 = vmatpush3.bf16.msra.mxu0 %v3534_v14  ;;  %3169 = vmatprep.mubr.bf16.mxu0 %v1697_v23  ;;  %v3549_v14 = vld [vmem:[%s3873_s0 + $0x38] sm:$0xff]   ;;  %v3564_v23 = vld [vmem:[%s4249_s6 + $0x30] sm:$0xff]  }
 0x1d8   : > { %3199 = vmatprep.subr.bf16.mxu0 %v3535_v24  ;;  %3185 = vmatprep.mubr.bf16.mxu1 %v1705_v31 }
 0x1d9   : > { %3246 = vmatpush3.bf16.msra.mxu1 %v3558_v50  ;;  %v1693_v0 = vld [vmem:[#allocation2 + $0xf0] sm:$0xff] }
 0x1da   : > { %3247 = vmatprep.subr.bf16.mxu1 %v3559_v51 }
 0x1db   : > { %3200 = vmatpush3.bf16.msra.mxu0 %v3535_v24  ;;  %v1694_v1 = vld [vmem:[#allocation2 + $0xf8] sm:$0xff] }
 0x1dc   : > { %3201 = vmatprep.subr.bf16.mxu0 %v3536_v30  ;;  %v1710_v5 = vpack.c.bf16 %v1694_v1, %v1693_v0  ;;  %v3565_v24 = vld [vmem:[%s4249_s6 + $0x38] sm:$0xff]  }
 0x1dd   : > { %3248 = vmatpush3.bf16.msra.mxu1 %v3559_v51 }
 0x1de   : > { %3170 = vmatmul.mubr.bf16.gmra.mrb[4].mxu0 %v1698_v37  ;;  %3186 = vmatmul.mubr.bf16.gmra.mrb[4].mxu1 %v1706_v41  ;;  %v4103_v41 = vld [vmem:[%s4248_s5] ss:$0 sm:$0xff] }
 0x1df   : > { %3202 = vmatpush3.bf16.msra.mxu0 %v3536_v30  ;;  %3173 = vmatprep.mubr.bf16.mxu0 %v1699_v39 }
 0x1e0   : > { %3203 = vmatprep.subr.bf16.mxu0 %v3537_v40  ;;  %3189 = vmatprep.mubr.bf16.mxu1 %v1707_v44 }
 0x1e1   : > { %3249 = vmatprep.subr.bf16.mxu1 %v3560_v58 }
 0x1e2   : > { %3250 = vmatpush3.bf16.msra.mxu1 %v3560_v58 }
 0x1e3   : > { %3204 = vmatpush3.bf16.msra.mxu0 %v3537_v40  ;;  %3251 = vmatprep.subr.bf16.mxu1 %v3561_v62 }
 0x1e4   : > { %3205 = vmatprep.subr.bf16.mxu0 %v3538_v45 }
 0x1e6   : > { %3174 = vmatmul.mubr.bf16.gmra.mrb[8].mxu0 %v1700_v53  ;;  %3190 = vmatmul.mubr.bf16.gmra.mrb[8].mxu1 %v1708_v57 }
 0x1e7   : > { %3206 = vmatpush3.bf16.msra.mxu0 %v3538_v45  ;;  %3177 = vmatprep.mubr.bf16.mxu0 %v1701_v56 }
 0x1e8   : > { %3207 = vmatprep.subr.bf16.mxu0 %v3539_v55  ;;  %3193 = vmatprep.mubr.bf16.mxu1 %v1709_v59 }
 0x1e9   : > { %3252 = vmatpush3.bf16.msra.mxu1 %v3561_v62 }
 0x1ea   : > { %3253 = vmatprep.subr.bf16.mxu1 %v3562_v6 }
 0x1eb   : > { %3208 = vmatpush3.bf16.msra.mxu0 %v3539_v55 }
 0x1ec   : > { %3209 = vmatprep.subr.bf16.mxu0 %v3540_v63 }
 0x1ed   : > { %3254 = vmatpush3.bf16.msra.mxu1 %v3562_v6 }
 0x1ee   : > { %3178 = vmatmul.mubr.bf16.gmra.mrb[12].mxu0 %v1702_v2  ;;  %3194 = vmatmul.mubr.bf16.gmra.mrb[12].mxu1 %v1710_v5 }
 0x1ef   : > { %3210 = vmatpush3.bf16.msra.mxu0 %v3540_v63  ;;  %3213 = vmatprep.mubr.bf16.mxu0 %v3542_v3 }
 0x1f0   : > { %3211 = vmatprep.subr.bf16.mxu0 %v3541_v4  ;;  %3255 = vmatprep.subr.bf16.mxu1 %v3563_v7 }
 0x1f1   : > { %3256 = vmatpush3.bf16.msra.mxu1 %v3563_v7 }
 0x1f2   : > { %3257 = vmatprep.subr.bf16.mxu1 %v3564_v23 }
 0x1f3   : > { %3212 = vmatpush3.bf16.msra.mxu0 %v3541_v4 }
 0x1f5   : > { %3258 = vmatpush3.bf16.msra.mxu1 %v3564_v23 }
 0x1f6   : > { %3214 = vmatmul.mubr.bf16.vlgmr.msra.gmra.mrb[0].mxu0 %v3543_v8  ;;  %3259 = vmatprep.subr.bf16.mxu1 %v3565_v24 }
 0x1f7   : > { %3217 = vmatprep.mubr.bf16.mxu0 %v3544_v9 }
 0x1f9   : > { %3260 = vmatpush3.bf16.msra.mxu1 %v3565_v24 }
 0x1fe   : > { %3218 = vmatmul.mubr.bf16.gmra.mrb[4].mxu0 %v3545_v10 }
 0x1ff   : > { %3221 = vmatprep.mubr.bf16.mxu0 %v3546_v11 }
 0x206   : > { %3222 = vmatmul.mubr.bf16.gmra.mrb[8].mxu0 %v3547_v12 }
 0x207   : > { %3225 = vmatprep.mubr.bf16.mxu0 %v3548_v13 }
 0x20e   : > { %3226 = vmatmul.mubr.bf16.gmra.mrb[12].mxu0 %v3549_v14 }
 0x20f   : > { %3229 = vmatprep.mubr.bf16.mxu0 %v3550_v15 }
 0x216   : > { %3230 = vmatmul.mubr.bf16.gmra.mrb[16].mxu0 %v3551_v16 }
 0x217   : > { %3233 = vmatprep.mubr.bf16.mxu0 %v3552_v17 }
 0x21e   : > { %3234 = vmatmul.mubr.bf16.gmra.mrb[20].mxu0 %v3553_v18 }
 0x21f   : > { %3237 = vmatprep.mubr.bf16.mxu0 %v3554_v19 }
 0x226   : > { %3238 = vmatmul.mubr.bf16.gmra.mrb[24].mxu0 %v3555_v20 }
 0x227   : > { %3241 = vmatprep.mubr.bf16.mxu0 %v3556_v21 }
 0x22e   : > { %3242 = vmatmul.mubr.bf16.gmra.mrb[28].mxu0 %v3557_v22 }
 0x2a9   : > { %v4068_v25 = vpop.f32.mrb[0].mxu1 }
 0x2aa   : > { %v4070_v26 = vpop.f32.mrb[1].mxu1 }
 0x2ab   : > { %v4072_v27 = vpop.f32.mrb[2].mxu1 }
 0x2ac   : > { %v4074_v28 = vpop.f32.mrb[3].mxu1 }
 0x2b1   : > { %v4076_v29 = vpop.f32.mrb[4].mxu1 }
 0x2b2   : > { %v4078_v30 = vpop.f32.mrb[5].mxu1 }
 0x2b3   : > { %v4080_v31 = vpop.f32.mrb[6].mxu1 }
 0x2b4   : > { %v4082_v32 = vpop.f32.mrb[7].mxu1 }
 0x2b9   : > { %v4084_v33 = vpop.f32.mrb[8].mxu1 }
 0x2ba   : > { %v4086_v34 = vpop.f32.mrb[9].mxu1 }
 0x2bb   : > { %v4088_v35 = vpop.f32.mrb[10].mxu1 }
 0x2bc   : > { %v4090_v36 = vpop.f32.mrb[11].mxu1 }
 0x2c1   : > { %v4092_v37 = vpop.f32.mrb[12].mxu1 }
 0x2c2   : > { %v4094_v38 = vpop.f32.mrb[13].mxu1 }
 0x2c3   : > { %v4096_v39 = vpop.f32.mrb[14].mxu1 }
 0x2c4   : > { %v4098_v40 = vpop.f32.mrb[15].mxu1 }
 0x2c9   : > { %v3215_v42 = vpop.f32.mrb[0].mxu0 }
 0x2ca   : > { %v2250_v43 = vadd.f32 %v3215_v42, %v4103_v41  ;;  %v2114_v44 = vpop.f32.mrb[1].mxu0 }
 0x2cb   : > { %v2248_v45 = vadd.f32 %v4103_v41, %v2114_v44  ;;  %v3216_v46 = vpop.f32.mrb[2].mxu0 }
 0x2cc   : > { %v2251_v47 = vadd.f32 %v3216_v46, %v4103_v41  ;;  %v2117_v48 = vpop.f32.mrb[3].mxu0  ;;  %v2282_v50 = vmax.f32 %v2250_v43, 0.0 }
 0x2cd   : > { %v2249_v49 = vadd.f32 %v4103_v41, %v2117_v48  ;;  %v2280_v52 = vmax.f32 %v2248_v45, 0.0 }
 0x2ce   : > { %v2283_v51 = vmax.f32 %v2251_v47, 0.0 }
 0x2cf   : > { %v2281_v53 = vmax.f32 %v2249_v49, 0.0 }
 0x2d0   : > { %v2313_v54 = vpack.c.bf16 %v2283_v51, %v2282_v50 }
 0x2d1   : > { %v2312_v55 = vpack.c.bf16 %v2281_v53, %v2280_v52  ;;  %v3219_v56 = vpop.f32.mrb[4].mxu0 }
 0x2d2   : > { %v2254_v57 = vadd.f32 %v3219_v56, %v4103_v41  ;;  %v2130_v58 = vpop.f32.mrb[5].mxu0 }
 0x2d3   : > { %v2252_v59 = vadd.f32 %v4103_v41, %v2130_v58  ;;  %v3220_v60 = vpop.f32.mrb[6].mxu0  ;;  %3261 = vmatprep.mubr.bf16.mxu1 %v2312_v55 }
 0x2d4   : > { %v2255_v61 = vadd.f32 %v3220_v60, %v4103_v41  ;;  %v2133_v62 = vpop.f32.mrb[7].mxu0  ;;  %3262 = vmatmul.mubr.bf16.vlgmr.msra.gmra.mrb[16].mxu1 %v2313_v54  ;;  %v2286_v0 = vmax.f32 %v2254_v57, 0.0 }
 0x2d5   : > { %v2253_v63 = vadd.f32 %v4103_v41, %v2133_v62  ;;  %v2284_v2 = vmax.f32 %v2252_v59, 0.0 }
 0x2d6   : > { %v2287_v1 = vmax.f32 %v2255_v61, 0.0 }
 0x2d7   : > { %v2285_v3 = vmax.f32 %v2253_v63, 0.0 }
 0x2d8   : > { %v2315_v4 = vpack.c.bf16 %v2287_v1, %v2286_v0 }
 0x2d9   : > { %v2314_v5 = vpack.c.bf16 %v2285_v3, %v2284_v2  ;;  %v3223_v6 = vpop.f32.mrb[8].mxu0 }
 0x2da   : > { %v2258_v7 = vadd.f32 %v3223_v6, %v4103_v41  ;;  %v2146_v8 = vpop.f32.mrb[9].mxu0 }
 0x2db   : > { %v2256_v9 = vadd.f32 %v4103_v41, %v2146_v8  ;;  %v3224_v10 = vpop.f32.mrb[10].mxu0  ;;  %3265 = vmatprep.mubr.bf16.mxu1 %v2314_v5 }
 0x2dc   : > { %v2259_v11 = vadd.f32 %v3224_v10, %v4103_v41  ;;  %v2149_v12 = vpop.f32.mrb[11].mxu0  ;;  %3266 = vmatmul.mubr.bf16.gmra.mrb[20].mxu1 %v2315_v4  ;;  %v2290_v14 = vmax.f32 %v2258_v7, 0.0 }
 0x2dd   : > { %v2257_v13 = vadd.f32 %v4103_v41, %v2149_v12  ;;  %v2288_v16 = vmax.f32 %v2256_v9, 0.0 }
 0x2de   : > { %v2291_v15 = vmax.f32 %v2259_v11, 0.0 }
 0x2df   : > { %v2289_v17 = vmax.f32 %v2257_v13, 0.0 }
 0x2e0   : > { %v2317_v18 = vpack.c.bf16 %v2291_v15, %v2290_v14 }
 0x2e1   : > { %v2316_v19 = vpack.c.bf16 %v2289_v17, %v2288_v16  ;;  %v3227_v20 = vpop.f32.mrb[12].mxu0 }
 0x2e2   : > { %v2262_v21 = vadd.f32 %v3227_v20, %v4103_v41  ;;  %v2162_v22 = vpop.f32.mrb[13].mxu0 }
 0x2e3   : > { %v2260_v23 = vadd.f32 %v4103_v41, %v2162_v22  ;;  %v3228_v24 = vpop.f32.mrb[14].mxu0  ;;  %3269 = vmatprep.mubr.bf16.mxu1 %v2316_v19 }
 0x2e4   : > { %v2263_v42 = vadd.f32 %v3228_v24, %v4103_v41  ;;  %v2165_v43 = vpop.f32.mrb[15].mxu0  ;;  %3270 = vmatmul.mubr.bf16.gmra.mrb[24].mxu1 %v2317_v18  ;;  %v2294_v45 = vmax.f32 %v2262_v21, 0.0 }
 0x2e5   : > { %v2261_v44 = vadd.f32 %v4103_v41, %v2165_v43  ;;  %v2292_v47 = vmax.f32 %v2260_v23, 0.0 }
 0x2e6   : > { %v2295_v46 = vmax.f32 %v2263_v42, 0.0 }
 0x2e7   : > { %v2293_v48 = vmax.f32 %v2261_v44, 0.0 }
 0x2e8   : > { %v2319_v49 = vpack.c.bf16 %v2295_v46, %v2294_v45 }
 0x2e9   : > { %v2318_v50 = vpack.c.bf16 %v2293_v48, %v2292_v47  ;;  %v3231_v51 = vpop.f32.mrb[16].mxu0 }
 0x2ea   : > { %v2187_v52 = vadd.f32 %v3231_v51, %v4068_v25  ;;  %v2178_v53 = vpop.f32.mrb[17].mxu0 }
 0x2eb   : > { %v2179_v54 = vadd.f32 %v2178_v53, %v4070_v26  ;;  %v3232_v55 = vpop.f32.mrb[18].mxu0  ;;  %3273 = vmatprep.mubr.bf16.mxu1 %v2318_v50 }
 0x2ec   : > { %v2266_v56 = vadd.f32 %v4103_v41, %v2187_v52  ;;  %v2190_v57 = vadd.f32 %v3232_v55, %v4072_v27  ;;  %v2181_v58 = vpop.f32.mrb[19].mxu0  ;;  %3274 = vmatmul.mubr.bf16.gmra.mrb[28].mxu1 %v2319_v49 }
 0x2ed   : > { %v2264_v59 = vadd.f32 %v4103_v41, %v2179_v54  ;;  %v2182_v60 = vadd.f32 %v2181_v58, %v4074_v28 }
 0x2ee   : > { %v2267_v61 = vadd.f32 %v4103_v41, %v2190_v57  ;;  %v2298_v25 = vmax.f32 %v2266_v56, 0.0 }
 0x2ef   : > { %v2265_v62 = vadd.f32 %v4103_v41, %v2182_v60  ;;  %v2296_v0 = vmax.f32 %v2264_v59, 0.0 }
 0x2f0   : > { %v2299_v63 = vmax.f32 %v2267_v61, 0.0 }
 0x2f1   : > { %v2297_v26 = vmax.f32 %v2265_v62, 0.0  ;;  %v3235_v1 = vpop.f32.mrb[20].mxu0 }
 0x2f2   : > { %v2203_v2 = vadd.f32 %v3235_v1, %v4076_v29  ;;  %v2194_v3 = vpop.f32.mrb[21].mxu0  ;;  %v2321_v4 = vpack.c.bf16 %v2299_v63, %v2298_v25 }
 0x2f3   : > { %v2195_v27 = vadd.f32 %v2194_v3, %v4078_v30  ;;  %v3236_v5 = vpop.f32.mrb[22].mxu0  ;;  %v2320_v6 = vpack.c.bf16 %v2297_v26, %v2296_v0 }
 0x2f4   : > { %v2270_v7 = vadd.f32 %v4103_v41, %v2203_v2  ;;  %v2206_v28 = vadd.f32 %v3236_v5, %v4080_v31  ;;  %v2197_v8 = vpop.f32.mrb[23].mxu0 }
 0x2f5   : > { %v2268_v9 = vadd.f32 %v4103_v41, %v2195_v27  ;;  %v2198_v10 = vadd.f32 %v2197_v8, %v4082_v32  ;;  %3277 = vmatprep.mubr.bf16.mxu1 %v2320_v6 }
 0x2f6   : > { %v2271_v11 = vadd.f32 %v4103_v41, %v2206_v28  ;;  %3278 = vmatmul.mubr.bf16.gmra.mrb[32].mxu1 %v2321_v4  ;;  %v2302_v12 = vmax.f32 %v2270_v7, 0.0 }
 0x2f7   : > { %v2269_v29 = vadd.f32 %v4103_v41, %v2198_v10  ;;  %v2300_v30 = vmax.f32 %v2268_v9, 0.0 }
 0x2f8   : > { %v2303_v13 = vmax.f32 %v2271_v11, 0.0 }
 0x2f9   : > { %v2301_v14 = vmax.f32 %v2269_v29, 0.0  ;;  %v3239_v15 = vpop.f32.mrb[24].mxu0 }
 0x2fa   : > { %v2219_v16 = vadd.f32 %v3239_v15, %v4084_v33  ;;  %v2210_v17 = vpop.f32.mrb[25].mxu0  ;;  %v2323_v31 = vpack.c.bf16 %v2303_v13, %v2302_v12 }
 0x2fb   : > { %v2211_v18 = vadd.f32 %v2210_v17, %v4086_v34  ;;  %v3240_v19 = vpop.f32.mrb[26].mxu0  ;;  %v2322_v20 = vpack.c.bf16 %v2301_v14, %v2300_v30 }
 0x2fc   : > { %v2274_v32 = vadd.f32 %v4103_v41, %v2219_v16  ;;  %v2222_v21 = vadd.f32 %v3240_v19, %v4088_v35  ;;  %v2213_v22 = vpop.f32.mrb[27].mxu0 }
 0x2fd   : > { %v2272_v23 = vadd.f32 %v4103_v41, %v2211_v18  ;;  %v2214_v24 = vadd.f32 %v2213_v22, %v4090_v36  ;;  %3281 = vmatprep.mubr.bf16.mxu1 %v2322_v20 }
 0x2fe   : > { %v2275_v42 = vadd.f32 %v4103_v41, %v2222_v21  ;;  %3282 = vmatmul.mubr.bf16.gmra.mrb[36].mxu1 %v2323_v31  ;;  %v2306_v43 = vmax.f32 %v2274_v32, 0.0 }
 0x2ff   : > { %v2273_v33 = vadd.f32 %v4103_v41, %v2214_v24  ;;  %v2304_v34 = vmax.f32 %v2272_v23, 0.0 }
 0x300   : > { %v2307_v44 = vmax.f32 %v2275_v42, 0.0 }
 0x301   : > { %v2305_v45 = vmax.f32 %v2273_v33, 0.0  ;;  %v3243_v46 = vpop.f32.mrb[28].mxu0 }
 0x302   : > { %v2235_v47 = vadd.f32 %v3243_v46, %v4092_v37  ;;  %v2226_v48 = vpop.f32.mrb[29].mxu0  ;;  %v2325_v35 = vpack.c.bf16 %v2307_v44, %v2306_v43 }
 0x303   : > { %v2227_v49 = vadd.f32 %v2226_v48, %v4094_v38  ;;  %v3244_v50 = vpop.f32.mrb[30].mxu0  ;;  %v2324_v51 = vpack.c.bf16 %v2305_v45, %v2304_v34 }
 0x304   : > { %v2278_v36 = vadd.f32 %v4103_v41, %v2235_v47  ;;  %v2238_v52 = vadd.f32 %v3244_v50, %v4096_v39  ;;  %v2229_v53 = vpop.f32.mrb[31].mxu0 }
 0x305   : > { %v2276_v54 = vadd.f32 %v4103_v41, %v2227_v49  ;;  %v2230_v55 = vadd.f32 %v2229_v53, %v4098_v40  ;;  %3285 = vmatprep.mubr.bf16.mxu1 %v2324_v51  ;;  %v4156_v40 = vld [vmem:[%s4250_s7] ss:$0 sm:$0xff] }
 0x306   : > { %v2279_v56 = vadd.f32 %v4103_v41, %v2238_v52  ;;  %3286 = vmatmul.mubr.bf16.gmra.mrb[40].mxu1 %v2325_v35  ;;  %v2310_v57 = vmax.f32 %v2278_v36, 0.0 }
 0x307   : > { %v2277_v37 = vadd.f32 %v4103_v41, %v2230_v55  ;;  %v2308_v58 = vmax.f32 %v2276_v54, 0.0 }
 0x308   : > { %v2311_v38 = vmax.f32 %v2279_v56, 0.0 }
 0x309   : > { %v2309_v59 = vmax.f32 %v2277_v37, 0.0 }
 0x30a   : > { %v2327_v60 = vpack.c.bf16 %v2311_v38, %v2310_v57 }
 0x30b   : > { %v2326_v39 = vpack.c.bf16 %v2309_v59, %v2308_v58 }
 0x30d   : > { %3289 = vmatprep.mubr.bf16.mxu1 %v2326_v39 }
 0x30e   : > { %3290 = vmatmul.mubr.bf16.gmra.mrb[44].mxu1 %v2327_v60 }
 0x3a7   : > { %v3263_v61 = vpop.f32.mrb[16].mxu1 }
 0x3a8   : > { %v2442_v62 = vadd.f32 %v3263_v61, %v4156_v40  ;;  %v2433_v41 = vpop.f32.mrb[17].mxu1 }
 0x3a9   : > { %v2434_v25 = vadd.f32 %v4156_v40, %v2433_v41  ;;  %v3264_v63 = vpop.f32.mrb[18].mxu1 }
 0x3aa   : > { %2562 = vst [vmem:[%s3878_s30 + $0x10] sm:$0xff] %v2442_v62  ;;  %v2445_v0 = vadd.f32 %v3264_v63, %v4156_v40  ;;  %v2436_v26 = vpop.f32.mrb[19].mxu1 }
 0x3ab   : > { %2560 = vst [vmem:[%s3878_s30] sm:$0xff] %v2434_v25  ;;  %v2437_v1 = vadd.f32 %v4156_v40, %v2436_v26 }
 0x3ac   : > { %2563 = vst [vmem:[%s3878_s30 + $0x18] sm:$0xff] %v2445_v0 }
 0x3ad   : > { %2561 = vst [vmem:[%s3878_s30 + $0x8] sm:$0xff] %v2437_v1 }
 0x3af   : > { %v3267_v2 = vpop.f32.mrb[20].mxu1 }
 0x3b0   : > { %v2458_v3 = vadd.f32 %v3267_v2, %v4156_v40  ;;  %v2449_v4 = vpop.f32.mrb[21].mxu1 }
 0x3b1   : > { %v2450_v27 = vadd.f32 %v4156_v40, %v2449_v4  ;;  %v3268_v5 = vpop.f32.mrb[22].mxu1 }
 0x3b2   : > { %2566 = vst [vmem:[%s3878_s30 + $0x30] sm:$0xff] %v2458_v3  ;;  %v2461_v6 = vadd.f32 %v3268_v5, %v4156_v40  ;;  %v2452_v7 = vpop.f32.mrb[23].mxu1 }
 0x3b3   : > { %2564 = vst [vmem:[%s3878_s30 + $0x20] sm:$0xff] %v2450_v27  ;;  %v2453_v28 = vadd.f32 %v4156_v40, %v2452_v7 }
 0x3b4   : > { %2567 = vst [vmem:[%s3878_s30 + $0x38] sm:$0xff] %v2461_v6 }
 0x3b5   : > { %2565 = vst [vmem:[%s3878_s30 + $0x28] sm:$0xff] %v2453_v28 }
 0x3b7   : > { %v3271_v8 = vpop.f32.mrb[24].mxu1 }
 0x3b8   : > { %v2474_v9 = vadd.f32 %v3271_v8, %v4156_v40  ;;  %v2465_v10 = vpop.f32.mrb[25].mxu1 }
 0x3b9   : > { %v2466_v11 = vadd.f32 %v4156_v40, %v2465_v10  ;;  %v3272_v29 = vpop.f32.mrb[26].mxu1 }
 0x3ba   : > { %2570 = vst [vmem:[%s3878_s30 + $0x50] sm:$0xff] %v2474_v9  ;;  %v2477_v12 = vadd.f32 %v3272_v29, %v4156_v40  ;;  %v2468_v13 = vpop.f32.mrb[27].mxu1 }
 0x3bb   : > { %2568 = vst [vmem:[%s3878_s30 + $0x40] sm:$0xff] %v2466_v11  ;;  %v2469_v30 = vadd.f32 %v4156_v40, %v2468_v13 }
 0x3bc   : > { %2571 = vst [vmem:[%s3878_s30 + $0x58] sm:$0xff] %v2477_v12 }
 0x3bd   : > { %2569 = vst [vmem:[%s3878_s30 + $0x48] sm:$0xff] %v2469_v30 }
 0x3bf   : > { %v3275_v14 = vpop.f32.mrb[28].mxu1 }
 0x3c0   : > { %v2490_v15 = vadd.f32 %v3275_v14, %v4156_v40  ;;  %v2481_v16 = vpop.f32.mrb[29].mxu1 }
 0x3c1   : > { %v2482_v17 = vadd.f32 %v4156_v40, %v2481_v16  ;;  %v3276_v31 = vpop.f32.mrb[30].mxu1 }
 0x3c2   : > { %2574 = vst [vmem:[%s3878_s30 + $0x70] sm:$0xff] %v2490_v15  ;;  %v2493_v18 = vadd.f32 %v3276_v31, %v4156_v40  ;;  %v2484_v19 = vpop.f32.mrb[31].mxu1 }
 0x3c3   : > { %2572 = vst [vmem:[%s3878_s30 + $0x60] sm:$0xff] %v2482_v17  ;;  %v2485_v20 = vadd.f32 %v4156_v40, %v2484_v19 }
 0x3c4   : > { %2575 = vst [vmem:[%s3878_s30 + $0x78] sm:$0xff] %v2493_v18 }
 0x3c5   : > { %2573 = vst [vmem:[%s3878_s30 + $0x68] sm:$0xff] %v2485_v20 }
 0x3c9   : > { %v3279_v32 = vpop.f32.mrb[32].mxu1 }
 0x3ca   : > { %v2506_v21 = vadd.f32 %v3279_v32, %v4156_v40  ;;  %v2497_v22 = vpop.f32.mrb[33].mxu1 }
 0x3cb   : > { %v2498_v23 = vadd.f32 %v4156_v40, %v2497_v22  ;;  %v3280_v24 = vpop.f32.mrb[34].mxu1 }
 0x3cc   : > { %2578 = vst [vmem:[%s3878_s30 + $0x90] sm:$0xff] %v2506_v21  ;;  %v2509_v42 = vadd.f32 %v3280_v24, %v4156_v40  ;;  %v2500_v33 = vpop.f32.mrb[35].mxu1 }
 0x3cd   : > { %2576 = vst [vmem:[%s3878_s30 + $0x80] sm:$0xff] %v2498_v23  ;;  %v2501_v43 = vadd.f32 %v4156_v40, %v2500_v33 }
 0x3ce   : > { %2579 = vst [vmem:[%s3878_s30 + $0x98] sm:$0xff] %v2509_v42 }
 0x3cf   : > { %2577 = vst [vmem:[%s3878_s30 + $0x88] sm:$0xff] %v2501_v43 }
 0x3d1   : > { %v3283_v44 = vpop.f32.mrb[36].mxu1 }
 0x3d2   : > { %v2522_v34 = vadd.f32 %v3283_v44, %v4156_v40  ;;  %v2513_v45 = vpop.f32.mrb[37].mxu1 }
 0x3d3   : > { %v2514_v46 = vadd.f32 %v4156_v40, %v2513_v45  ;;  %v3284_v47 = vpop.f32.mrb[38].mxu1 }
 0x3d4   : > { %2582 = vst [vmem:[%s3878_s30 + $0xb0] sm:$0xff] %v2522_v34  ;;  %v2525_v48 = vadd.f32 %v3284_v47, %v4156_v40  ;;  %v2516_v35 = vpop.f32.mrb[39].mxu1 }
 0x3d5   : > { %2580 = vst [vmem:[%s3878_s30 + $0xa0] sm:$0xff] %v2514_v46  ;;  %v2517_v49 = vadd.f32 %v4156_v40, %v2516_v35 }
 0x3d6   : > { %2583 = vst [vmem:[%s3878_s30 + $0xb8] sm:$0xff] %v2525_v48 }
 0x3d7   : > { %2581 = vst [vmem:[%s3878_s30 + $0xa8] sm:$0xff] %v2517_v49 }
 0x3d9   : > { %v3287_v50 = vpop.f32.mrb[40].mxu1 }
 0x3da   : > { %v2538_v51 = vadd.f32 %v3287_v50, %v4156_v40  ;;  %v2529_v36 = vpop.f32.mrb[41].mxu1 }
 0x3db   : > { %v2530_v52 = vadd.f32 %v4156_v40, %v2529_v36  ;;  %v3288_v53 = vpop.f32.mrb[42].mxu1 }
 0x3dc   : > { %2586 = vst [vmem:[%s3878_s30 + $0xd0] sm:$0xff] %v2538_v51  ;;  %v2541_v54 = vadd.f32 %v3288_v53, %v4156_v40  ;;  %v2532_v55 = vpop.f32.mrb[43].mxu1 }
 0x3dd   : > { %2584 = vst [vmem:[%s3878_s30 + $0xc0] sm:$0xff] %v2530_v52  ;;  %v2533_v56 = vadd.f32 %v4156_v40, %v2532_v55 }
 0x3de   : > { %2587 = vst [vmem:[%s3878_s30 + $0xd8] sm:$0xff] %v2541_v54 }
 0x3df   : > { %2585 = vst [vmem:[%s3878_s30 + $0xc8] sm:$0xff] %v2533_v56 }
 0x3e1   : > { %v3291_v37 = vpop.f32.mrb[44].mxu1 }
 0x3e2   : > { %v2554_v57 = vadd.f32 %v3291_v37, %v4156_v40  ;;  %v2545_v38 = vpop.f32.mrb[45].mxu1 }
 0x3e3   : > { %v2546_v58 = vadd.f32 %v4156_v40, %v2545_v38  ;;  %v3292_v59 = vpop.f32.mrb[46].mxu1 }
 0x3e4   : > { %2590 = vst [vmem:[%s3878_s30 + $0xf0] sm:$0xff] %v2554_v57  ;;  %v2557_v60 = vadd.f32 %v3292_v59, %v4156_v40  ;;  %v2548_v39 = vpop.f32.mrb[47].mxu1 }
 0x3e5   : > { %2588 = vst [vmem:[%s3878_s30 + $0xe0] sm:$0xff] %v2546_v58  ;;  %v2549_v61 = vadd.f32 %v4156_v40, %v2548_v39 }
 0x3e6   : > { %2591 = vst [vmem:[%s3878_s30 + $0xf8] sm:$0xff] %v2557_v60 }
 0x3e7   : > { %2589 = vst [vmem:[%s3878_s30 + $0xe8] sm:$0xff] %v2549_v61 }
 0x3e8 PF: > { %s18_s11 = sadd.s32 1, %s3620_s11   ;;  %s4256_s23 = sld [smem:[#allocation4_spill]] }
 0x3e9   : > { %p15_p0 = scmp.ge.s32.totalorder %s18_s11, 10   ;;  %s4257_s27 = smov %s3600_s28 }
 0x3ea   : > { %s4258_s28 = smov %s3719_s18  ;;  %s4259_s29 = smov %s3612_s9 }
 0x3eb   : > { %s4260_s30 = smov %s3616_s10  ;;  %s4261_s9 = smov %s4264_s12 }
 0x3ec   :  { %17 = sbr.rel (!%p15_p0) target bundleno = 6 (0x6), region = 124 }
 0x3ee   : > { %s4262_s10 = smov %s4256_s23 }

</bundles_post_ra>
